<compile_context>
chip_gen: v7x
topology: tpu7x:2x2x1
jax: 0.10.0
libtpu: 0.0.40
codegen_flags: <defaults>
</compile_context>

<pallas_src>
import jax
import jax.numpy as jnp
from jax.experimental import pallas as pl
from jax.experimental.pallas import tpu as pltpu


def temporal_kernel(x_ref,                        # (T*B, H)  f32, time-major
                    wih1_ref, whh1_ref, b1_ref,   # (H,4H) bf16, (H,4H) bf16, (1,4H) f32
                    w2_hbm, b2_ref,               # (2H,4H) bf16 in HBM, (1,4H) f32
                    wl1_hbm, bl1_ref,             # (H,H)  bf16 in HBM, (1,H)  f32
                    wl2_hbm, bl2_ref,             # (H,K)  bf16 in HBM, (1,K)  f32
                    out_ref,                      # (B,K)  f32
                    gx_ref,                       # VMEM scratch (T*B, 4H) f32
                    in2_ref,                      # VMEM scratch (B, 2H) bf16: [h1 | h2]
                    w2_vmem, wl1_vmem, wl2_vmem,  # VMEM weight landing buffers (bf16)
                    dma_sem):                     # DMA semaphores (3,)
    f32 = jnp.float32
    bf16 = jnp.bfloat16
    B = out_ref.shape[0]
    H = whh1_ref.shape[0]
    T = x_ref.shape[0] // B

    # Kick off the weight DMAs that are NOT needed immediately; they overlap
    # with the gx precompute matmul and the first LSTM1 step instead of being
    # serialized in front of the body.
    w2_cp = pltpu.make_async_copy(w2_hbm, w2_vmem, dma_sem.at[0])
    wl1_cp = pltpu.make_async_copy(wl1_hbm, wl1_vmem, dma_sem.at[1])
    wl2_cp = pltpu.make_async_copy(wl2_hbm, wl2_vmem, dma_sem.at[2])
    w2_cp.start()
    wl1_cp.start()
    wl2_cp.start()

    # LSTM1 input projection for ALL time steps in ONE MXU matmul, bias folded
    # in (equivalent math, moved off the sequential critical path).
    gx_ref[...] = (
        jnp.dot(x_ref[...].astype(bf16), wih1_ref[...],
                preferred_element_type=f32)
        + b1_ref[...])

    def gates_to_hc(gates, c):
        # PyTorch gate column order: [i | f | g | o].
        # One wide sigmoid over the contiguous [i|f] slab -> fewer EUP pushes.
        if_slab = jax.nn.sigmoid(gates[:, :2 * H])
        g = jnp.tanh(gates[:, 2 * H:3 * H])
        o = jax.nn.sigmoid(gates[:, 3 * H:])
        c_new = if_slab[:, H:] * c + if_slab[:, :H] * g
        h_new = o * jnp.tanh(c_new)
        return h_new, c_new

    # Persistent bf16 [h1 | h2] buffer feeds the fused LSTM2 matmul without a
    # per-step concatenate; each half is rewritten only when it changes.
    in2_ref[...] = jnp.zeros((B, 2 * H), bf16)
    h1_bf = jnp.zeros((B, H), bf16)
    c1 = jnp.zeros((B, H), f32)
    c2 = jnp.zeros((B, H), f32)

    # Fully unrolled recurrence over the small, static time axis.
    for t in range(T):
        # LSTM1: only the recurrent matmul h1 @ W_hh1 is on the critical path.
        g1 = gx_ref[t * B:(t + 1) * B, :] + jnp.dot(
            h1_bf, whh1_ref[...], preferred_element_type=f32)
        h1, c1 = gates_to_hc(g1, c1)
        h1_bf = h1.astype(bf16)
        in2_ref[:, :H] = h1_bf

        if t == 0:
            # First use of the fused LSTM2 weight: its DMA has been hidden
            # behind the gx precompute and the first LSTM1 step.
            w2_cp.wait()

        # LSTM2: single fused matmul [h1_t | h2_{t-1}] @ [W_ih2 ; W_hh2].
        g2 = (jnp.dot(in2_ref[...], w2_vmem[...], preferred_element_type=f32)
              + b2_ref[...])
        h2, c2 = gates_to_hc(g2, c2)
        in2_ref[:, H:] = h2.astype(bf16)

    # Head weights streamed in during the recurrence; wait only now.
    wl1_cp.wait()
    wl2_cp.wait()

    # Head on the last hidden state: ReLU(Linear(H->H)) -> ReLU(Linear(H->K)).
    y = jnp.maximum(
        jnp.dot(in2_ref[:, H:], wl1_vmem[...], preferred_element_type=f32)
        + bl1_ref[...], 0.0)
    out_ref[...] = jnp.maximum(
        jnp.dot(y.astype(bf16), wl2_vmem[...], preferred_element_type=f32)
        + bl2_ref[...], 0.0)


def prepare_params(params):
    """One-time host-side weight packing (bf16 casts + LSTM2 weight fusion).

    Hoisted out of the per-call path so the per-launch graph contains only the
    tiny input transpose and the pallas_call itself.
    """
    bf16 = jnp.bfloat16
    f32 = jnp.float32
    return {
        "w_ih1": params["w_ih1"].astype(bf16),
        "w_hh1": params["w_hh1"].astype(bf16),
        "b1": params["b1"].astype(f32),
        # Fuse LSTM2's input + recurrent weights so each step is one matmul.
        "w2": jnp.concatenate([params["w_ih2"], params["w_hh2"]],
                              axis=0).astype(bf16),
        "b2": params["b2"].astype(f32),
        "w_lin1": params["w_lin1"].astype(bf16),
        "b_lin1": params["b_lin1"].astype(f32),
        "w_lin2": params["w_lin2"].astype(bf16),
        "b_lin2": params["b_lin2"].astype(f32),
    }


@jax.jit
def temporal_component_forward(x, packed):
    """x: (B, T, N, F) float32, packed = prepare_params(params).
    Returns (B, N*output_dim) float32."""
    B, T, N, Fdim = x.shape
    H = N * Fdim
    K = packed["w_lin2"].shape[1]

    # Time-major + flattened to (T*B, H): per-step rows of the precomputed
    # gate projection are contiguous and 8-sublane aligned inside the kernel.
    xt = jnp.transpose(x.reshape(B, T, H), (1, 0, 2)).reshape(T * B, H)
    xt = xt.astype(jnp.float32)

    vmem = lambda: pl.BlockSpec(memory_space=pltpu.MemorySpace.VMEM)
    hbm = lambda: pl.BlockSpec(memory_space=pl.ANY)   # manual-DMA inputs

    return pl.pallas_call(
        temporal_kernel,
        out_shape=jax.ShapeDtypeStruct((B, K), jnp.float32),
        in_specs=[vmem(),                    # x (time-major)
                  vmem(), vmem(), vmem(),    # w_ih1, w_hh1, b1
                  hbm(), vmem(),             # w2 (async-copied), b2
                  hbm(), vmem(),             # w_lin1 (async-copied), b_lin1
                  hbm(), vmem()],            # w_lin2 (async-copied), b_lin2
        out_specs=vmem(),
        scratch_shapes=[
            pltpu.VMEM((T * B, 4 * H), jnp.float32),    # gx: precomputed gates
            pltpu.VMEM((B, 2 * H), jnp.bfloat16),       # [h1 | h2] bf16
            pltpu.VMEM((2 * H, 4 * H), jnp.bfloat16),   # w2 landing buffer
            pltpu.VMEM((H, H), jnp.bfloat16),           # w_lin1 landing buffer
            pltpu.VMEM((H, K), jnp.bfloat16),           # w_lin2 landing buffer
            pltpu.SemaphoreType.DMA((3,)),
        ],
        compiler_params=pltpu.CompilerParams(
            # Footprint here is ~1 MiB; explicit limit left generous so the
            # same kernel scales with H without silently tripping the default.
            vmem_limit_bytes=32 * 1024 * 1024),
    )(xt,
      packed["w_ih1"], packed["w_hh1"], packed["b1"],
      packed["w2"], packed["b2"],
      packed["w_lin1"], packed["b_lin1"],
      packed["w_lin2"], packed["b_lin2"])


def init_params(key, n, feature_dim, output_dim):
    """Deterministic parameter init (uniform +-1/sqrt(H), like PyTorch)."""
    H = n * feature_dim
    K = n * output_dim
    scale = 1.0 / jnp.sqrt(jnp.float32(H))
    keys = jax.random.split(key, 14)
    u = lambda k, shape: jax.random.uniform(k, shape, jnp.float32, -scale, scale)

    # LSTM biases: PyTorch has bias_ih + bias_hh; fold their sum into one (1,4H).
    # Gate column order is PyTorch's [i | f | g | o]; imported (4H,H) PyTorch
    # weights must be transposed with that order preserved.
    return {
        "w_ih1": u(keys[0], (H, 4 * H)),
        "w_hh1": u(keys[1], (H, 4 * H)),
        "b1": u(keys[2], (1, 4 * H)) + u(keys[3], (1, 4 * H)),
        "w_ih2": u(keys[4], (H, 4 * H)),
        "w_hh2": u(keys[5], (H, 4 * H)),
        "b2": u(keys[6], (1, 4 * H)) + u(keys[7], (1, 4 * H)),
        "w_lin1": u(keys[8], (H, H)),
        "b_lin1": u(keys[9], (1, H)),
        "w_lin2": u(keys[10], (H, K)),
        "b_lin2": u(keys[11], (1, K)),
    }


def reference_forward(x, params, matmul_dtype=jnp.float32):
    """Pure-JAX reference. matmul_dtype=bfloat16 mirrors the kernel's mixed
    precision (bf16 matmul operands, f32 accumulation / gate math)."""
    B, T, N, Fdim = x.shape
    H = N * Fdim
    xt = jnp.transpose(x.reshape(B, T, H), (1, 0, 2)).astype(jnp.float32)

    def mm(a, w):
        return jnp.dot(a.astype(matmul_dtype), w.astype(matmul_dtype),
                       preferred_element_type=jnp.float32)

    def lstm(seq, wih, whh, b):
        def step(carry, x_t):
            h, c = carry
            gates = mm(x_t, wih) + mm(h, whh) + b
            i = jax.nn.sigmoid(gates[:, 0 * H:1 * H])
            f = jax.nn.sigmoid(gates[:, 1 * H:2 * H])
            g = jnp.tanh(gates[:, 2 * H:3 * H])
            o = jax.nn.sigmoid(gates[:, 3 * H:4 * H])
            c = f * c + i * g
            h = o * jnp.tanh(c)
            return (h, c), h
        init = (jnp.zeros((B, H), jnp.float32), jnp.zeros((B, H), jnp.float32))
        _, hs = jax.lax.scan(step, init, seq)
        return hs

    h1 = lstm(xt, params["w_ih1"], params["w_hh1"], params["b1"])
    h2 = lstm(h1, params["w_ih2"], params["w_hh2"], params["b2"])
    last = h2[-1]
    y = jnp.maximum(mm(last, params["w_lin1"]) + params["b_lin1"], 0.0)
    return jnp.maximum(mm(y, params["w_lin2"]) + params["b_lin2"], 0.0)


if __name__ == "__main__":
    # Small but TPU-friendly shapes: H = n * feature_dim = 128.
    n = 16            # num_nodes
    feature_dim = 8
    output_dim = 4    # -> output width K = 64
    input_window = 6  # time steps
    batch = 8

    key = jax.random.PRNGKey(0)
    kx, kp = jax.random.split(key)
    x = jax.random.normal(kx, (batch, input_window, n, feature_dim),
                          dtype=jnp.float32)
    params = init_params(kp, n, feature_dim, output_dim)
    packed = jax.tree.map(jax.block_until_ready, prepare_params(params))

    out = jax.block_until_ready(temporal_component_forward(x, packed))

    # Tight check against a reference with identical mixed precision.
    ref_mixed = reference_forward(x, params, matmul_dtype=jnp.bfloat16)
    # Looser sanity check against the pure-f32 (PyTorch-equivalent) math.
    ref_f32 = reference_forward(x, params, matmul_dtype=jnp.float32)

    assert out.shape == (batch, n * output_dim), out.shape
    assert jnp.allclose(out, ref_mixed, atol=1e-3, rtol=1e-3), (
        float(jnp.max(jnp.abs(out - ref_mixed))))
    assert jnp.allclose(out, ref_f32, atol=1e-1, rtol=1e-1), (
        float(jnp.max(jnp.abs(out - ref_f32))))
    print("KERNEL_OK")
</pallas_src>

<mosaic_0001>
module attributes {stable_mosaic.version = 11 : i64} {
  func.func @temporal_kernel(%arg0: memref<48x128xf32, #tpu.memory_space<vmem>>, %arg1: memref<128x512xbf16, #tpu.memory_space<vmem>>, %arg2: memref<128x512xbf16, #tpu.memory_space<vmem>>, %arg3: memref<1x512xf32, #tpu.memory_space<vmem>>, %arg4: memref<256x512xbf16, #tpu.memory_space<any>>, %arg5: memref<1x512xf32, #tpu.memory_space<vmem>>, %arg6: memref<128x128xbf16, #tpu.memory_space<any>>, %arg7: memref<1x128xf32, #tpu.memory_space<vmem>>, %arg8: memref<128x64xbf16, #tpu.memory_space<any>>, %arg9: memref<1x64xf32, #tpu.memory_space<vmem>>, %arg10: memref<8x64xf32, #tpu.memory_space<vmem>>, %arg11: memref<48x512xf32, #tpu.memory_space<vmem>>, %arg12: memref<8x256xbf16, #tpu.memory_space<vmem>>, %arg13: memref<256x512xbf16, #tpu.memory_space<vmem>>, %arg14: memref<128x128xbf16, #tpu.memory_space<vmem>>, %arg15: memref<128x64xbf16, #tpu.memory_space<vmem>>, %arg16: memref<3x!tpu.dma_semaphore, #tpu.memory_space<semaphore_mem>>) attributes {dimension_semantics = [], scalar_prefetch = 0 : i64, scratch_operands = 6 : i64, tpu.core_type = #tpu.core_type<tc>} {
    %c0_i32 = arith.constant 0 : i32
    %0 = tpu.memref_slice %arg16[%c0_i32] : memref<3x!tpu.dma_semaphore, #tpu.memory_space<semaphore_mem>> -> memref<1x!tpu.dma_semaphore, #tpu.memory_space<semaphore_mem>>
    %1 = tpu.memref_squeeze %0 : memref<1x!tpu.dma_semaphore, #tpu.memory_space<semaphore_mem>> -> memref<!tpu.dma_semaphore, #tpu.memory_space<semaphore_mem>>
    tpu.enqueue_dma source(%arg4 : memref<256x512xbf16, #tpu.memory_space<any>>) target(%arg13 : memref<256x512xbf16, #tpu.memory_space<vmem>>) target_semaphore(%1 : memref<!tpu.dma_semaphore, #tpu.memory_space<semaphore_mem>>)
    %c1_i32 = arith.constant 1 : i32
    %2 = tpu.memref_slice %arg16[%c1_i32] : memref<3x!tpu.dma_semaphore, #tpu.memory_space<semaphore_mem>> -> memref<1x!tpu.dma_semaphore, #tpu.memory_space<semaphore_mem>>
    %3 = tpu.memref_squeeze %2 : memref<1x!tpu.dma_semaphore, #tpu.memory_space<semaphore_mem>> -> memref<!tpu.dma_semaphore, #tpu.memory_space<semaphore_mem>>
    tpu.enqueue_dma source(%arg6 : memref<128x128xbf16, #tpu.memory_space<any>>) target(%arg14 : memref<128x128xbf16, #tpu.memory_space<vmem>>) target_semaphore(%3 : memref<!tpu.dma_semaphore, #tpu.memory_space<semaphore_mem>>)
    %c2_i32 = arith.constant 2 : i32
    %4 = tpu.memref_slice %arg16[%c2_i32] : memref<3x!tpu.dma_semaphore, #tpu.memory_space<semaphore_mem>> -> memref<1x!tpu.dma_semaphore, #tpu.memory_space<semaphore_mem>>
    %5 = tpu.memref_squeeze %4 : memref<1x!tpu.dma_semaphore, #tpu.memory_space<semaphore_mem>> -> memref<!tpu.dma_semaphore, #tpu.memory_space<semaphore_mem>>
    tpu.enqueue_dma source(%arg8 : memref<128x64xbf16, #tpu.memory_space<any>>) target(%arg15 : memref<128x64xbf16, #tpu.memory_space<vmem>>) target_semaphore(%5 : memref<!tpu.dma_semaphore, #tpu.memory_space<semaphore_mem>>)
    %c0 = arith.constant 0 : index
    %c0_0 = arith.constant 0 : index
    %6 = vector.load %arg0[%c0, %c0_0] : memref<48x128xf32, #tpu.memory_space<vmem>>, vector<48x128xf32>
    %7 = arith.truncf %6 : vector<48x128xf32> to vector<48x128xbf16>
    %c0_1 = arith.constant 0 : index
    %c0_2 = arith.constant 0 : index
    %8 = vector.load %arg1[%c0_1, %c0_2] : memref<128x512xbf16, #tpu.memory_space<vmem>>, vector<128x512xbf16>
    %cst = arith.constant dense<0.000000e+00> : vector<48x512xf32>
    %9 = tpu.matmul %7, %8, %cst {dimension_numbers = #tpu.dot_dimension_numbers<[1], [0], [0], [1], [0, 0, 1, 1], [], []>} : vector<48x128xbf16>, vector<128x512xbf16>, vector<48x512xf32> -> vector<48x512xf32>
    %c0_3 = arith.constant 0 : index
    %c0_4 = arith.constant 0 : index
    %10 = vector.load %arg3[%c0_3, %c0_4] : memref<1x512xf32, #tpu.memory_space<vmem>>, vector<1x512xf32>
    %11 = vector.broadcast %10 : vector<1x512xf32> to vector<48x512xf32>
    %12 = arith.addf %9, %11 : vector<48x512xf32>
    %c0_5 = arith.constant 0 : index
    %c0_6 = arith.constant 0 : index
    %13 = vector.load %arg11[%c0_5, %c0_6] : memref<48x512xf32, #tpu.memory_space<vmem>>, vector<48x512xf32>
    tpu.vector_store %arg11[%c0_5, %c0_6], %12 {strides = array<i32>} : memref<48x512xf32, #tpu.memory_space<vmem>>, vector<48x512xf32>,
    %cst_7 = arith.constant 0.000000e+00 : bf16
    %14 = vector.broadcast %cst_7 : bf16 to vector<8x256xbf16>
    %c0_8 = arith.constant 0 : index
    %c0_9 = arith.constant 0 : index
    %15 = vector.load %arg12[%c0_8, %c0_9] : memref<8x256xbf16, #tpu.memory_space<vmem>>, vector<8x256xbf16>
    tpu.vector_store %arg12[%c0_8, %c0_9], %14 {strides = array<i32>} : memref<8x256xbf16, #tpu.memory_space<vmem>>, vector<8x256xbf16>,
    %cst_10 = arith.constant 0.000000e+00 : bf16
    %16 = vector.broadcast %cst_10 : bf16 to vector<8x128xbf16>
    %cst_11 = arith.constant 0.000000e+00 : f32
    %17 = vector.broadcast %cst_11 : f32 to vector<8x128xf32>
    %cst_12 = arith.constant 0.000000e+00 : f32
    %18 = vector.broadcast %cst_12 : f32 to vector<8x128xf32>
    %c0_13 = arith.constant 0 : index
    %c0_14 = arith.constant 0 : index
    %19 = vector.load %arg11[%c0_13, %c0_14] : memref<48x512xf32, #tpu.memory_space<vmem>>, vector<8x512xf32>
    %c0_15 = arith.constant 0 : index
    %c0_16 = arith.constant 0 : index
    %20 = vector.load %arg2[%c0_15, %c0_16] : memref<128x512xbf16, #tpu.memory_space<vmem>>, vector<128x512xbf16>
    %cst_17 = arith.constant dense<0.000000e+00> : vector<8x512xf32>
    %21 = tpu.matmul %16, %20, %cst_17 {dimension_numbers = #tpu.dot_dimension_numbers<[1], [0], [0], [1], [0, 0, 1, 1], [], []>} : vector<8x128xbf16>, vector<128x512xbf16>, vector<8x512xf32> -> vector<8x512xf32>
    %22 = arith.addf %19, %21 : vector<8x512xf32>
    %23 = vector.extract_strided_slice %22 {offsets = [0, 0], sizes = [8, 256], strides = [1, 1]} : vector<8x512xf32> to vector<8x256xf32>
    %24 = arith.negf %23 : vector<8x256xf32>
    %25 = math.exp %24 : vector<8x256xf32>
    %cst_18 = arith.constant 1.000000e+00 : f32
    %26 = vector.broadcast %cst_18 : f32 to vector<8x256xf32>
    %27 = arith.addf %26, %25 : vector<8x256xf32>
    %28 = arith.divf %26, %27 : vector<8x256xf32>
    %29 = vector.extract_strided_slice %22 {offsets = [0, 256], sizes = [8, 128], strides = [1, 1]} : vector<8x512xf32> to vector<8x128xf32>
    %30 = math.tanh %29 : vector<8x128xf32>
    %31 = vector.extract_strided_slice %22 {offsets = [0, 384], sizes = [8, 128], strides = [1, 1]} : vector<8x512xf32> to vector<8x128xf32>
    %32 = arith.negf %31 : vector<8x128xf32>
    %33 = math.exp %32 : vector<8x128xf32>
    %cst_19 = arith.constant 1.000000e+00 : f32
    %34 = vector.broadcast %cst_19 : f32 to vector<8x128xf32>
    %35 = arith.addf %34, %33 : vector<8x128xf32>
    %36 = arith.divf %34, %35 : vector<8x128xf32>
    %37 = vector.extract_strided_slice %28 {offsets = [0, 128], sizes = [8, 128], strides = [1, 1]} : vector<8x256xf32> to vector<8x128xf32>
    %38 = arith.mulf %37, %17 : vector<8x128xf32>
    %39 = vector.extract_strided_slice %28 {offsets = [0, 0], sizes = [8, 128], strides = [1, 1]} : vector<8x256xf32> to vector<8x128xf32>
    %40 = arith.mulf %39, %30 : vector<8x128xf32>
    %41 = arith.addf %38, %40 : vector<8x128xf32>
    %42 = math.tanh %41 : vector<8x128xf32>
    %43 = arith.mulf %36, %42 : vector<8x128xf32>
    %44 = arith.truncf %43 : vector<8x128xf32> to vector<8x128xbf16>
    %c0_20 = arith.constant 0 : index
    %c0_21 = arith.constant 0 : index
    %45 = vector.load %arg12[%c0_20, %c0_21] : memref<8x256xbf16, #tpu.memory_space<vmem>>, vector<8x128xbf16>
    tpu.vector_store %arg12[%c0_20, %c0_21], %44 {strides = array<i32>} : memref<8x256xbf16, #tpu.memory_space<vmem>>, vector<8x128xbf16>,
    %c0_i32_22 = arith.constant 0 : i32
    %46 = tpu.memref_slice %arg16[%c0_i32_22] : memref<3x!tpu.dma_semaphore, #tpu.memory_space<semaphore_mem>> -> memref<1x!tpu.dma_semaphore, #tpu.memory_space<semaphore_mem>>
    %47 = tpu.memref_squeeze %46 : memref<1x!tpu.dma_semaphore, #tpu.memory_space<semaphore_mem>> -> memref<!tpu.dma_semaphore, #tpu.memory_space<semaphore_mem>>
    tpu.wait_dma2 semaphore(%47 : memref<!tpu.dma_semaphore, #tpu.memory_space<semaphore_mem>>) src(%arg4 : memref<256x512xbf16, #tpu.memory_space<any>>) dst(%arg13 : memref<256x512xbf16, #tpu.memory_space<vmem>>)
    %c0_23 = arith.constant 0 : index
    %c0_24 = arith.constant 0 : index
    %48 = vector.load %arg12[%c0_23, %c0_24] : memref<8x256xbf16, #tpu.memory_space<vmem>>, vector<8x256xbf16>
    %c0_25 = arith.constant 0 : index
    %c0_26 = arith.constant 0 : index
    %49 = vector.load %arg13[%c0_25, %c0_26] : memref<256x512xbf16, #tpu.memory_space<vmem>>, vector<256x512xbf16>
    %cst_27 = arith.constant dense<0.000000e+00> : vector<8x512xf32>
    %50 = tpu.matmul %48, %49, %cst_27 {dimension_numbers = #tpu.dot_dimension_numbers<[1], [0], [0], [1], [0, 0, 1, 1], [], []>} : vector<8x256xbf16>, vector<256x512xbf16>, vector<8x512xf32> -> vector<8x512xf32>
    %c0_28 = arith.constant 0 : index
    %c0_29 = arith.constant 0 : index
    %51 = vector.load %arg5[%c0_28, %c0_29] : memref<1x512xf32, #tpu.memory_space<vmem>>, vector<1x512xf32>
    %52 = vector.broadcast %51 : vector<1x512xf32> to vector<8x512xf32>
    %53 = arith.addf %50, %52 : vector<8x512xf32>
    %54 = vector.extract_strided_slice %53 {offsets = [0, 0], sizes = [8, 256], strides = [1, 1]} : vector<8x512xf32> to vector<8x256xf32>
    %55 = arith.negf %54 : vector<8x256xf32>
    %56 = math.exp %55 : vector<8x256xf32>
    %cst_30 = arith.constant 1.000000e+00 : f32
    %57 = vector.broadcast %cst_30 : f32 to vector<8x256xf32>
    %58 = arith.addf %57, %56 : vector<8x256xf32>
    %59 = arith.divf %57, %58 : vector<8x256xf32>
    %60 = vector.extract_strided_slice %53 {offsets = [0, 256], sizes = [8, 128], strides = [1, 1]} : vector<8x512xf32> to vector<8x128xf32>
    %61 = math.tanh %60 : vector<8x128xf32>
    %62 = vector.extract_strided_slice %53 {offsets = [0, 384], sizes = [8, 128], strides = [1, 1]} : vector<8x512xf32> to vector<8x128xf32>
    %63 = arith.negf %62 : vector<8x128xf32>
    %64 = math.exp %63 : vector<8x128xf32>
    %cst_31 = arith.constant 1.000000e+00 : f32
    %65 = vector.broadcast %cst_31 : f32 to vector<8x128xf32>
    %66 = arith.addf %65, %64 : vector<8x128xf32>
    %67 = arith.divf %65, %66 : vector<8x128xf32>
    %68 = vector.extract_strided_slice %59 {offsets = [0, 128], sizes = [8, 128], strides = [1, 1]} : vector<8x256xf32> to vector<8x128xf32>
    %69 = arith.mulf %68, %18 : vector<8x128xf32>
    %70 = vector.extract_strided_slice %59 {offsets = [0, 0], sizes = [8, 128], strides = [1, 1]} : vector<8x256xf32> to vector<8x128xf32>
    %71 = arith.mulf %70, %61 : vector<8x128xf32>
    %72 = arith.addf %69, %71 : vector<8x128xf32>
    %73 = math.tanh %72 : vector<8x128xf32>
    %74 = arith.mulf %67, %73 : vector<8x128xf32>
    %75 = arith.truncf %74 : vector<8x128xf32> to vector<8x128xbf16>
    %c0_32 = arith.constant 0 : index
    %c128 = arith.constant 128 : index
    %76 = vector.load %arg12[%c0_32, %c128] : memref<8x256xbf16, #tpu.memory_space<vmem>>, vector<8x128xbf16>
    tpu.vector_store %arg12[%c0_32, %c128], %75 {strides = array<i32>} : memref<8x256xbf16, #tpu.memory_space<vmem>>, vector<8x128xbf16>,
    %c8 = arith.constant 8 : index
    %c0_33 = arith.constant 0 : index
    %77 = vector.load %arg11[%c8, %c0_33] : memref<48x512xf32, #tpu.memory_space<vmem>>, vector<8x512xf32>
    %c0_34 = arith.constant 0 : index
    %c0_35 = arith.constant 0 : index
    %78 = vector.load %arg2[%c0_34, %c0_35] : memref<128x512xbf16, #tpu.memory_space<vmem>>, vector<128x512xbf16>
    %cst_36 = arith.constant dense<0.000000e+00> : vector<8x512xf32>
    %79 = tpu.matmul %44, %78, %cst_36 {dimension_numbers = #tpu.dot_dimension_numbers<[1], [0], [0], [1], [0, 0, 1, 1], [], []>} : vector<8x128xbf16>, vector<128x512xbf16>, vector<8x512xf32> -> vector<8x512xf32>
    %80 = arith.addf %77, %79 : vector<8x512xf32>
    %81 = vector.extract_strided_slice %80 {offsets = [0, 0], sizes = [8, 256], strides = [1, 1]} : vector<8x512xf32> to vector<8x256xf32>
    %82 = arith.negf %81 : vector<8x256xf32>
    %83 = math.exp %82 : vector<8x256xf32>
    %cst_37 = arith.constant 1.000000e+00 : f32
    %84 = vector.broadcast %cst_37 : f32 to vector<8x256xf32>
    %85 = arith.addf %84, %83 : vector<8x256xf32>
    %86 = arith.divf %84, %85 : vector<8x256xf32>
    %87 = vector.extract_strided_slice %80 {offsets = [0, 256], sizes = [8, 128], strides = [1, 1]} : vector<8x512xf32> to vector<8x128xf32>
    %88 = math.tanh %87 : vector<8x128xf32>
    %89 = vector.extract_strided_slice %80 {offsets = [0, 384], sizes = [8, 128], strides = [1, 1]} : vector<8x512xf32> to vector<8x128xf32>
    %90 = arith.negf %89 : vector<8x128xf32>
    %91 = math.exp %90 : vector<8x128xf32>
    %cst_38 = arith.constant 1.000000e+00 : f32
    %92 = vector.broadcast %cst_38 : f32 to vector<8x128xf32>
    %93 = arith.addf %92, %91 : vector<8x128xf32>
    %94 = arith.divf %92, %93 : vector<8x128xf32>
    %95 = vector.extract_strided_slice %86 {offsets = [0, 128], sizes = [8, 128], strides = [1, 1]} : vector<8x256xf32> to vector<8x128xf32>
    %96 = arith.mulf %95, %41 : vector<8x128xf32>
    %97 = vector.extract_strided_slice %86 {offsets = [0, 0], sizes = [8, 128], strides = [1, 1]} : vector<8x256xf32> to vector<8x128xf32>
    %98 = arith.mulf %97, %88 : vector<8x128xf32>
    %99 = arith.addf %96, %98 : vector<8x128xf32>
    %100 = math.tanh %99 : vector<8x128xf32>
    %101 = arith.mulf %94, %100 : vector<8x128xf32>
    %102 = arith.truncf %101 : vector<8x128xf32> to vector<8x128xbf16>
    %c0_39 = arith.constant 0 : index
    %c0_40 = arith.constant 0 : index
    %103 = vector.load %arg12[%c0_39, %c0_40] : memref<8x256xbf16, #tpu.memory_space<vmem>>, vector<8x128xbf16>
    tpu.vector_store %arg12[%c0_39, %c0_40], %102 {strides = array<i32>} : memref<8x256xbf16, #tpu.memory_space<vmem>>, vector<8x128xbf16>,
    %c0_41 = arith.constant 0 : index
    %c0_42 = arith.constant 0 : index
    %104 = vector.load %arg12[%c0_41, %c0_42] : memref<8x256xbf16, #tpu.memory_space<vmem>>, vector<8x256xbf16>
    %c0_43 = arith.constant 0 : index
    %c0_44 = arith.constant 0 : index
    %105 = vector.load %arg13[%c0_43, %c0_44] : memref<256x512xbf16, #tpu.memory_space<vmem>>, vector<256x512xbf16>
    %cst_45 = arith.constant dense<0.000000e+00> : vector<8x512xf32>
    %106 = tpu.matmul %104, %105, %cst_45 {dimension_numbers = #tpu.dot_dimension_numbers<[1], [0], [0], [1], [0, 0, 1, 1], [], []>} : vector<8x256xbf16>, vector<256x512xbf16>, vector<8x512xf32> -> vector<8x512xf32>
    %c0_46 = arith.constant 0 : index
    %c0_47 = arith.constant 0 : index
    %107 = vector.load %arg5[%c0_46, %c0_47] : memref<1x512xf32, #tpu.memory_space<vmem>>, vector<1x512xf32>
    %108 = vector.broadcast %107 : vector<1x512xf32> to vector<8x512xf32>
    %109 = arith.addf %106, %108 : vector<8x512xf32>
    %110 = vector.extract_strided_slice %109 {offsets = [0, 0], sizes = [8, 256], strides = [1, 1]} : vector<8x512xf32> to vector<8x256xf32>
    %111 = arith.negf %110 : vector<8x256xf32>
    %112 = math.exp %111 : vector<8x256xf32>
    %cst_48 = arith.constant 1.000000e+00 : f32
    %113 = vector.broadcast %cst_48 : f32 to vector<8x256xf32>
    %114 = arith.addf %113, %112 : vector<8x256xf32>
    %115 = arith.divf %113, %114 : vector<8x256xf32>
    %116 = vector.extract_strided_slice %109 {offsets = [0, 256], sizes = [8, 128], strides = [1, 1]} : vector<8x512xf32> to vector<8x128xf32>
    %117 = math.tanh %116 : vector<8x128xf32>
    %118 = vector.extract_strided_slice %109 {offsets = [0, 384], sizes = [8, 128], strides = [1, 1]} : vector<8x512xf32> to vector<8x128xf32>
    %119 = arith.negf %118 : vector<8x128xf32>
    %120 = math.exp %119 : vector<8x128xf32>
    %cst_49 = arith.constant 1.000000e+00 : f32
    %121 = vector.broadcast %cst_49 : f32 to vector<8x128xf32>
    %122 = arith.addf %121, %120 : vector<8x128xf32>
    %123 = arith.divf %121, %122 : vector<8x128xf32>
    %124 = vector.extract_strided_slice %115 {offsets = [0, 128], sizes = [8, 128], strides = [1, 1]} : vector<8x256xf32> to vector<8x128xf32>
    %125 = arith.mulf %124, %72 : vector<8x128xf32>
    %126 = vector.extract_strided_slice %115 {offsets = [0, 0], sizes = [8, 128], strides = [1, 1]} : vector<8x256xf32> to vector<8x128xf32>
    %127 = arith.mulf %126, %117 : vector<8x128xf32>
    %128 = arith.addf %125, %127 : vector<8x128xf32>
    %129 = math.tanh %128 : vector<8x128xf32>
    %130 = arith.mulf %123, %129 : vector<8x128xf32>
    %131 = arith.truncf %130 : vector<8x128xf32> to vector<8x128xbf16>
    %c0_50 = arith.constant 0 : index
    %c128_51 = arith.constant 128 : index
    %132 = vector.load %arg12[%c0_50, %c128_51] : memref<8x256xbf16, #tpu.memory_space<vmem>>, vector<8x128xbf16>
    tpu.vector_store %arg12[%c0_50, %c128_51], %131 {strides = array<i32>} : memref<8x256xbf16, #tpu.memory_space<vmem>>, vector<8x128xbf16>,
    %c16 = arith.constant 16 : index
    %c0_52 = arith.constant 0 : index
    %133 = vector.load %arg11[%c16, %c0_52] : memref<48x512xf32, #tpu.memory_space<vmem>>, vector<8x512xf32>
    %c0_53 = arith.constant 0 : index
    %c0_54 = arith.constant 0 : index
    %134 = vector.load %arg2[%c0_53, %c0_54] : memref<128x512xbf16, #tpu.memory_space<vmem>>, vector<128x512xbf16>
    %cst_55 = arith.constant dense<0.000000e+00> : vector<8x512xf32>
    %135 = tpu.matmul %102, %134, %cst_55 {dimension_numbers = #tpu.dot_dimension_numbers<[1], [0], [0], [1], [0, 0, 1, 1], [], []>} : vector<8x128xbf16>, vector<128x512xbf16>, vector<8x512xf32> -> vector<8x512xf32>
    %136 = arith.addf %133, %135 : vector<8x512xf32>
    %137 = vector.extract_strided_slice %136 {offsets = [0, 0], sizes = [8, 256], strides = [1, 1]} : vector<8x512xf32> to vector<8x256xf32>
    %138 = arith.negf %137 : vector<8x256xf32>
    %139 = math.exp %138 : vector<8x256xf32>
    %cst_56 = arith.constant 1.000000e+00 : f32
    %140 = vector.broadcast %cst_56 : f32 to vector<8x256xf32>
    %141 = arith.addf %140, %139 : vector<8x256xf32>
    %142 = arith.divf %140, %141 : vector<8x256xf32>
    %143 = vector.extract_strided_slice %136 {offsets = [0, 256], sizes = [8, 128], strides = [1, 1]} : vector<8x512xf32> to vector<8x128xf32>
    %144 = math.tanh %143 : vector<8x128xf32>
    %145 = vector.extract_strided_slice %136 {offsets = [0, 384], sizes = [8, 128], strides = [1, 1]} : vector<8x512xf32> to vector<8x128xf32>
    %146 = arith.negf %145 : vector<8x128xf32>
    %147 = math.exp %146 : vector<8x128xf32>
    %cst_57 = arith.constant 1.000000e+00 : f32
    %148 = vector.broadcast %cst_57 : f32 to vector<8x128xf32>
    %149 = arith.addf %148, %147 : vector<8x128xf32>
    %150 = arith.divf %148, %149 : vector<8x128xf32>
    %151 = vector.extract_strided_slice %142 {offsets = [0, 128], sizes = [8, 128], strides = [1, 1]} : vector<8x256xf32> to vector<8x128xf32>
    %152 = arith.mulf %151, %99 : vector<8x128xf32>
    %153 = vector.extract_strided_slice %142 {offsets = [0, 0], sizes = [8, 128], strides = [1, 1]} : vector<8x256xf32> to vector<8x128xf32>
    %154 = arith.mulf %153, %144 : vector<8x128xf32>
    %155 = arith.addf %152, %154 : vector<8x128xf32>
    %156 = math.tanh %155 : vector<8x128xf32>
    %157 = arith.mulf %150, %156 : vector<8x128xf32>
    %158 = arith.truncf %157 : vector<8x128xf32> to vector<8x128xbf16>
    %c0_58 = arith.constant 0 : index
    %c0_59 = arith.constant 0 : index
    %159 = vector.load %arg12[%c0_58, %c0_59] : memref<8x256xbf16, #tpu.memory_space<vmem>>, vector<8x128xbf16>
    tpu.vector_store %arg12[%c0_58, %c0_59], %158 {strides = array<i32>} : memref<8x256xbf16, #tpu.memory_space<vmem>>, vector<8x128xbf16>,
    %c0_60 = arith.constant 0 : index
    %c0_61 = arith.constant 0 : index
    %160 = vector.load %arg12[%c0_60, %c0_61] : memref<8x256xbf16, #tpu.memory_space<vmem>>, vector<8x256xbf16>
    %c0_62 = arith.constant 0 : index
    %c0_63 = arith.constant 0 : index
    %161 = vector.load %arg13[%c0_62, %c0_63] : memref<256x512xbf16, #tpu.memory_space<vmem>>, vector<256x512xbf16>
    %cst_64 = arith.constant dense<0.000000e+00> : vector<8x512xf32>
    %162 = tpu.matmul %160, %161, %cst_64 {dimension_numbers = #tpu.dot_dimension_numbers<[1], [0], [0], [1], [0, 0, 1, 1], [], []>} : vector<8x256xbf16>, vector<256x512xbf16>, vector<8x512xf32> -> vector<8x512xf32>
    %c0_65 = arith.constant 0 : index
    %c0_66 = arith.constant 0 : index
    %163 = vector.load %arg5[%c0_65, %c0_66] : memref<1x512xf32, #tpu.memory_space<vmem>>, vector<1x512xf32>
    %164 = vector.broadcast %163 : vector<1x512xf32> to vector<8x512xf32>
    %165 = arith.addf %162, %164 : vector<8x512xf32>
    %166 = vector.extract_strided_slice %165 {offsets = [0, 0], sizes = [8, 256], strides = [1, 1]} : vector<8x512xf32> to vector<8x256xf32>
    %167 = arith.negf %166 : vector<8x256xf32>
    %168 = math.exp %167 : vector<8x256xf32>
    %cst_67 = arith.constant 1.000000e+00 : f32
    %169 = vector.broadcast %cst_67 : f32 to vector<8x256xf32>
    %170 = arith.addf %169, %168 : vector<8x256xf32>
    %171 = arith.divf %169, %170 : vector<8x256xf32>
    %172 = vector.extract_strided_slice %165 {offsets = [0, 256], sizes = [8, 128], strides = [1, 1]} : vector<8x512xf32> to vector<8x128xf32>
    %173 = math.tanh %172 : vector<8x128xf32>
    %174 = vector.extract_strided_slice %165 {offsets = [0, 384], sizes = [8, 128], strides = [1, 1]} : vector<8x512xf32> to vector<8x128xf32>
    %175 = arith.negf %174 : vector<8x128xf32>
    %176 = math.exp %175 : vector<8x128xf32>
    %cst_68 = arith.constant 1.000000e+00 : f32
    %177 = vector.broadcast %cst_68 : f32 to vector<8x128xf32>
    %178 = arith.addf %177, %176 : vector<8x128xf32>
    %179 = arith.divf %177, %178 : vector<8x128xf32>
    %180 = vector.extract_strided_slice %171 {offsets = [0, 128], sizes = [8, 128], strides = [1, 1]} : vector<8x256xf32> to vector<8x128xf32>
    %181 = arith.mulf %180, %128 : vector<8x128xf32>
    %182 = vector.extract_strided_slice %171 {offsets = [0, 0], sizes = [8, 128], strides = [1, 1]} : vector<8x256xf32> to vector<8x128xf32>
    %183 = arith.mulf %182, %173 : vector<8x128xf32>
    %184 = arith.addf %181, %183 : vector<8x128xf32>
    %185 = math.tanh %184 : vector<8x128xf32>
    %186 = arith.mulf %179, %185 : vector<8x128xf32>
    %187 = arith.truncf %186 : vector<8x128xf32> to vector<8x128xbf16>
    %c0_69 = arith.constant 0 : index
    %c128_70 = arith.constant 128 : index
    %188 = vector.load %arg12[%c0_69, %c128_70] : memref<8x256xbf16, #tpu.memory_space<vmem>>, vector<8x128xbf16>
    tpu.vector_store %arg12[%c0_69, %c128_70], %187 {strides = array<i32>} : memref<8x256xbf16, #tpu.memory_space<vmem>>, vector<8x128xbf16>,
    %c24 = arith.constant 24 : index
    %c0_71 = arith.constant 0 : index
    %189 = vector.load %arg11[%c24, %c0_71] : memref<48x512xf32, #tpu.memory_space<vmem>>, vector<8x512xf32>
    %c0_72 = arith.constant 0 : index
    %c0_73 = arith.constant 0 : index
    %190 = vector.load %arg2[%c0_72, %c0_73] : memref<128x512xbf16, #tpu.memory_space<vmem>>, vector<128x512xbf16>
    %cst_74 = arith.constant dense<0.000000e+00> : vector<8x512xf32>
    %191 = tpu.matmul %158, %190, %cst_74 {dimension_numbers = #tpu.dot_dimension_numbers<[1], [0], [0], [1], [0, 0, 1, 1], [], []>} : vector<8x128xbf16>, vector<128x512xbf16>, vector<8x512xf32> -> vector<8x512xf32>
    %192 = arith.addf %189, %191 : vector<8x512xf32>
    %193 = vector.extract_strided_slice %192 {offsets = [0, 0], sizes = [8, 256], strides = [1, 1]} : vector<8x512xf32> to vector<8x256xf32>
    %194 = arith.negf %193 : vector<8x256xf32>
    %195 = math.exp %194 : vector<8x256xf32>
    %cst_75 = arith.constant 1.000000e+00 : f32
    %196 = vector.broadcast %cst_75 : f32 to vector<8x256xf32>
    %197 = arith.addf %196, %195 : vector<8x256xf32>
    %198 = arith.divf %196, %197 : vector<8x256xf32>
    %199 = vector.extract_strided_slice %192 {offsets = [0, 256], sizes = [8, 128], strides = [1, 1]} : vector<8x512xf32> to vector<8x128xf32>
    %200 = math.tanh %199 : vector<8x128xf32>
    %201 = vector.extract_strided_slice %192 {offsets = [0, 384], sizes = [8, 128], strides = [1, 1]} : vector<8x512xf32> to vector<8x128xf32>
    %202 = arith.negf %201 : vector<8x128xf32>
    %203 = math.exp %202 : vector<8x128xf32>
    %cst_76 = arith.constant 1.000000e+00 : f32
    %204 = vector.broadcast %cst_76 : f32 to vector<8x128xf32>
    %205 = arith.addf %204, %203 : vector<8x128xf32>
    %206 = arith.divf %204, %205 : vector<8x128xf32>
    %207 = vector.extract_strided_slice %198 {offsets = [0, 128], sizes = [8, 128], strides = [1, 1]} : vector<8x256xf32> to vector<8x128xf32>
    %208 = arith.mulf %207, %155 : vector<8x128xf32>
    %209 = vector.extract_strided_slice %198 {offsets = [0, 0], sizes = [8, 128], strides = [1, 1]} : vector<8x256xf32> to vector<8x128xf32>
    %210 = arith.mulf %209, %200 : vector<8x128xf32>
    %211 = arith.addf %208, %210 : vector<8x128xf32>
    %212 = math.tanh %211 : vector<8x128xf32>
    %213 = arith.mulf %206, %212 : vector<8x128xf32>
    %214 = arith.truncf %213 : vector<8x128xf32> to vector<8x128xbf16>
    %c0_77 = arith.constant 0 : index
    %c0_78 = arith.constant 0 : index
    %215 = vector.load %arg12[%c0_77, %c0_78] : memref<8x256xbf16, #tpu.memory_space<vmem>>, vector<8x128xbf16>
    tpu.vector_store %arg12[%c0_77, %c0_78], %214 {strides = array<i32>} : memref<8x256xbf16, #tpu.memory_space<vmem>>, vector<8x128xbf16>,
    %c0_79 = arith.constant 0 : index
    %c0_80 = arith.constant 0 : index
    %216 = vector.load %arg12[%c0_79, %c0_80] : memref<8x256xbf16, #tpu.memory_space<vmem>>, vector<8x256xbf16>
    %c0_81 = arith.constant 0 : index
    %c0_82 = arith.constant 0 : index
    %217 = vector.load %arg13[%c0_81, %c0_82] : memref<256x512xbf16, #tpu.memory_space<vmem>>, vector<256x512xbf16>
    %cst_83 = arith.constant dense<0.000000e+00> : vector<8x512xf32>
    %218 = tpu.matmul %216, %217, %cst_83 {dimension_numbers = #tpu.dot_dimension_numbers<[1], [0], [0], [1], [0, 0, 1, 1], [], []>} : vector<8x256xbf16>, vector<256x512xbf16>, vector<8x512xf32> -> vector<8x512xf32>
    %c0_84 = arith.constant 0 : index
    %c0_85 = arith.constant 0 : index
    %219 = vector.load %arg5[%c0_84, %c0_85] : memref<1x512xf32, #tpu.memory_space<vmem>>, vector<1x512xf32>
    %220 = vector.broadcast %219 : vector<1x512xf32> to vector<8x512xf32>
    %221 = arith.addf %218, %220 : vector<8x512xf32>
    %222 = vector.extract_strided_slice %221 {offsets = [0, 0], sizes = [8, 256], strides = [1, 1]} : vector<8x512xf32> to vector<8x256xf32>
    %223 = arith.negf %222 : vector<8x256xf32>
    %224 = math.exp %223 : vector<8x256xf32>
    %cst_86 = arith.constant 1.000000e+00 : f32
    %225 = vector.broadcast %cst_86 : f32 to vector<8x256xf32>
    %226 = arith.addf %225, %224 : vector<8x256xf32>
    %227 = arith.divf %225, %226 : vector<8x256xf32>
    %228 = vector.extract_strided_slice %221 {offsets = [0, 256], sizes = [8, 128], strides = [1, 1]} : vector<8x512xf32> to vector<8x128xf32>
    %229 = math.tanh %228 : vector<8x128xf32>
    %230 = vector.extract_strided_slice %221 {offsets = [0, 384], sizes = [8, 128], strides = [1, 1]} : vector<8x512xf32> to vector<8x128xf32>
    %231 = arith.negf %230 : vector<8x128xf32>
    %232 = math.exp %231 : vector<8x128xf32>
    %cst_87 = arith.constant 1.000000e+00 : f32
    %233 = vector.broadcast %cst_87 : f32 to vector<8x128xf32>
    %234 = arith.addf %233, %232 : vector<8x128xf32>
    %235 = arith.divf %233, %234 : vector<8x128xf32>
    %236 = vector.extract_strided_slice %227 {offsets = [0, 128], sizes = [8, 128], strides = [1, 1]} : vector<8x256xf32> to vector<8x128xf32>
    %237 = arith.mulf %236, %184 : vector<8x128xf32>
    %238 = vector.extract_strided_slice %227 {offsets = [0, 0], sizes = [8, 128], strides = [1, 1]} : vector<8x256xf32> to vector<8x128xf32>
    %239 = arith.mulf %238, %229 : vector<8x128xf32>
    %240 = arith.addf %237, %239 : vector<8x128xf32>
    %241 = math.tanh %240 : vector<8x128xf32>
    %242 = arith.mulf %235, %241 : vector<8x128xf32>
    %243 = arith.truncf %242 : vector<8x128xf32> to vector<8x128xbf16>
    %c0_88 = arith.constant 0 : index
    %c128_89 = arith.constant 128 : index
    %244 = vector.load %arg12[%c0_88, %c128_89] : memref<8x256xbf16, #tpu.memory_space<vmem>>, vector<8x128xbf16>
    tpu.vector_store %arg12[%c0_88, %c128_89], %243 {strides = array<i32>} : memref<8x256xbf16, #tpu.memory_space<vmem>>, vector<8x128xbf16>,
    %c32 = arith.constant 32 : index
    %c0_90 = arith.constant 0 : index
    %245 = vector.load %arg11[%c32, %c0_90] : memref<48x512xf32, #tpu.memory_space<vmem>>, vector<8x512xf32>
    %c0_91 = arith.constant 0 : index
    %c0_92 = arith.constant 0 : index
    %246 = vector.load %arg2[%c0_91, %c0_92] : memref<128x512xbf16, #tpu.memory_space<vmem>>, vector<128x512xbf16>
    %cst_93 = arith.constant dense<0.000000e+00> : vector<8x512xf32>
    %247 = tpu.matmul %214, %246, %cst_93 {dimension_numbers = #tpu.dot_dimension_numbers<[1], [0], [0], [1], [0, 0, 1, 1], [], []>} : vector<8x128xbf16>, vector<128x512xbf16>, vector<8x512xf32> -> vector<8x512xf32>
    %248 = arith.addf %245, %247 : vector<8x512xf32>
    %249 = vector.extract_strided_slice %248 {offsets = [0, 0], sizes = [8, 256], strides = [1, 1]} : vector<8x512xf32> to vector<8x256xf32>
    %250 = arith.negf %249 : vector<8x256xf32>
    %251 = math.exp %250 : vector<8x256xf32>
    %cst_94 = arith.constant 1.000000e+00 : f32
    %252 = vector.broadcast %cst_94 : f32 to vector<8x256xf32>
    %253 = arith.addf %252, %251 : vector<8x256xf32>
    %254 = arith.divf %252, %253 : vector<8x256xf32>
    %255 = vector.extract_strided_slice %248 {offsets = [0, 256], sizes = [8, 128], strides = [1, 1]} : vector<8x512xf32> to vector<8x128xf32>
    %256 = math.tanh %255 : vector<8x128xf32>
    %257 = vector.extract_strided_slice %248 {offsets = [0, 384], sizes = [8, 128], strides = [1, 1]} : vector<8x512xf32> to vector<8x128xf32>
    %258 = arith.negf %257 : vector<8x128xf32>
    %259 = math.exp %258 : vector<8x128xf32>
    %cst_95 = arith.constant 1.000000e+00 : f32
    %260 = vector.broadcast %cst_95 : f32 to vector<8x128xf32>
    %261 = arith.addf %260, %259 : vector<8x128xf32>
    %262 = arith.divf %260, %261 : vector<8x128xf32>
    %263 = vector.extract_strided_slice %254 {offsets = [0, 128], sizes = [8, 128], strides = [1, 1]} : vector<8x256xf32> to vector<8x128xf32>
    %264 = arith.mulf %263, %211 : vector<8x128xf32>
    %265 = vector.extract_strided_slice %254 {offsets = [0, 0], sizes = [8, 128], strides = [1, 1]} : vector<8x256xf32> to vector<8x128xf32>
    %266 = arith.mulf %265, %256 : vector<8x128xf32>
    %267 = arith.addf %264, %266 : vector<8x128xf32>
    %268 = math.tanh %267 : vector<8x128xf32>
    %269 = arith.mulf %262, %268 : vector<8x128xf32>
    %270 = arith.truncf %269 : vector<8x128xf32> to vector<8x128xbf16>
    %c0_96 = arith.constant 0 : index
    %c0_97 = arith.constant 0 : index
    %271 = vector.load %arg12[%c0_96, %c0_97] : memref<8x256xbf16, #tpu.memory_space<vmem>>, vector<8x128xbf16>
    tpu.vector_store %arg12[%c0_96, %c0_97], %270 {strides = array<i32>} : memref<8x256xbf16, #tpu.memory_space<vmem>>, vector<8x128xbf16>,
    %c0_98 = arith.constant 0 : index
    %c0_99 = arith.constant 0 : index
    %272 = vector.load %arg12[%c0_98, %c0_99] : memref<8x256xbf16, #tpu.memory_space<vmem>>, vector<8x256xbf16>
    %c0_100 = arith.constant 0 : index
    %c0_101 = arith.constant 0 : index
    %273 = vector.load %arg13[%c0_100, %c0_101] : memref<256x512xbf16, #tpu.memory_space<vmem>>, vector<256x512xbf16>
    %cst_102 = arith.constant dense<0.000000e+00> : vector<8x512xf32>
    %274 = tpu.matmul %272, %273, %cst_102 {dimension_numbers = #tpu.dot_dimension_numbers<[1], [0], [0], [1], [0, 0, 1, 1], [], []>} : vector<8x256xbf16>, vector<256x512xbf16>, vector<8x512xf32> -> vector<8x512xf32>
    %c0_103 = arith.constant 0 : index
    %c0_104 = arith.constant 0 : index
    %275 = vector.load %arg5[%c0_103, %c0_104] : memref<1x512xf32, #tpu.memory_space<vmem>>, vector<1x512xf32>
    %276 = vector.broadcast %275 : vector<1x512xf32> to vector<8x512xf32>
    %277 = arith.addf %274, %276 : vector<8x512xf32>
    %278 = vector.extract_strided_slice %277 {offsets = [0, 0], sizes = [8, 256], strides = [1, 1]} : vector<8x512xf32> to vector<8x256xf32>
    %279 = arith.negf %278 : vector<8x256xf32>
    %280 = math.exp %279 : vector<8x256xf32>
    %cst_105 = arith.constant 1.000000e+00 : f32
    %281 = vector.broadcast %cst_105 : f32 to vector<8x256xf32>
    %282 = arith.addf %281, %280 : vector<8x256xf32>
    %283 = arith.divf %281, %282 : vector<8x256xf32>
    %284 = vector.extract_strided_slice %277 {offsets = [0, 256], sizes = [8, 128], strides = [1, 1]} : vector<8x512xf32> to vector<8x128xf32>
    %285 = math.tanh %284 : vector<8x128xf32>
    %286 = vector.extract_strided_slice %277 {offsets = [0, 384], sizes = [8, 128], strides = [1, 1]} : vector<8x512xf32> to vector<8x128xf32>
    %287 = arith.negf %286 : vector<8x128xf32>
    %288 = math.exp %287 : vector<8x128xf32>
    %cst_106 = arith.constant 1.000000e+00 : f32
    %289 = vector.broadcast %cst_106 : f32 to vector<8x128xf32>
    %290 = arith.addf %289, %288 : vector<8x128xf32>
    %291 = arith.divf %289, %290 : vector<8x128xf32>
    %292 = vector.extract_strided_slice %283 {offsets = [0, 128], sizes = [8, 128], strides = [1, 1]} : vector<8x256xf32> to vector<8x128xf32>
    %293 = arith.mulf %292, %240 : vector<8x128xf32>
    %294 = vector.extract_strided_slice %283 {offsets = [0, 0], sizes = [8, 128], strides = [1, 1]} : vector<8x256xf32> to vector<8x128xf32>
    %295 = arith.mulf %294, %285 : vector<8x128xf32>
    %296 = arith.addf %293, %295 : vector<8x128xf32>
    %297 = math.tanh %296 : vector<8x128xf32>
    %298 = arith.mulf %291, %297 : vector<8x128xf32>
    %299 = arith.truncf %298 : vector<8x128xf32> to vector<8x128xbf16>
    %c0_107 = arith.constant 0 : index
    %c128_108 = arith.constant 128 : index
    %300 = vector.load %arg12[%c0_107, %c128_108] : memref<8x256xbf16, #tpu.memory_space<vmem>>, vector<8x128xbf16>
    tpu.vector_store %arg12[%c0_107, %c128_108], %299 {strides = array<i32>} : memref<8x256xbf16, #tpu.memory_space<vmem>>, vector<8x128xbf16>,
    %c40 = arith.constant 40 : index
    %c0_109 = arith.constant 0 : index
    %301 = vector.load %arg11[%c40, %c0_109] : memref<48x512xf32, #tpu.memory_space<vmem>>, vector<8x512xf32>
    %c0_110 = arith.constant 0 : index
    %c0_111 = arith.constant 0 : index
    %302 = vector.load %arg2[%c0_110, %c0_111] : memref<128x512xbf16, #tpu.memory_space<vmem>>, vector<128x512xbf16>
    %cst_112 = arith.constant dense<0.000000e+00> : vector<8x512xf32>
    %303 = tpu.matmul %270, %302, %cst_112 {dimension_numbers = #tpu.dot_dimension_numbers<[1], [0], [0], [1], [0, 0, 1, 1], [], []>} : vector<8x128xbf16>, vector<128x512xbf16>, vector<8x512xf32> -> vector<8x512xf32>
    %304 = arith.addf %301, %303 : vector<8x512xf32>
    %305 = vector.extract_strided_slice %304 {offsets = [0, 0], sizes = [8, 256], strides = [1, 1]} : vector<8x512xf32> to vector<8x256xf32>
    %306 = arith.negf %305 : vector<8x256xf32>
    %307 = math.exp %306 : vector<8x256xf32>
    %cst_113 = arith.constant 1.000000e+00 : f32
    %308 = vector.broadcast %cst_113 : f32 to vector<8x256xf32>
    %309 = arith.addf %308, %307 : vector<8x256xf32>
    %310 = arith.divf %308, %309 : vector<8x256xf32>
    %311 = vector.extract_strided_slice %304 {offsets = [0, 256], sizes = [8, 128], strides = [1, 1]} : vector<8x512xf32> to vector<8x128xf32>
    %312 = math.tanh %311 : vector<8x128xf32>
    %313 = vector.extract_strided_slice %304 {offsets = [0, 384], sizes = [8, 128], strides = [1, 1]} : vector<8x512xf32> to vector<8x128xf32>
    %314 = arith.negf %313 : vector<8x128xf32>
    %315 = math.exp %314 : vector<8x128xf32>
    %cst_114 = arith.constant 1.000000e+00 : f32
    %316 = vector.broadcast %cst_114 : f32 to vector<8x128xf32>
    %317 = arith.addf %316, %315 : vector<8x128xf32>
    %318 = arith.divf %316, %317 : vector<8x128xf32>
    %319 = vector.extract_strided_slice %310 {offsets = [0, 128], sizes = [8, 128], strides = [1, 1]} : vector<8x256xf32> to vector<8x128xf32>
    %320 = arith.mulf %319, %267 : vector<8x128xf32>
    %321 = vector.extract_strided_slice %310 {offsets = [0, 0], sizes = [8, 128], strides = [1, 1]} : vector<8x256xf32> to vector<8x128xf32>
    %322 = arith.mulf %321, %312 : vector<8x128xf32>
    %323 = arith.addf %320, %322 : vector<8x128xf32>
    %324 = math.tanh %323 : vector<8x128xf32>
    %325 = arith.mulf %318, %324 : vector<8x128xf32>
    %326 = arith.truncf %325 : vector<8x128xf32> to vector<8x128xbf16>
    %c0_115 = arith.constant 0 : index
    %c0_116 = arith.constant 0 : index
    %327 = vector.load %arg12[%c0_115, %c0_116] : memref<8x256xbf16, #tpu.memory_space<vmem>>, vector<8x128xbf16>
    tpu.vector_store %arg12[%c0_115, %c0_116], %326 {strides = array<i32>} : memref<8x256xbf16, #tpu.memory_space<vmem>>, vector<8x128xbf16>,
    %c0_117 = arith.constant 0 : index
    %c0_118 = arith.constant 0 : index
    %328 = vector.load %arg12[%c0_117, %c0_118] : memref<8x256xbf16, #tpu.memory_space<vmem>>, vector<8x256xbf16>
    %c0_119 = arith.constant 0 : index
    %c0_120 = arith.constant 0 : index
    %329 = vector.load %arg13[%c0_119, %c0_120] : memref<256x512xbf16, #tpu.memory_space<vmem>>, vector<256x512xbf16>
    %cst_121 = arith.constant dense<0.000000e+00> : vector<8x512xf32>
    %330 = tpu.matmul %328, %329, %cst_121 {dimension_numbers = #tpu.dot_dimension_numbers<[1], [0], [0], [1], [0, 0, 1, 1], [], []>} : vector<8x256xbf16>, vector<256x512xbf16>, vector<8x512xf32> -> vector<8x512xf32>
    %c0_122 = arith.constant 0 : index
    %c0_123 = arith.constant 0 : index
    %331 = vector.load %arg5[%c0_122, %c0_123] : memref<1x512xf32, #tpu.memory_space<vmem>>, vector<1x512xf32>
    %332 = vector.broadcast %331 : vector<1x512xf32> to vector<8x512xf32>
    %333 = arith.addf %330, %332 : vector<8x512xf32>
    %334 = vector.extract_strided_slice %333 {offsets = [0, 0], sizes = [8, 256], strides = [1, 1]} : vector<8x512xf32> to vector<8x256xf32>
    %335 = arith.negf %334 : vector<8x256xf32>
    %336 = math.exp %335 : vector<8x256xf32>
    %cst_124 = arith.constant 1.000000e+00 : f32
    %337 = vector.broadcast %cst_124 : f32 to vector<8x256xf32>
    %338 = arith.addf %337, %336 : vector<8x256xf32>
    %339 = arith.divf %337, %338 : vector<8x256xf32>
    %340 = vector.extract_strided_slice %333 {offsets = [0, 256], sizes = [8, 128], strides = [1, 1]} : vector<8x512xf32> to vector<8x128xf32>
    %341 = math.tanh %340 : vector<8x128xf32>
    %342 = vector.extract_strided_slice %333 {offsets = [0, 384], sizes = [8, 128], strides = [1, 1]} : vector<8x512xf32> to vector<8x128xf32>
    %343 = arith.negf %342 : vector<8x128xf32>
    %344 = math.exp %343 : vector<8x128xf32>
    %cst_125 = arith.constant 1.000000e+00 : f32
    %345 = vector.broadcast %cst_125 : f32 to vector<8x128xf32>
    %346 = arith.addf %345, %344 : vector<8x128xf32>
    %347 = arith.divf %345, %346 : vector<8x128xf32>
    %348 = vector.extract_strided_slice %339 {offsets = [0, 128], sizes = [8, 128], strides = [1, 1]} : vector<8x256xf32> to vector<8x128xf32>
    %349 = arith.mulf %348, %296 : vector<8x128xf32>
    %350 = vector.extract_strided_slice %339 {offsets = [0, 0], sizes = [8, 128], strides = [1, 1]} : vector<8x256xf32> to vector<8x128xf32>
    %351 = arith.mulf %350, %341 : vector<8x128xf32>
    %352 = arith.addf %349, %351 : vector<8x128xf32>
    %353 = math.tanh %352 : vector<8x128xf32>
    %354 = arith.mulf %347, %353 : vector<8x128xf32>
    %355 = arith.truncf %354 : vector<8x128xf32> to vector<8x128xbf16>
    %c0_126 = arith.constant 0 : index
    %c128_127 = arith.constant 128 : index
    %356 = vector.load %arg12[%c0_126, %c128_127] : memref<8x256xbf16, #tpu.memory_space<vmem>>, vector<8x128xbf16>
    tpu.vector_store %arg12[%c0_126, %c128_127], %355 {strides = array<i32>} : memref<8x256xbf16, #tpu.memory_space<vmem>>, vector<8x128xbf16>,
    %c1_i32_128 = arith.constant 1 : i32
    %357 = tpu.memref_slice %arg16[%c1_i32_128] : memref<3x!tpu.dma_semaphore, #tpu.memory_space<semaphore_mem>> -> memref<1x!tpu.dma_semaphore, #tpu.memory_space<semaphore_mem>>
    %358 = tpu.memref_squeeze %357 : memref<1x!tpu.dma_semaphore, #tpu.memory_space<semaphore_mem>> -> memref<!tpu.dma_semaphore, #tpu.memory_space<semaphore_mem>>
    tpu.wait_dma2 semaphore(%358 : memref<!tpu.dma_semaphore, #tpu.memory_space<semaphore_mem>>) src(%arg6 : memref<128x128xbf16, #tpu.memory_space<any>>) dst(%arg14 : memref<128x128xbf16, #tpu.memory_space<vmem>>)
    %c2_i32_129 = arith.constant 2 : i32
    %359 = tpu.memref_slice %arg16[%c2_i32_129] : memref<3x!tpu.dma_semaphore, #tpu.memory_space<semaphore_mem>> -> memref<1x!tpu.dma_semaphore, #tpu.memory_space<semaphore_mem>>
    %360 = tpu.memref_squeeze %359 : memref<1x!tpu.dma_semaphore, #tpu.memory_space<semaphore_mem>> -> memref<!tpu.dma_semaphore, #tpu.memory_space<semaphore_mem>>
    tpu.wait_dma2 semaphore(%360 : memref<!tpu.dma_semaphore, #tpu.memory_space<semaphore_mem>>) src(%arg8 : memref<128x64xbf16, #tpu.memory_space<any>>) dst(%arg15 : memref<128x64xbf16, #tpu.memory_space<vmem>>)
    %c0_130 = arith.constant 0 : index
    %c128_131 = arith.constant 128 : index
    %361 = vector.load %arg12[%c0_130, %c128_131] : memref<8x256xbf16, #tpu.memory_space<vmem>>, vector<8x128xbf16>
    %c0_132 = arith.constant 0 : index
    %c0_133 = arith.constant 0 : index
    %362 = vector.load %arg14[%c0_132, %c0_133] : memref<128x128xbf16, #tpu.memory_space<vmem>>, vector<128x128xbf16>
    %cst_134 = arith.constant dense<0.000000e+00> : vector<8x128xf32>
    %363 = tpu.matmul %361, %362, %cst_134 {dimension_numbers = #tpu.dot_dimension_numbers<[1], [0], [0], [1], [0, 0, 1, 1], [], []>} : vector<8x128xbf16>, vector<128x128xbf16>, vector<8x128xf32> -> vector<8x128xf32>
    %c0_135 = arith.constant 0 : index
    %c0_136 = arith.constant 0 : index
    %364 = vector.load %arg7[%c0_135, %c0_136] : memref<1x128xf32, #tpu.memory_space<vmem>>, vector<1x128xf32>
    %365 = vector.broadcast %364 : vector<1x128xf32> to vector<8x128xf32>
    %366 = arith.addf %363, %365 : vector<8x128xf32>
    %cst_137 = arith.constant 0.000000e+00 : f32
    %367 = vector.broadcast %cst_137 : f32 to vector<8x128xf32>
    %368 = arith.maximumf %366, %367 : vector<8x128xf32>
    %369 = arith.truncf %368 : vector<8x128xf32> to vector<8x128xbf16>
    %c0_138 = arith.constant 0 : index
    %c0_139 = arith.constant 0 : index
    %370 = vector.load %arg15[%c0_138, %c0_139] : memref<128x64xbf16, #tpu.memory_space<vmem>>, vector<128x64xbf16>
    %cst_140 = arith.constant dense<0.000000e+00> : vector<8x64xf32>
    %371 = tpu.matmul %369, %370, %cst_140 {dimension_numbers = #tpu.dot_dimension_numbers<[1], [0], [0], [1], [0, 0, 1, 1], [], []>} : vector<8x128xbf16>, vector<128x64xbf16>, vector<8x64xf32> -> vector<8x64xf32>
    %c0_141 = arith.constant 0 : index
    %c0_142 = arith.constant 0 : index
    %372 = vector.load %arg9[%c0_141, %c0_142] : memref<1x64xf32, #tpu.memory_space<vmem>>, vector<1x64xf32>
    %373 = vector.broadcast %372 : vector<1x64xf32> to vector<8x64xf32>
    %374 = arith.addf %371, %373 : vector<8x64xf32>
    %cst_143 = arith.constant 0.000000e+00 : f32
    %375 = vector.broadcast %cst_143 : f32 to vector<8x64xf32>
    %376 = arith.maximumf %374, %375 : vector<8x64xf32>
    %c0_144 = arith.constant 0 : index
    %c0_145 = arith.constant 0 : index
    %377 = vector.load %arg10[%c0_144, %c0_145] : memref<8x64xf32, #tpu.memory_space<vmem>>, vector<8x64xf32>
    tpu.vector_store %arg10[%c0_144, %c0_145], %376 {strides = array<i32>} : memref<8x64xf32, #tpu.memory_space<vmem>>, vector<8x64xf32>,
    return
  }
}

</mosaic_0001>

<bundles_post_ra>
// kernel: temporal_component_forward.1
= control target key start
LH: loop header
LB: loop body
LE: loop exit
PB: predicated region body
PF: predicated region fallthrough
CT: control target
= control target key end

     0   :  { %15 = vsyncpa [#allocation9], 0  ;;  %s7375_s0 = inlined_call_operand.vmem [shape: f32[48,128], index: 0, kind: input, shape index: {}]   ;;  %s7376_s1 = inlined_call_operand.vmem [shape: bf16[128,512], index: 1, kind: input, shape index: {}]   ;;  %s7377_s2 = inlined_call_operand.vmem [shape: bf16[128,512], index: 2, kind: input, shape index: {}]   ;;  %s7378_s3 = inlined_call_operand.vmem [shape: f32[1,512], index: 3, kind: input, shape index: {}]   ;;  %s7379_s4 = inlined_call_operand.vmem [shape: bf16[256,512], index: 4, kind: input, shape index: {}]   ;;  %s7380_s5 = inlined_call_operand.vmem [shape: f32[1,512], index: 5, kind: input, shape index: {}]   ;;  %s7381_s6 = inlined_call_operand.vmem [shape: bf16[128,128], index: 6, kind: input, shape index: {}]   ;;  %s7382_s7 = inlined_call_operand.vmem [shape: f32[1,128], index: 7, kind: input, shape index: {}]   ;;  %s7383_s8 = inlined_call_operand.vmem [shape: bf16[128,64], index: 8, kind: input, shape index: {}]   ;;  %s7384_s9 = inlined_call_operand.vmem [shape: f32[1,64], index: 9, kind: input, shape index: {}]   ;;  %s7385_s10 = inlined_call_operand.hbm [shape: f32[8,64], index: 10, kind: output, shape index: {}]  }
   0x1   :  { %v48_v0 = vld [vmem:[%s7379_s4] sm:$0xf]  ;;  %v50_v1 = vld [vmem:[%s7379_s4 + $0x10] sm:$0xf]  ;;  %v52_v2 = vld [vmem:[%s7379_s4 + $0x4] sm:$0xf] }
   0x2   :  { %49 = vst [vmem:[#allocation4] sm:$0xf] %v48_v0  ;;  %51 = vst [vmem:[#allocation4 + $0x4] sm:$0xf] %v50_v1  ;;  %v54_v3 = vld [vmem:[%s7379_s4 + $0x14] sm:$0xf] }
   0x3   :  { %v56_v4 = vld [vmem:[%s7379_s4 + $0x8] sm:$0xf]  ;;  %53 = vst [vmem:[#allocation4 + $0x8] sm:$0xf] %v52_v2  ;;  %55 = vst [vmem:[#allocation4 + $0xc] sm:$0xf] %v54_v3 }
   0x4   :  { %57 = vst [vmem:[#allocation4 + $0x10] sm:$0xf] %v56_v4  ;;  %v58_v5 = vld [vmem:[%s7379_s4 + $0x18] sm:$0xf]  ;;  %v60_v6 = vld [vmem:[%s7379_s4 + $0xc] sm:$0xf] }
   0x5   :  { %v62_v7 = vld [vmem:[%s7379_s4 + $0x1c] sm:$0xff]   ;;  %59 = vst [vmem:[#allocation4 + $0x14] sm:$0xf] %v58_v5  ;;  %61 = vst [vmem:[#allocation4 + $0x18] sm:$0xf] %v60_v6 }
   0x6   :  { %63 = vst [vmem:[#allocation4 + $0x1c] sm:$0xff] %v62_v7   ;;  %v66_v8 = vld [vmem:[%s7379_s4 + $0x30] sm:$0xf]  ;;  %v68_v9 = vld [vmem:[%s7379_s4 + $0x24] sm:$0xf]  ;;  %v78_v14 = vld [vmem:[%s7379_s4 + $0x3c] sm:$0xff]  }
   0x7   :  { %v70_v10 = vld [vmem:[%s7379_s4 + $0x34] sm:$0xf]  ;;  %67 = vst [vmem:[#allocation4 + $0x24] sm:$0xf] %v66_v8  ;;  %69 = vst [vmem:[#allocation4 + $0x28] sm:$0xf] %v68_v9 }
   0x8   :  { %71 = vst [vmem:[#allocation4 + $0x2c] sm:$0xf] %v70_v10  ;;  %v72_v11 = vld [vmem:[%s7379_s4 + $0x28] sm:$0xf]  ;;  %v74_v12 = vld [vmem:[%s7379_s4 + $0x38] sm:$0xf] }
   0x9   :  { %v76_v13 = vld [vmem:[%s7379_s4 + $0x2c] sm:$0xf]  ;;  %73 = vst [vmem:[#allocation4 + $0x30] sm:$0xf] %v72_v11  ;;  %75 = vst [vmem:[#allocation4 + $0x34] sm:$0xf] %v74_v12 }
   0xa   :  { %77 = vst [vmem:[#allocation4 + $0x38] sm:$0xf] %v76_v13  ;;  %v82_v15 = vld [vmem:[%s7379_s4 + $0x50] sm:$0xf]  ;;  %v84_v16 = vld [vmem:[%s7379_s4 + $0x44] sm:$0xf] }
   0xb   :  { %79 = vst [vmem:[#allocation4 + $0x3c] sm:$0xff] %v78_v14   ;;  %83 = vst [vmem:[#allocation4 + $0x44] sm:$0xf] %v82_v15  ;;  %v86_v17 = vld [vmem:[%s7379_s4 + $0x54] sm:$0xf]  ;;  %v94_v21 = vld [vmem:[%s7379_s4 + $0x5c] sm:$0xff]  }
   0xc   :  { %85 = vst [vmem:[#allocation4 + $0x48] sm:$0xf] %v84_v16  ;;  %v88_v18 = vld [vmem:[%s7379_s4 + $0x48] sm:$0xf]  ;;  %v90_v19 = vld [vmem:[%s7379_s4 + $0x58] sm:$0xf] }
   0xd   :  { %87 = vst [vmem:[#allocation4 + $0x4c] sm:$0xf] %v86_v17  ;;  %89 = vst [vmem:[#allocation4 + $0x50] sm:$0xf] %v88_v18  ;;  %v92_v20 = vld [vmem:[%s7379_s4 + $0x4c] sm:$0xf] }
   0xe   :  { %91 = vst [vmem:[#allocation4 + $0x54] sm:$0xf] %v90_v19  ;;  %v98_v22 = vld [vmem:[%s7379_s4 + $0x70] sm:$0xf]  ;;  %93 = vst [vmem:[#allocation4 + $0x58] sm:$0xf] %v92_v20 }
   0xf   :  { %95 = vst [vmem:[#allocation4 + $0x5c] sm:$0xff] %v94_v21   ;;  %99 = vst [vmem:[#allocation4 + $0x64] sm:$0xf] %v98_v22  ;;  %v100_v23 = vld [vmem:[%s7379_s4 + $0x64] sm:$0xf]  ;;  %v110_v28 = vld [vmem:[%s7379_s4 + $0x7c] sm:$0xff]  }
  0x10   :  { %v102_v24 = vld [vmem:[%s7379_s4 + $0x74] sm:$0xf]  ;;  %v104_v25 = vld [vmem:[%s7379_s4 + $0x68] sm:$0xf]  ;;  %101 = vst [vmem:[#allocation4 + $0x68] sm:$0xf] %v100_v23 }
  0x11   :  { %103 = vst [vmem:[#allocation4 + $0x6c] sm:$0xf] %v102_v24  ;;  %105 = vst [vmem:[#allocation4 + $0x70] sm:$0xf] %v104_v25  ;;  %v106_v26 = vld [vmem:[%s7379_s4 + $0x78] sm:$0xf] }
  0x12   :  { %v108_v27 = vld [vmem:[%s7379_s4 + $0x6c] sm:$0xf]  ;;  %107 = vst [vmem:[#allocation4 + $0x74] sm:$0xf] %v106_v26  ;;  %111 = vst [vmem:[#allocation4 + $0x7c] sm:$0xff] %v110_v28   ;;  %v126_v35 = vld [vmem:[%s7379_s4 + $0x9c] sm:$0xff]  }
  0x13   :  { %109 = vst [vmem:[#allocation4 + $0x78] sm:$0xf] %v108_v27  ;;  %v114_v29 = vld [vmem:[%s7379_s4 + $0x90] sm:$0xf]  ;;  %v116_v30 = vld [vmem:[%s7379_s4 + $0x84] sm:$0xf] }
  0x14   :  { %v118_v31 = vld [vmem:[%s7379_s4 + $0x94] sm:$0xf]  ;;  %115 = vst [vmem:[#allocation4 + $0x84] sm:$0xf] %v114_v29  ;;  %117 = vst [vmem:[#allocation4 + $0x88] sm:$0xf] %v116_v30 }
  0x15   :  { %119 = vst [vmem:[#allocation4 + $0x8c] sm:$0xf] %v118_v31  ;;  %v120_v32 = vld [vmem:[%s7379_s4 + $0x88] sm:$0xf]  ;;  %v122_v33 = vld [vmem:[%s7379_s4 + $0x98] sm:$0xf] }
  0x16   :  { %v124_v34 = vld [vmem:[%s7379_s4 + $0x8c] sm:$0xf]  ;;  %121 = vst [vmem:[#allocation4 + $0x90] sm:$0xf] %v120_v32  ;;  %123 = vst [vmem:[#allocation4 + $0x94] sm:$0xf] %v122_v33 }
  0x17   :  { %125 = vst [vmem:[#allocation4 + $0x98] sm:$0xf] %v124_v34  ;;  %v130_v36 = vld [vmem:[%s7379_s4 + $0xb0] sm:$0xf]  ;;  %v132_v37 = vld [vmem:[%s7379_s4 + $0xa4] sm:$0xf] }
  0x18   :  { %127 = vst [vmem:[#allocation4 + $0x9c] sm:$0xff] %v126_v35   ;;  %131 = vst [vmem:[#allocation4 + $0xa4] sm:$0xf] %v130_v36  ;;  %v134_v38 = vld [vmem:[%s7379_s4 + $0xb4] sm:$0xf]  ;;  %v142_v42 = vld [vmem:[%s7379_s4 + $0xbc] sm:$0xff]  }
  0x19   :  { %133 = vst [vmem:[#allocation4 + $0xa8] sm:$0xf] %v132_v37  ;;  %v136_v39 = vld [vmem:[%s7379_s4 + $0xa8] sm:$0xf]  ;;  %v138_v40 = vld [vmem:[%s7379_s4 + $0xb8] sm:$0xf] }
  0x1a   :  { %135 = vst [vmem:[#allocation4 + $0xac] sm:$0xf] %v134_v38  ;;  %137 = vst [vmem:[#allocation4 + $0xb0] sm:$0xf] %v136_v39  ;;  %v140_v41 = vld [vmem:[%s7379_s4 + $0xac] sm:$0xf] }
  0x1b   :  { %139 = vst [vmem:[#allocation4 + $0xb4] sm:$0xf] %v138_v40  ;;  %v146_v43 = vld [vmem:[%s7379_s4 + $0xd0] sm:$0xf]  ;;  %141 = vst [vmem:[#allocation4 + $0xb8] sm:$0xf] %v140_v41 }
  0x1c   :  { %143 = vst [vmem:[#allocation4 + $0xbc] sm:$0xff] %v142_v42   ;;  %147 = vst [vmem:[#allocation4 + $0xc4] sm:$0xf] %v146_v43  ;;  %v148_v44 = vld [vmem:[%s7379_s4 + $0xc4] sm:$0xf]  ;;  %v158_v49 = vld [vmem:[%s7379_s4 + $0xdc] sm:$0xff]  }
  0x1d   :  { %v150_v45 = vld [vmem:[%s7379_s4 + $0xd4] sm:$0xf]  ;;  %v152_v46 = vld [vmem:[%s7379_s4 + $0xc8] sm:$0xf]  ;;  %149 = vst [vmem:[#allocation4 + $0xc8] sm:$0xf] %v148_v44 }
  0x1e   :  { %151 = vst [vmem:[#allocation4 + $0xcc] sm:$0xf] %v150_v45  ;;  %153 = vst [vmem:[#allocation4 + $0xd0] sm:$0xf] %v152_v46  ;;  %v154_v47 = vld [vmem:[%s7379_s4 + $0xd8] sm:$0xf] }
  0x1f   :  { %v156_v48 = vld [vmem:[%s7379_s4 + $0xcc] sm:$0xf]  ;;  %155 = vst [vmem:[#allocation4 + $0xd4] sm:$0xf] %v154_v47  ;;  %159 = vst [vmem:[#allocation4 + $0xdc] sm:$0xff] %v158_v49   ;;  %v174_v56 = vld [vmem:[%s7379_s4 + $0xfc] sm:$0xff]  }
  0x20   :  { %157 = vst [vmem:[#allocation4 + $0xd8] sm:$0xf] %v156_v48  ;;  %v162_v50 = vld [vmem:[%s7379_s4 + $0xf0] sm:$0xf]  ;;  %v164_v51 = vld [vmem:[%s7379_s4 + $0xe4] sm:$0xf] }
  0x21   :  { %v166_v52 = vld [vmem:[%s7379_s4 + $0xf4] sm:$0xf]  ;;  %163 = vst [vmem:[#allocation4 + $0xe4] sm:$0xf] %v162_v50  ;;  %165 = vst [vmem:[#allocation4 + $0xe8] sm:$0xf] %v164_v51 }
  0x22   :  { %167 = vst [vmem:[#allocation4 + $0xec] sm:$0xf] %v166_v52  ;;  %v168_v53 = vld [vmem:[%s7379_s4 + $0xe8] sm:$0xf]  ;;  %v170_v54 = vld [vmem:[%s7379_s4 + $0xf8] sm:$0xf] }
  0x23   :  { %v172_v55 = vld [vmem:[%s7379_s4 + $0xec] sm:$0xf]  ;;  %169 = vst [vmem:[#allocation4 + $0xf0] sm:$0xf] %v168_v53  ;;  %171 = vst [vmem:[#allocation4 + $0xf4] sm:$0xf] %v170_v54 }
  0x24   :  { %173 = vst [vmem:[#allocation4 + $0xf8] sm:$0xf] %v172_v55  ;;  %v178_v57 = vld [vmem:[%s7379_s4 + $0x110] sm:$0xf]  ;;  %v180_v58 = vld [vmem:[%s7379_s4 + $0x104] sm:$0xf] }
  0x25   :  { %175 = vst [vmem:[#allocation4 + $0xfc] sm:$0xff] %v174_v56   ;;  %179 = vst [vmem:[#allocation4 + $0x104] sm:$0xf] %v178_v57  ;;  %v182_v59 = vld [vmem:[%s7379_s4 + $0x114] sm:$0xf]  ;;  %v190_v63 = vld [vmem:[%s7379_s4 + $0x11c] sm:$0xff]  }
  0x26   :  { %181 = vst [vmem:[#allocation4 + $0x108] sm:$0xf] %v180_v58  ;;  %v184_v60 = vld [vmem:[%s7379_s4 + $0x108] sm:$0xf]  ;;  %v186_v61 = vld [vmem:[%s7379_s4 + $0x118] sm:$0xf] }
  0x27   :  { %183 = vst [vmem:[#allocation4 + $0x10c] sm:$0xf] %v182_v59  ;;  %185 = vst [vmem:[#allocation4 + $0x110] sm:$0xf] %v184_v60  ;;  %v188_v62 = vld [vmem:[%s7379_s4 + $0x10c] sm:$0xf] }
  0x28   :  { %187 = vst [vmem:[#allocation4 + $0x114] sm:$0xf] %v186_v61  ;;  %v194_v0 = vld [vmem:[%s7379_s4 + $0x130] sm:$0xf]  ;;  %189 = vst [vmem:[#allocation4 + $0x118] sm:$0xf] %v188_v62 }
  0x29   :  { %191 = vst [vmem:[#allocation4 + $0x11c] sm:$0xff] %v190_v63   ;;  %195 = vst [vmem:[#allocation4 + $0x124] sm:$0xf] %v194_v0  ;;  %v196_v1 = vld [vmem:[%s7379_s4 + $0x124] sm:$0xf]  ;;  %v206_v6 = vld [vmem:[%s7379_s4 + $0x13c] sm:$0xff]  }
  0x2a   :  { %v198_v2 = vld [vmem:[%s7379_s4 + $0x134] sm:$0xf]  ;;  %v200_v3 = vld [vmem:[%s7379_s4 + $0x128] sm:$0xf]  ;;  %197 = vst [vmem:[#allocation4 + $0x128] sm:$0xf] %v196_v1 }
  0x2b   :  { %199 = vst [vmem:[#allocation4 + $0x12c] sm:$0xf] %v198_v2  ;;  %201 = vst [vmem:[#allocation4 + $0x130] sm:$0xf] %v200_v3  ;;  %v202_v4 = vld [vmem:[%s7379_s4 + $0x138] sm:$0xf] }
  0x2c   :  { %v204_v5 = vld [vmem:[%s7379_s4 + $0x12c] sm:$0xf]  ;;  %203 = vst [vmem:[#allocation4 + $0x134] sm:$0xf] %v202_v4  ;;  %207 = vst [vmem:[#allocation4 + $0x13c] sm:$0xff] %v206_v6   ;;  %v222_v13 = vld [vmem:[%s7379_s4 + $0x15c] sm:$0xff]  }
  0x2d   :  { %205 = vst [vmem:[#allocation4 + $0x138] sm:$0xf] %v204_v5  ;;  %v210_v7 = vld [vmem:[%s7379_s4 + $0x150] sm:$0xf]  ;;  %v212_v8 = vld [vmem:[%s7379_s4 + $0x144] sm:$0xf] }
  0x2e   :  { %v214_v9 = vld [vmem:[%s7379_s4 + $0x154] sm:$0xf]  ;;  %211 = vst [vmem:[#allocation4 + $0x144] sm:$0xf] %v210_v7  ;;  %213 = vst [vmem:[#allocation4 + $0x148] sm:$0xf] %v212_v8 }
  0x2f   :  { %215 = vst [vmem:[#allocation4 + $0x14c] sm:$0xf] %v214_v9  ;;  %v216_v10 = vld [vmem:[%s7379_s4 + $0x148] sm:$0xf]  ;;  %v218_v11 = vld [vmem:[%s7379_s4 + $0x158] sm:$0xf] }
  0x30   :  { %v220_v12 = vld [vmem:[%s7379_s4 + $0x14c] sm:$0xf]  ;;  %217 = vst [vmem:[#allocation4 + $0x150] sm:$0xf] %v216_v10  ;;  %219 = vst [vmem:[#allocation4 + $0x154] sm:$0xf] %v218_v11 }
  0x31   :  { %221 = vst [vmem:[#allocation4 + $0x158] sm:$0xf] %v220_v12  ;;  %v226_v14 = vld [vmem:[%s7379_s4 + $0x170] sm:$0xf]  ;;  %v228_v15 = vld [vmem:[%s7379_s4 + $0x164] sm:$0xf] }
  0x32   :  { %223 = vst [vmem:[#allocation4 + $0x15c] sm:$0xff] %v222_v13   ;;  %227 = vst [vmem:[#allocation4 + $0x164] sm:$0xf] %v226_v14  ;;  %v230_v16 = vld [vmem:[%s7379_s4 + $0x174] sm:$0xf]  ;;  %v238_v20 = vld [vmem:[%s7379_s4 + $0x17c] sm:$0xff]  }
  0x33   :  { %229 = vst [vmem:[#allocation4 + $0x168] sm:$0xf] %v228_v15  ;;  %v232_v17 = vld [vmem:[%s7379_s4 + $0x168] sm:$0xf]  ;;  %v234_v18 = vld [vmem:[%s7379_s4 + $0x178] sm:$0xf] }
  0x34   :  { %231 = vst [vmem:[#allocation4 + $0x16c] sm:$0xf] %v230_v16  ;;  %233 = vst [vmem:[#allocation4 + $0x170] sm:$0xf] %v232_v17  ;;  %v236_v19 = vld [vmem:[%s7379_s4 + $0x16c] sm:$0xf] }
  0x35   :  { %235 = vst [vmem:[#allocation4 + $0x174] sm:$0xf] %v234_v18  ;;  %v242_v21 = vld [vmem:[%s7379_s4 + $0x190] sm:$0xf]  ;;  %237 = vst [vmem:[#allocation4 + $0x178] sm:$0xf] %v236_v19 }
  0x36   :  { %239 = vst [vmem:[#allocation4 + $0x17c] sm:$0xff] %v238_v20   ;;  %243 = vst [vmem:[#allocation4 + $0x184] sm:$0xf] %v242_v21  ;;  %v244_v22 = vld [vmem:[%s7379_s4 + $0x184] sm:$0xf]  ;;  %v254_v27 = vld [vmem:[%s7379_s4 + $0x19c] sm:$0xff]  }
  0x37   :  { %v246_v23 = vld [vmem:[%s7379_s4 + $0x194] sm:$0xf]  ;;  %v248_v24 = vld [vmem:[%s7379_s4 + $0x188] sm:$0xf]  ;;  %245 = vst [vmem:[#allocation4 + $0x188] sm:$0xf] %v244_v22 }
  0x38   :  { %247 = vst [vmem:[#allocation4 + $0x18c] sm:$0xf] %v246_v23  ;;  %249 = vst [vmem:[#allocation4 + $0x190] sm:$0xf] %v248_v24  ;;  %v250_v25 = vld [vmem:[%s7379_s4 + $0x198] sm:$0xf] }
  0x39   :  { %v252_v26 = vld [vmem:[%s7379_s4 + $0x18c] sm:$0xf]  ;;  %251 = vst [vmem:[#allocation4 + $0x194] sm:$0xf] %v250_v25  ;;  %255 = vst [vmem:[#allocation4 + $0x19c] sm:$0xff] %v254_v27   ;;  %v270_v34 = vld [vmem:[%s7379_s4 + $0x1bc] sm:$0xff]  }
  0x3a   :  { %253 = vst [vmem:[#allocation4 + $0x198] sm:$0xf] %v252_v26  ;;  %v258_v28 = vld [vmem:[%s7379_s4 + $0x1b0] sm:$0xf]  ;;  %v260_v29 = vld [vmem:[%s7379_s4 + $0x1a4] sm:$0xf] }
  0x3b   :  { %v262_v30 = vld [vmem:[%s7379_s4 + $0x1b4] sm:$0xf]  ;;  %259 = vst [vmem:[#allocation4 + $0x1a4] sm:$0xf] %v258_v28  ;;  %261 = vst [vmem:[#allocation4 + $0x1a8] sm:$0xf] %v260_v29 }
  0x3c   :  { %263 = vst [vmem:[#allocation4 + $0x1ac] sm:$0xf] %v262_v30  ;;  %v264_v31 = vld [vmem:[%s7379_s4 + $0x1a8] sm:$0xf]  ;;  %v266_v32 = vld [vmem:[%s7379_s4 + $0x1b8] sm:$0xf] }
  0x3d   :  { %v268_v33 = vld [vmem:[%s7379_s4 + $0x1ac] sm:$0xf]  ;;  %265 = vst [vmem:[#allocation4 + $0x1b0] sm:$0xf] %v264_v31  ;;  %267 = vst [vmem:[#allocation4 + $0x1b4] sm:$0xf] %v266_v32 }
  0x3e   :  { %269 = vst [vmem:[#allocation4 + $0x1b8] sm:$0xf] %v268_v33  ;;  %v274_v35 = vld [vmem:[%s7379_s4 + $0x1d0] sm:$0xf]  ;;  %v276_v36 = vld [vmem:[%s7379_s4 + $0x1c4] sm:$0xf] }
  0x3f   :  { %271 = vst [vmem:[#allocation4 + $0x1bc] sm:$0xff] %v270_v34   ;;  %275 = vst [vmem:[#allocation4 + $0x1c4] sm:$0xf] %v274_v35  ;;  %v278_v37 = vld [vmem:[%s7379_s4 + $0x1d4] sm:$0xf]  ;;  %v286_v41 = vld [vmem:[%s7379_s4 + $0x1dc] sm:$0xff]  }
  0x40   :  { %277 = vst [vmem:[#allocation4 + $0x1c8] sm:$0xf] %v276_v36  ;;  %v280_v38 = vld [vmem:[%s7379_s4 + $0x1c8] sm:$0xf]  ;;  %v282_v39 = vld [vmem:[%s7379_s4 + $0x1d8] sm:$0xf] }
  0x41   :  { %279 = vst [vmem:[#allocation4 + $0x1cc] sm:$0xf] %v278_v37  ;;  %281 = vst [vmem:[#allocation4 + $0x1d0] sm:$0xf] %v280_v38  ;;  %v284_v40 = vld [vmem:[%s7379_s4 + $0x1cc] sm:$0xf] }
  0x42   :  { %283 = vst [vmem:[#allocation4 + $0x1d4] sm:$0xf] %v282_v39  ;;  %v290_v42 = vld [vmem:[%s7379_s4 + $0x1f0] sm:$0xf]  ;;  %285 = vst [vmem:[#allocation4 + $0x1d8] sm:$0xf] %v284_v40 }
  0x43   :  { %287 = vst [vmem:[#allocation4 + $0x1dc] sm:$0xff] %v286_v41   ;;  %291 = vst [vmem:[#allocation4 + $0x1e4] sm:$0xf] %v290_v42  ;;  %v292_v43 = vld [vmem:[%s7379_s4 + $0x1e4] sm:$0xf] }
  0x44   :  { %v294_v44 = vld [vmem:[%s7379_s4 + $0x1f4] sm:$0xf]  ;;  %v296_v45 = vld [vmem:[%s7379_s4 + $0x1e8] sm:$0xf]  ;;  %293 = vst [vmem:[#allocation4 + $0x1e8] sm:$0xf] %v292_v43 }
  0x45   :  { %295 = vst [vmem:[#allocation4 + $0x1ec] sm:$0xf] %v294_v44  ;;  %297 = vst [vmem:[#allocation4 + $0x1f0] sm:$0xf] %v296_v45  ;;  %v298_v46 = vld [vmem:[%s7379_s4 + $0x1f8] sm:$0xf] }
  0x46   :  { %v300_v47 = vld [vmem:[%s7379_s4 + $0x1ec] sm:$0xf]  ;;  %v302_v48 = vld [vmem:[%s7379_s4 + $0x1fc] sm:$0xf]  ;;  %299 = vst [vmem:[#allocation4 + $0x1f4] sm:$0xf] %v298_v46 }
  0x47   :  { %301 = vst [vmem:[#allocation4 + $0x1f8] sm:$0xf] %v300_v47  ;;  %303 = vst [vmem:[#allocation4 + $0x1fc] sm:$0xf] %v302_v48 }
  0x48   :  { %590 = vsyncadd [#allocation7], 8192  ;;  %v5543_v49 = vld [vmem:[%s7381_s6] sm:$0xff]  ;;  %v5548_v50 = vld [vmem:[%s7381_s6 + $0x8] sm:$0xff] }
  0x49   :  { %7501 = vst [vmem:[#allocation17_spill] sm:$0xff] %v5543_v49  ;;  %7502 = vst [vmem:[#allocation18_spill] sm:$0xff] %v5548_v50  ;;  %v5553_v51 = vld [vmem:[%s7381_s6 + $0x10] sm:$0xff]  ;;  %v5558_v52 = vld [vmem:[%s7381_s6 + $0x18] sm:$0xff] }
  0x4a   :  { %7503 = vst [vmem:[#allocation19_spill] sm:$0xff] %v5553_v51  ;;  %7504 = vst [vmem:[#allocation20_spill] sm:$0xff] %v5558_v52  ;;  %v5563_v53 = vld [vmem:[%s7381_s6 + $0x20] sm:$0xff]  ;;  %v5568_v54 = vld [vmem:[%s7381_s6 + $0x28] sm:$0xff] }
  0x4b   :  { %7505 = vst [vmem:[#allocation21_spill] sm:$0xff] %v5563_v53  ;;  %7506 = vst [vmem:[#allocation22_spill] sm:$0xff] %v5568_v54  ;;  %v5573_v55 = vld [vmem:[%s7381_s6 + $0x30] sm:$0xff]  ;;  %v5578_v56 = vld [vmem:[%s7381_s6 + $0x38] sm:$0xff] }
  0x4c   :  { %7507 = vst [vmem:[#allocation23_spill] sm:$0xff] %v5573_v55  ;;  %7508 = vst [vmem:[#allocation24_spill] sm:$0xff] %v5578_v56 }
  0x4d   :  { %647 = vsyncadd [#allocation7 + $0x1], 1024  ;;  %v5583_v57 = vld [vmem:[%s7383_s8] sm:$0xff]  ;;  %v5588_v58 = vld [vmem:[%s7383_s8 + $0x8] sm:$0xff] }
  0x4e   :  { %7509 = vst [vmem:[#allocation25_spill] sm:$0xff] %v5583_v57  ;;  %7510 = vst [vmem:[#allocation26_spill] sm:$0xff] %v5588_v58  ;;  %v5593_v59 = vld [vmem:[%s7383_s8 + $0x10] sm:$0xff]  ;;  %v5598_v60 = vld [vmem:[%s7383_s8 + $0x18] sm:$0xff] }
  0x4f   :  { %7511 = vst [vmem:[#allocation27_spill] sm:$0xff] %v5593_v59  ;;  %7512 = vst [vmem:[#allocation28_spill] sm:$0xff] %v5598_v60  ;;  %v5603_v61 = vld [vmem:[%s7383_s8 + $0x20] sm:$0xff]  ;;  %v5608_v62 = vld [vmem:[%s7383_s8 + $0x28] sm:$0xff] }
  0x50   :  { %7513 = vst [vmem:[#allocation29_spill] sm:$0xff] %v5603_v61  ;;  %7514 = vst [vmem:[#allocation30_spill] sm:$0xff] %v5608_v62  ;;  %v5613_v63 = vld [vmem:[%s7383_s8 + $0x30] sm:$0xff]  ;;  %v5618_v0 = vld [vmem:[%s7383_s8 + $0x38] sm:$0xff] }
  0x51   :  { %7515 = vst [vmem:[#allocation31_spill] sm:$0xff] %v5613_v63  ;;  %7516 = vst [vmem:[#allocation32_spill] sm:$0xff] %v5618_v0 }
  0x52   :  { %704 = vsyncadd [#allocation7 + $0x2], 1024  ;;  %v4668_v1 = vld [vmem:[%s7376_s1 + $0x4] ss:$16 sps:$4 sm:$0xff]   ;;  %v7386_v2 = vmov 0   ;;  %v706_v35 = vld [vmem:[%s7375_s0 + $0x8] sm:$0xff] }
  0x53   :  { %960 = vmatprep.mubr.bf16.mxu0 %v7386_v2  ;;  %1078 = vst [vmem:[#allocation3] sm:$0xff] %v7386_v2  ;;  %1023 = vmatprep.mubr.bf16.mxu1 %v7386_v2  ;;  %v4670_v3 = vld [vmem:[%s7376_s1 + $0xc] ss:$16 sps:$4 sm:$0xff]   ;;  %v4672_v4 = vld [vmem:[%s7376_s1] ss:$16 sps:$4 sm:$0xff]  }
  0x54   :  { %v4673_v5 = vld [vmem:[%s7376_s1 + $0x8] ss:$16 sps:$4 sm:$0xff]   ;;  %928 = vmatprep.subr.bf16.mxu0 %v4668_v1  ;;  %v4674_v6 = vld [vmem:[%s7376_s1 + $0x24] ss:$16 sps:$4 sm:$0xff]   ;;  %991 = vmatprep.subr.bf16.mxu1 %v4670_v3  ;;  %v4676_v7 = vld [vmem:[%s7376_s1 + $0x2c] ss:$16 sps:$4 sm:$0xff]  }
  0x55   :  { %929 = vmatpush1.bf16.msra.mxu0 %v4672_v4  ;;  %992 = vmatpush1.bf16.msra.mxu1 %v4673_v5  ;;  %v4678_v8 = vld [vmem:[%s7376_s1 + $0x20] ss:$16 sps:$4 sm:$0xff]   ;;  %v4679_v9 = vld [vmem:[%s7376_s1 + $0x28] ss:$16 sps:$4 sm:$0xff]   ;;  %v4680_v10 = vld [vmem:[%s7376_s1 + $0x44] ss:$16 sps:$4 sm:$0xff]  }
  0x56   :  { %930 = vmatprep.subr.bf16.mxu0 %v4674_v6  ;;  %993 = vmatprep.subr.bf16.mxu1 %v4676_v7  ;;  %v4682_v11 = vld [vmem:[%s7376_s1 + $0x4c] ss:$16 sps:$4 sm:$0xff]   ;;  %v4684_v12 = vld [vmem:[%s7376_s1 + $0x40] ss:$16 sps:$4 sm:$0xff]   ;;  %v4685_v13 = vld [vmem:[%s7376_s1 + $0x48] ss:$16 sps:$4 sm:$0xff]  }
  0x57   :  { %v4686_v14 = vld [vmem:[%s7376_s1 + $0x64] ss:$16 sps:$4 sm:$0xff]   ;;  %v4688_v15 = vld [vmem:[%s7376_s1 + $0x6c] ss:$16 sps:$4 sm:$0xff]   ;;  %v4690_v16 = vld [vmem:[%s7376_s1 + $0x60] ss:$16 sps:$4 sm:$0xff]  }
  0x58   :  { %v4691_v17 = vld [vmem:[%s7376_s1 + $0x68] ss:$16 sps:$4 sm:$0xff]   ;;  %v4692_v18 = vld [vmem:[%s7376_s1 + $0x84] ss:$16 sps:$4 sm:$0xff]   ;;  %v4694_v19 = vld [vmem:[%s7376_s1 + $0x8c] ss:$16 sps:$4 sm:$0xff]  }
  0x59   :  { %931 = vmatpush1.bf16.msra.mxu0 %v4678_v8  ;;  %994 = vmatpush1.bf16.msra.mxu1 %v4679_v9  ;;  %v4696_v20 = vld [vmem:[%s7376_s1 + $0x80] ss:$16 sps:$4 sm:$0xff]   ;;  %v4697_v21 = vld [vmem:[%s7376_s1 + $0x88] ss:$16 sps:$4 sm:$0xff]   ;;  %v4698_v22 = vld [vmem:[%s7376_s1 + $0xa4] ss:$16 sps:$4 sm:$0xff]  }
  0x5a   :  { %932 = vmatprep.subr.bf16.mxu0 %v4680_v10  ;;  %995 = vmatprep.subr.bf16.mxu1 %v4682_v11  ;;  %v4700_v23 = vld [vmem:[%s7376_s1 + $0xac] ss:$16 sps:$4 sm:$0xff]   ;;  %v4702_v24 = vld [vmem:[%s7376_s1 + $0xa0] ss:$16 sps:$4 sm:$0xff]   ;;  %v4703_v25 = vld [vmem:[%s7376_s1 + $0xa8] ss:$16 sps:$4 sm:$0xff]  }
  0x5b   :  { %v4704_v26 = vld [vmem:[%s7376_s1 + $0xc4] ss:$16 sps:$4 sm:$0xff]   ;;  %v4706_v27 = vld [vmem:[%s7376_s1 + $0xcc] ss:$16 sps:$4 sm:$0xff]   ;;  %v4708_v28 = vld [vmem:[%s7376_s1 + $0xc0] ss:$16 sps:$4 sm:$0xff]  }
  0x5c   :  { %v4709_v29 = vld [vmem:[%s7376_s1 + $0xc8] ss:$16 sps:$4 sm:$0xff]   ;;  %v4710_v30 = vld [vmem:[%s7376_s1 + $0xe4] ss:$16 sps:$4 sm:$0xff]   ;;  %v4712_v31 = vld [vmem:[%s7376_s1 + $0xec] ss:$16 sps:$4 sm:$0xff]  }
  0x5d   :  { %933 = vmatpush1.bf16.msra.mxu0 %v4684_v12  ;;  %996 = vmatpush1.bf16.msra.mxu1 %v4685_v13  ;;  %v4714_v32 = vld [vmem:[%s7376_s1 + $0xe0] ss:$16 sps:$4 sm:$0xff]   ;;  %v4715_v33 = vld [vmem:[%s7376_s1 + $0xe8] ss:$16 sps:$4 sm:$0xff]   ;;  %v4718_v36 = vld [vmem:[%s7377_s2 + $0x4] ss:$16 sps:$4 sm:$0xff]  }
  0x5e   :  { %934 = vmatprep.subr.bf16.mxu0 %v4686_v14  ;;  %997 = vmatprep.subr.bf16.mxu1 %v4688_v15  ;;  %v705_v34 = vld [vmem:[%s7375_s0] sm:$0xff]  ;;  %v4721_v37 = vld [vmem:[%s7377_s2 + $0xc] ss:$16 sps:$4 sm:$0xff]   ;;  %v4719_v40 = vld [vmem:[%s7377_s2 + $0x8] ss:$16 sps:$4 sm:$0xff]  }
  0x5f   :  { %v711_v38 = vpack.c.bf16 %v706_v35, %v705_v34  ;;  %v4716_v39 = vld [vmem:[%s7377_s2] ss:$16 sps:$4 sm:$0xff]   ;;  %v4724_v41 = vld [vmem:[%s7377_s2 + $0x24] ss:$16 sps:$4 sm:$0xff]   ;;  %v4727_v43 = vld [vmem:[%s7377_s2 + $0x2c] ss:$16 sps:$4 sm:$0xff]  }
  0x60   :  { %v4722_v42 = vld [vmem:[%s7377_s2 + $0x20] ss:$16 sps:$4 sm:$0xff]   ;;  %v708_v45 = vld [vmem:[%s7375_s0 + $0x18] sm:$0xff]  ;;  %v4730_v47 = vld [vmem:[%s7377_s2 + $0x44] ss:$16 sps:$4 sm:$0xff]  }
  0x61   :  { %935 = vmatpush1.bf16.msra.mxu0 %v4690_v16  ;;  %998 = vmatpush1.bf16.msra.mxu1 %v4691_v17  ;;  %v707_v44 = vld [vmem:[%s7375_s0 + $0x10] sm:$0xff]  ;;  %v4725_v46 = vld [vmem:[%s7377_s2 + $0x28] ss:$16 sps:$4 sm:$0xff]   ;;  %v4733_v48 = vld [vmem:[%s7377_s2 + $0x4c] ss:$16 sps:$4 sm:$0xff]  }
  0x62   :  { %936 = vmatprep.subr.bf16.mxu0 %v4692_v18  ;;  %999 = vmatprep.subr.bf16.mxu1 %v4694_v19  ;;  %v712_v1 = vpack.c.bf16 %v708_v45, %v707_v44  ;;  %v4728_v3 = vld [vmem:[%s7377_s2 + $0x40] ss:$16 sps:$4 sm:$0xff]   ;;  %v4731_v4 = vld [vmem:[%s7377_s2 + $0x48] ss:$16 sps:$4 sm:$0xff]   ;;  %v4736_v5 = vld [vmem:[%s7377_s2 + $0x64] ss:$16 sps:$4 sm:$0xff]  }
  0x63   :  { %v4739_v6 = vld [vmem:[%s7377_s2 + $0x6c] ss:$16 sps:$4 sm:$0xff]   ;;  %v4734_v7 = vld [vmem:[%s7377_s2 + $0x60] ss:$16 sps:$4 sm:$0xff]   ;;  %v4737_v10 = vld [vmem:[%s7377_s2 + $0x68] ss:$16 sps:$4 sm:$0xff]  }
  0x64   :  { %v709_v8 = vld [vmem:[%s7375_s0 + $0x20] sm:$0xff]  ;;  %v710_v9 = vld [vmem:[%s7375_s0 + $0x28] sm:$0xff] }
  0x65   :  { %937 = vmatpush1.bf16.msra.mxu0 %v4696_v20  ;;  %1000 = vmatpush1.bf16.msra.mxu1 %v4697_v21  ;;  %v4742_v11 = vld [vmem:[%s7377_s2 + $0x84] ss:$16 sps:$4 sm:$0xff]   ;;  %v4745_v12 = vld [vmem:[%s7377_s2 + $0x8c] ss:$16 sps:$4 sm:$0xff]   ;;  %v713_v13 = vpack.c.bf16 %v710_v9, %v709_v8  ;;  %v4740_v14 = vld [vmem:[%s7377_s2 + $0x80] ss:$16 sps:$4 sm:$0xff]  }
  0x66   :  { %938 = vmatprep.subr.bf16.mxu0 %v4698_v22  ;;  %1001 = vmatprep.subr.bf16.mxu1 %v4700_v23  ;;  %v4743_v15 = vld [vmem:[%s7377_s2 + $0x88] ss:$16 sps:$4 sm:$0xff]   ;;  %v4748_v16 = vld [vmem:[%s7377_s2 + $0xa4] ss:$16 sps:$4 sm:$0xff]   ;;  %v4751_v17 = vld [vmem:[%s7377_s2 + $0xac] ss:$16 sps:$4 sm:$0xff]  }
  0x67   :  { %v4746_v18 = vld [vmem:[%s7377_s2 + $0xa0] ss:$16 sps:$4 sm:$0xff]   ;;  %v4749_v19 = vld [vmem:[%s7377_s2 + $0xa8] ss:$16 sps:$4 sm:$0xff]   ;;  %v4754_v20 = vld [vmem:[%s7377_s2 + $0xc4] ss:$16 sps:$4 sm:$0xff]  }
  0x68   :  { %v4757_v21 = vld [vmem:[%s7377_s2 + $0xcc] ss:$16 sps:$4 sm:$0xff]   ;;  %v4752_v22 = vld [vmem:[%s7377_s2 + $0xc0] ss:$16 sps:$4 sm:$0xff]   ;;  %v4755_v23 = vld [vmem:[%s7377_s2 + $0xc8] ss:$16 sps:$4 sm:$0xff]  }
  0x69   :  { %939 = vmatpush1.bf16.msra.mxu0 %v4702_v24  ;;  %1002 = vmatpush1.bf16.msra.mxu1 %v4703_v25  ;;  %v4760_v24 = vld [vmem:[%s7377_s2 + $0xe4] ss:$16 sps:$4 sm:$0xff]   ;;  %v4763_v25 = vld [vmem:[%s7377_s2 + $0xec] ss:$16 sps:$4 sm:$0xff]  }
  0x6a   :  { %940 = vmatprep.subr.bf16.mxu0 %v4704_v26  ;;  %1003 = vmatprep.subr.bf16.mxu1 %v4706_v27  ;;  %v4758_v26 = vld [vmem:[%s7377_s2 + $0xe0] ss:$16 sps:$4 sm:$0xff]   ;;  %v4761_v27 = vld [vmem:[%s7377_s2 + $0xe8] ss:$16 sps:$4 sm:$0xff]  }
  0x6d   :  { %941 = vmatpush1.bf16.msra.mxu0 %v4708_v28  ;;  %1004 = vmatpush1.bf16.msra.mxu1 %v4709_v29  ;;  %v748_v28 = vlaneseq }
  0x6e   :  { %942 = vmatprep.subr.bf16.mxu0 %v4710_v30  ;;  %1005 = vmatprep.subr.bf16.mxu1 %v4712_v31  ;;  %v746_v31 = vld [vmem:[%s7378_s3] sm:$0xf] }
  0x6f   :  { %v749_v29 = vshrl.u32 %v748_v28, 7 }
  0x71   :  { %943 = vmatpush1.bf16.msra.mxu0 %v4714_v32  ;;  %1006 = vmatpush1.bf16.msra.mxu1 %v4715_v33  ;;  %v5841_v30 = vsub.s32 0, %v749_v29  ;;  %v5846_v32 = vsub.s32 2, %v749_v29  ;;  %v5848_v33 = vsub.s32 3, %v749_v29  ;;  %v5850_v34 = vsub.s32 1, %v749_v29 }
  0x72   :  { %1275 = vmatprep.subr.bf16.mxu0 %v4718_v36  ;;  %1316 = vmatprep.subr.bf16.mxu1 %v4721_v37 }
  0x73   :  { %7517 = vst [vmem:[#allocation33_spill] sm:$0xff] %v5841_v30  ;;  %7518 = vst [vmem:[#allocation34_spill] sm:$0xff] %v5846_v32  ;;  %v751_v35 = vrot.slane %v746_v31, %v5841_v30  ;;  %v759_v37 = vrot.slane %v746_v31, %v5846_v32 }
  0x74   :  { %961 = vmatmul.mubr.bf16.vlgmr.msra.gmra.mrb[0].mxu0 %v711_v38  ;;  %1024 = vmatmul.mubr.bf16.vlgmr.msra.gmra.mrb[0].mxu1 %v711_v38  ;;  %7519 = vst [vmem:[#allocation35_spill] sm:$0xff] %v5848_v33  ;;  %7520 = vst [vmem:[#allocation36_spill] sm:$0xff] %v5850_v34 }
  0x75   :  { %1276 = vmatpush1.bf16.msra.mxu0 %v4716_v39  ;;  %1317 = vmatpush1.bf16.msra.mxu1 %v4719_v40  ;;  %v763_v40 = vrot.slane %v746_v31, %v5848_v33 }
  0x76   :  { %1277 = vmatprep.subr.bf16.mxu0 %v4724_v41  ;;  %1318 = vmatprep.subr.bf16.mxu1 %v4727_v43  ;;  %v755_v41 = vrot.slane %v746_v31, %v5850_v34 }
  0x77   :  { %970 = vmatprep.mubr.bf16.mxu0 %v7386_v2  ;;  %1033 = vmatprep.mubr.bf16.mxu1 %v7386_v2 }
  0x79   :  { %1278 = vmatpush1.bf16.msra.mxu0 %v4722_v42  ;;  %1319 = vmatpush1.bf16.msra.mxu1 %v4725_v46 }
  0x7a   :  { %1279 = vmatprep.subr.bf16.mxu0 %v4730_v47  ;;  %1320 = vmatprep.subr.bf16.mxu1 %v4733_v48 }
  0x7c   :  { %971 = vmatmul.mubr.bf16.gmra.mrb[4].mxu0 %v712_v1  ;;  %1034 = vmatmul.mubr.bf16.gmra.mrb[4].mxu1 %v712_v1 }
  0x7d   :  { %1280 = vmatpush1.bf16.msra.mxu0 %v4728_v3  ;;  %1321 = vmatpush1.bf16.msra.mxu1 %v4731_v4 }
  0x7e   :  { %1281 = vmatprep.subr.bf16.mxu0 %v4736_v5  ;;  %1322 = vmatprep.subr.bf16.mxu1 %v4739_v6 }
  0x7f   :  { %980 = vmatprep.mubr.bf16.mxu0 %v7386_v2  ;;  %1043 = vmatprep.mubr.bf16.mxu1 %v7386_v2 }
  0x81   :  { %1282 = vmatpush1.bf16.msra.mxu0 %v4734_v7  ;;  %1323 = vmatpush1.bf16.msra.mxu1 %v4737_v10 }
  0x82   :  { %1283 = vmatprep.subr.bf16.mxu0 %v4742_v11  ;;  %1324 = vmatprep.subr.bf16.mxu1 %v4745_v12 }
  0x84   :  { %981 = vmatmul.mubr.bf16.gmra.mrb[8].mxu0 %v713_v13  ;;  %1044 = vmatmul.mubr.bf16.gmra.mrb[8].mxu1 %v713_v13 }
  0x85   :  { %1284 = vmatpush1.bf16.msra.mxu0 %v4740_v14  ;;  %1325 = vmatpush1.bf16.msra.mxu1 %v4743_v15 }
  0x86   :  { %1285 = vmatprep.subr.bf16.mxu0 %v4748_v16  ;;  %1326 = vmatprep.subr.bf16.mxu1 %v4751_v17 }
  0x87   :  { %1307 = vmatprep.mubr.bf16.mxu0 %v7386_v2  ;;  %1348 = vmatprep.mubr.bf16.mxu1 %v7386_v2 }
  0x89   :  { %1286 = vmatpush1.bf16.msra.mxu0 %v4746_v18  ;;  %1327 = vmatpush1.bf16.msra.mxu1 %v4749_v19 }
  0x8a   :  { %1287 = vmatprep.subr.bf16.mxu0 %v4754_v20  ;;  %1328 = vmatprep.subr.bf16.mxu1 %v4757_v21 }
  0x8d   :  { %1288 = vmatpush1.bf16.msra.mxu0 %v4752_v22  ;;  %1329 = vmatpush1.bf16.msra.mxu1 %v4755_v23 }
  0x8e   :  { %1289 = vmatprep.subr.bf16.mxu0 %v4760_v24  ;;  %1330 = vmatprep.subr.bf16.mxu1 %v4763_v25 }
  0x91   :  { %1290 = vmatpush1.bf16.msra.mxu0 %v4758_v26  ;;  %1331 = vmatpush1.bf16.msra.mxu1 %v4761_v27 }
  0x94   :  { %1308 = vmatmul.mubr.bf16.vlgmr.msra.gmra.mrb[12].mxu0 %v7386_v2  ;;  %1349 = vmatmul.mubr.bf16.vlgmr.msra.gmra.mrb[12].mxu1 %v7386_v2 }
 0x147   :  { %v962_v36 = vpop.f32.mrb[0].mxu0  ;;  %v1025_v39 = vpop.f32.mrb[0].mxu1 }
 0x148   :  { %v964_v38 = vpop.f32.mrb[1].mxu0  ;;  %v1027_v43 = vpop.f32.mrb[1].mxu1 }
 0x149   :  { %v966_v42 = vpop.f32.mrb[2].mxu0  ;;  %v1029_v46 = vpop.f32.mrb[2].mxu1 }
 0x14a   :  { %v5856_v44 = vadd.f32 %v966_v42, %v751_v35  ;;  %v968_v45 = vpop.f32.mrb[3].mxu0  ;;  %v5860_v48 = vadd.f32 %v1029_v46, %v759_v37  ;;  %v1031_v1 = vpop.f32.mrb[3].mxu1 }
 0x14b   :  { %v5858_v47 = vadd.f32 %v968_v45, %v755_v41  ;;  %v5862_v3 = vadd.f32 %v1031_v1, %v763_v40 }
 0x14c   :  { %7521 = vst [vmem:[#allocation37_spill] sm:$0xff] %v5856_v44  ;;  %7523 = vst [vmem:[#allocation39_spill] sm:$0xff] %v5860_v48 }
 0x14d   :  { %7522 = vst [vmem:[#allocation38_spill] sm:$0xff] %v5858_v47  ;;  %7524 = vst [vmem:[#allocation40_spill] sm:$0xff] %v5862_v3 }
 0x14f   :  { %v972_v4 = vpop.f32.mrb[4].mxu0  ;;  %v1035_v7 = vpop.f32.mrb[4].mxu1 }
 0x150   :  { %v5864_v5 = vadd.f32 %v972_v4, %v751_v35  ;;  %v974_v6 = vpop.f32.mrb[5].mxu0  ;;  %v5868_v10 = vadd.f32 %v1035_v7, %v759_v37  ;;  %v1037_v11 = vpop.f32.mrb[5].mxu1  ;;  %v965_v7 = vadd.f32 %v964_v38, %v755_v41 }
 0x151   :  { %v5866_v8 = vadd.f32 %v974_v6, %v755_v41  ;;  %v976_v9 = vpop.f32.mrb[6].mxu0  ;;  %v5872_v14 = vadd.f32 %v1037_v11, %v763_v40  ;;  %v1039_v15 = vpop.f32.mrb[6].mxu1  ;;  %v963_v6 = vadd.f32 %v962_v36, %v751_v35 }
 0x152   :  { %7525 = vst [vmem:[#allocation41_spill] sm:$0xff] %v5864_v5  ;;  %7527 = vst [vmem:[#allocation43_spill] sm:$0xff] %v5868_v10  ;;  %v5870_v12 = vadd.f32 %v976_v9, %v751_v35  ;;  %v978_v13 = vpop.f32.mrb[7].mxu0  ;;  %v5876_v17 = vadd.f32 %v1039_v15, %v759_v37  ;;  %v1041_v18 = vpop.f32.mrb[7].mxu1  ;;  %v1026_v9 = vadd.f32 %v1025_v39, %v759_v37 }
 0x153   :  { %7526 = vst [vmem:[#allocation42_spill] sm:$0xff] %v5866_v8  ;;  %7529 = vst [vmem:[#allocation45_spill] sm:$0xff] %v5872_v14  ;;  %v5874_v16 = vadd.f32 %v978_v13, %v755_v41  ;;  %v5878_v19 = vadd.f32 %v1041_v18, %v763_v40  ;;  %v1028_v13 = vadd.f32 %v1027_v43, %v763_v40 }
 0x154   :  { %7528 = vst [vmem:[#allocation44_spill] sm:$0xff] %v5870_v12  ;;  %7531 = vst [vmem:[#allocation47_spill] sm:$0xff] %v5876_v17 }
 0x155   :  { %7530 = vst [vmem:[#allocation46_spill] sm:$0xff] %v5874_v16  ;;  %7532 = vst [vmem:[#allocation48_spill] sm:$0xff] %v5878_v19 }
 0x157   :  { %v982_v20 = vpop.f32.mrb[8].mxu0  ;;  %v1045_v23 = vpop.f32.mrb[8].mxu1 }
 0x158   :  { %v5880_v21 = vadd.f32 %v982_v20, %v751_v35  ;;  %v984_v22 = vpop.f32.mrb[9].mxu0  ;;  %v5884_v26 = vadd.f32 %v1045_v23, %v759_v37  ;;  %v1047_v27 = vpop.f32.mrb[9].mxu1 }
 0x159   :  { %v5882_v24 = vadd.f32 %v984_v22, %v755_v41  ;;  %v986_v25 = vpop.f32.mrb[10].mxu0  ;;  %v5888_v31 = vadd.f32 %v1047_v27, %v763_v40  ;;  %v1049_v42 = vpop.f32.mrb[10].mxu1 }
 0x15a   :  { %7533 = vst [vmem:[#allocation49_spill] sm:$0xff] %v5880_v21  ;;  %7535 = vst [vmem:[#allocation51_spill] sm:$0xff] %v5884_v26  ;;  %v5886_v28 = vadd.f32 %v986_v25, %v751_v35  ;;  %v988_v29 = vpop.f32.mrb[11].mxu0  ;;  %v5892_v46 = vadd.f32 %v1049_v42, %v759_v37  ;;  %v1051_v1 = vpop.f32.mrb[11].mxu1 }
 0x15b   :  { %7534 = vst [vmem:[#allocation50_spill] sm:$0xff] %v5882_v24  ;;  %7537 = vst [vmem:[#allocation53_spill] sm:$0xff] %v5888_v31  ;;  %v5890_v45 = vadd.f32 %v988_v29, %v755_v41  ;;  %v5894_v4 = vadd.f32 %v1051_v1, %v763_v40 }
 0x15c   :  { %7536 = vst [vmem:[#allocation52_spill] sm:$0xff] %v5886_v28  ;;  %7539 = vst [vmem:[#allocation55_spill] sm:$0xff] %v5892_v46 }
 0x15d   :  { %7538 = vst [vmem:[#allocation54_spill] sm:$0xff] %v5890_v45  ;;  %7540 = vst [vmem:[#allocation56_spill] sm:$0xff] %v5894_v4 }
 0x167   :  { %v1309_v11 = vpop.f32.mrb[12].mxu0  ;;  %v1350_v18 = vpop.f32.mrb[12].mxu1 }
 0x168   :  { %v1357_v15 = vadd.f32 %v1309_v11, %v963_v6  ;;  %v1311_v20 = vpop.f32.mrb[13].mxu0  ;;  %v1359_v22 = vadd.f32 %v1350_v18, %v1026_v9  ;;  %v1352_v25 = vpop.f32.mrb[13].mxu1 }
 0x169   :  { %v1358_v23 = vadd.f32 %v1311_v20, %v965_v7  ;;  %v1313_v27 = vpop.f32.mrb[14].mxu0  ;;  %v1360_v29 = vadd.f32 %v1352_v25, %v1028_v13  ;;  %v1354_v42 = vpop.f32.mrb[14].mxu1 }
 0x16a   :  { %v4393_v2 = vmul.f32 -1.442695, %v1357_v15  ;;  %v1314_v0 = vpop.f32.mrb[15].mxu0  ;;  %v1355_v63 = vpop.f32.mrb[15].mxu1 }
 0x16b   :  { %v4394_v56 = vmul.f32 -1.442695, %v1358_v23  ;;  %v4395_v35 = vmul.f32 -1.442695, %v1360_v29 }
 0x16c   :  { %4764 = vpow2.f32 %v4393_v2 }
 0x16d   :  { %4766 = vpow2.f32 %v4394_v56 }
 0x16e   :  { %4768 = vpow2.f32 %v4395_v35 }
 0x16f   :  { %4770 = vtanh.f32 %v1359_v22 }
 0x176   :  { %v4765_v36 = vpop.eup %4764 }
 0x177   :  { %v4767_v37 = vpop.eup %4766  ;;  %v1367_v38 = vadd.f32 1.0, %v4765_v36 }
 0x178   :  { %v1368_v39 = vadd.f32 1.0, %v4767_v37  ;;  %v4769_v40 = vpop.eup %4768 }
 0x179   :  { %4772 = vrcp.f32 %v1367_v38  ;;  %v4771_v41 = vpop.eup %4770  ;;  %v1377_v0 = vadd.f32 1.0, %v4769_v40 }
 0x17a   :  { %4774 = vrcp.f32 %v1368_v39 }
 0x17b   :  { %4776 = vrcp.f32 %v1377_v0 }
 0x183   :  { %v4773_v43 = vpop.eup %4772 }
 0x184   :  { %v4775_v1 = vpop.eup %4774  ;;  %v1381_v6 = vmul.f32 %v4773_v43, %v4771_v41 }
 0x185   :  { %v1380_v7 = vmul.f32 0.0, %v4775_v1  ;;  %v4777_v56 = vpop.eup %4776 }
 0x187   :  { %v5896_v9 = vadd.f32 %v1381_v6, %v1380_v7 }
 0x189   :  { %7541 = vst [vmem:[#allocation57_spill] sm:$0xff] %v5896_v9  ;;  %4778 = vtanh.f32 %v5896_v9 }
 0x193   :  { %v4779_v63 = vpop.eup %4778 }
 0x194   :  { %v1384_v2 = vmul.f32 %v4779_v63, %v4777_v56 }
 0x196   :  { %v5899_v11 = vpack.c.bf16 %v1384_v2, %v1384_v2 }
 0x198   :  { %1386 = vst [vmem:[#allocation3] sm:$0xf] %v5899_v11 }
 0x199   :  { %5134 = dma.done.wait [#allocation7], 8192 }
 0x19a   :  { %5135 = vsyncadd [#allocation7], 4294959104  ;;  %v5902_v13 = vld [vmem:[#allocation4 + $0x8] sm:$0xff]  ;;  %v5904_v15 = vld [vmem:[#allocation4] sm:$0xff] }
 0x19b   :  { %v5906_v18 = vld [vmem:[#allocation4 + $0x28] sm:$0xff]  ;;  %1485 = vmatprep.subr.bf16.mxu0 %v5902_v13  ;;  %v5910_v20 = vld [vmem:[#allocation4 + $0x18] sm:$0xff]  ;;  %v5913_v22 = vld [vmem:[#allocation4 + $0x20] sm:$0xff] }
 0x19c   :  { %1486 = vmatpush1.bf16.msra.mxu0 %v5904_v15  ;;  %1526 = vmatprep.subr.bf16.mxu1 %v5910_v20  ;;  %v5916_v23 = vld [vmem:[#allocation4 + $0x10] sm:$0xff]  ;;  %v5918_v25 = vld [vmem:[#allocation4 + $0x38] sm:$0xff]  ;;  %v5920_v27 = vld [vmem:[#allocation4 + $0x48] sm:$0xff] }
 0x19d   :  { %1487 = vmatprep.subr.bf16.mxu0 %v5906_v18  ;;  %1527 = vmatpush1.bf16.msra.mxu1 %v5916_v23  ;;  %v5924_v29 = vld [vmem:[#allocation4 + $0x30] sm:$0xff]  ;;  %v5927_v42 = vld [vmem:[#allocation4 + $0x58] sm:$0xff]  ;;  %v5930_v35 = vld [vmem:[#allocation4 + $0x40] sm:$0xff] }
 0x19e   :  { %1528 = vmatprep.subr.bf16.mxu1 %v5918_v25  ;;  %v5932_v36 = vld [vmem:[#allocation4 + $0x68] sm:$0xff]  ;;  %v5936_v37 = vld [vmem:[#allocation4 + $0x50] sm:$0xff]  ;;  %v5939_v38 = vld [vmem:[#allocation4 + $0x78] sm:$0xff] }
 0x19f   :  { %v5942_v39 = vld [vmem:[#allocation4 + $0x60] sm:$0xff]  ;;  %v5944_v40 = vld [vmem:[#allocation4 + $0x88] sm:$0xff]  ;;  %v5948_v41 = vld [vmem:[#allocation4 + $0x70] sm:$0xff] }
 0x1a0   :  { %1488 = vmatpush1.bf16.msra.mxu0 %v5913_v22  ;;  %v5951_v43 = vld [vmem:[#allocation4 + $0x98] sm:$0xff]  ;;  %v5954_v1 = vld [vmem:[#allocation4 + $0x80] sm:$0xff]  ;;  %v5956_v6 = vld [vmem:[#allocation4 + $0xa8] sm:$0xff] }
 0x1a1   :  { %1489 = vmatprep.subr.bf16.mxu0 %v5920_v27  ;;  %1529 = vmatpush1.bf16.msra.mxu1 %v5924_v29  ;;  %v5960_v0 = vld [vmem:[#allocation4 + $0x90] sm:$0xff]  ;;  %v5963_v7 = vld [vmem:[#allocation4 + $0xb8] sm:$0xff]  ;;  %v5966_v56 = vld [vmem:[#allocation4 + $0xa0] sm:$0xff] }
 0x1a2   :  { %1530 = vmatprep.subr.bf16.mxu1 %v5927_v42  ;;  %v5968_v63 = vld [vmem:[#allocation3] sm:$0xff]  ;;  %v5970_v2 = vld [vmem:[#allocation4 + $0xc8] sm:$0xff]  ;;  %v5976_v62 = vld [vmem:[#allocation4 + $0xb0] sm:$0xff] }
 0x1a3   :  { %v4397_v55 = vcombine.high %v5968_v63, %v5968_v63  ;;  %v5979_v54 = vld [vmem:[#allocation4 + $0xd8] sm:$0xff]  ;;  %v5982_v61 = vld [vmem:[#allocation4 + $0xc0] sm:$0xff]  ;;  %v5984_v53 = vld [vmem:[#allocation4 + $0xe8] sm:$0xff] }
 0x1a4   :  { %1490 = vmatpush1.bf16.msra.mxu0 %v5930_v35  ;;  %v5988_v60 = vld [vmem:[#allocation4 + $0xd0] sm:$0xff]  ;;  %v5991_v52 = vld [vmem:[#allocation4 + $0xf8] sm:$0xff]  ;;  %v5994_v59 = vld [vmem:[#allocation4 + $0xe0] sm:$0xff] }
 0x1a5   :  { %1491 = vmatprep.subr.bf16.mxu0 %v5932_v36  ;;  %1531 = vmatpush1.bf16.msra.mxu1 %v5936_v37  ;;  %v5996_v51 = vld [vmem:[#allocation4 + $0x108] sm:$0xff]  ;;  %v6003_v58 = vld [vmem:[#allocation4 + $0x118] sm:$0xff]  ;;  %v6006_v50 = vld [vmem:[#allocation4 + $0x100] sm:$0xff] }
 0x1a6   :  { %1532 = vmatprep.subr.bf16.mxu1 %v5939_v38  ;;  %1517 = vmatprep.mubr.bf16.mxu0 %v4397_v55  ;;  %v6008_v57 = vld [vmem:[#allocation4 + $0x128] sm:$0xff]  ;;  %v6012_v49 = vld [vmem:[#allocation4 + $0x110] sm:$0xff]  ;;  %v6015_v46 = vld [vmem:[#allocation4 + $0x138] sm:$0xff] }
 0x1a7   :  { %1558 = vmatprep.mubr.bf16.mxu1 %v4397_v55  ;;  %v6000_v55 = vld [vmem:[#allocation4 + $0xf0] sm:$0xff]  ;;  %v6018_v4 = vld [vmem:[#allocation4 + $0x120] sm:$0xff]  ;;  %v6020_v45 = vld [vmem:[#allocation4 + $0x148] sm:$0xff] }
 0x1a8   :  { %1492 = vmatpush1.bf16.msra.mxu0 %v5942_v39  ;;  %v6024_v28 = vld [vmem:[#allocation4 + $0x130] sm:$0xff]  ;;  %v6027_v26 = vld [vmem:[#allocation4 + $0x158] sm:$0xff]  ;;  %v6030_v31 = vld [vmem:[#allocation4 + $0x140] sm:$0xff] }
 0x1a9   :  { %1493 = vmatprep.subr.bf16.mxu0 %v5944_v40  ;;  %1533 = vmatpush1.bf16.msra.mxu1 %v5948_v41  ;;  %v6032_v24 = vld [vmem:[#allocation4 + $0x168] sm:$0xff]  ;;  %v6035_v21 = vld [vmem:[#allocation4 + $0x160] sm:$0xff]  ;;  %v6038_v17 = vld [vmem:[#allocation4 + $0x150] sm:$0xff] }
 0x1aa   :  { %1534 = vmatprep.subr.bf16.mxu1 %v5951_v43  ;;  %v6041_v19 = vld [vmem:[#allocation4 + $0x188] sm:$0xff]  ;;  %v6043_v16 = vld [vmem:[#allocation4 + $0x178] sm:$0xff]  ;;  %v6046_v12 = vld [vmem:[#allocation4 + $0x170] sm:$0xff] }
 0x1ab   :  { %v6049_v10 = vld [vmem:[#allocation4 + $0x198] sm:$0xff]  ;;  %v6051_v14 = vld [vmem:[#allocation4 + $0x180] sm:$0xff]  ;;  %v6055_v8 = vld [vmem:[#allocation4 + $0x1a8] sm:$0xff] }
 0x1ac   :  { %1494 = vmatpush1.bf16.msra.mxu0 %v5954_v1  ;;  %7542 = vst [vmem:[#allocation58_spill] sm:$0xff] %v6055_v8  ;;  %v6058_v5 = vld [vmem:[#allocation4 + $0x190] sm:$0xff]  ;;  %v6061_v9 = vld [vmem:[#allocation4 + $0x1b8] sm:$0xff]  ;;  %v6063_v48 = vld [vmem:[#allocation4 + $0x1a0] sm:$0xff] }
 0x1ad   :  { %1495 = vmatprep.subr.bf16.mxu0 %v5956_v6  ;;  %1535 = vmatpush1.bf16.msra.mxu1 %v5960_v0  ;;  %7543 = vst [vmem:[#allocation59_spill] sm:$0xff] %v6058_v5  ;;  %7544 = vst [vmem:[#allocation60_spill] sm:$0xff] %v6063_v48  ;;  %v6067_v3 = vld [vmem:[#allocation4 + $0x1c8] sm:$0xff]  ;;  %v6070_v47 = vld [vmem:[#allocation4 + $0x1b0] sm:$0xff] }
 0x1ae   :  { %1536 = vmatprep.subr.bf16.mxu1 %v5963_v7  ;;  %7545 = vst [vmem:[#allocation61_spill] sm:$0xff] %v6067_v3  ;;  %7546 = vst [vmem:[#allocation62_spill] sm:$0xff] %v6070_v47  ;;  %v6073_v44 = vld [vmem:[#allocation4 + $0x1d8] sm:$0xff]  ;;  %v6075_v32 = vld [vmem:[#allocation4 + $0x1c0] sm:$0xff] }
 0x1af   :  { %7547 = vst [vmem:[#allocation63_spill] sm:$0xff] %v6073_v44  ;;  %v6079_v33 = vld [vmem:[#allocation4 + $0x1e8] sm:$0xff]  ;;  %v6082_v34 = vld [vmem:[#allocation4 + $0x1d0] sm:$0xff]  ;;  %v6085_v30 = vld [vmem:[#allocation4 + $0x1f8] sm:$0xff] }
 0x1b0   :  { %1496 = vmatpush1.bf16.msra.mxu0 %v5966_v56  ;;  %7548 = vst [vmem:[#allocation64_spill] sm:$0xff] %v6079_v33  ;;  %7549 = vst [vmem:[#allocation65_spill] sm:$0xff] %v6082_v34 }
 0x1b1   :  { %1497 = vmatprep.subr.bf16.mxu0 %v5970_v2  ;;  %1537 = vmatpush1.bf16.msra.mxu1 %v5976_v62 }
 0x1b2   :  { %1538 = vmatprep.subr.bf16.mxu1 %v5979_v54 }
 0x1b4   :  { %1498 = vmatpush1.bf16.msra.mxu0 %v5982_v61 }
 0x1b5   :  { %1499 = vmatprep.subr.bf16.mxu0 %v5984_v53  ;;  %1539 = vmatpush1.bf16.msra.mxu1 %v5988_v60 }
 0x1b6   :  { %1540 = vmatprep.subr.bf16.mxu1 %v5991_v52 }
 0x1b8   :  { %1500 = vmatpush1.bf16.msra.mxu0 %v5994_v59 }
 0x1b9   :  { %1501 = vmatprep.subr.bf16.mxu0 %v5996_v51  ;;  %1541 = vmatpush1.bf16.msra.mxu1 %v6000_v55 }
 0x1ba   :  { %1542 = vmatprep.subr.bf16.mxu1 %v6003_v58 }
 0x1bc   :  { %1502 = vmatpush1.bf16.msra.mxu0 %v6006_v50 }
 0x1bd   :  { %1503 = vmatprep.subr.bf16.mxu0 %v6008_v57  ;;  %1543 = vmatpush1.bf16.msra.mxu1 %v6012_v49 }
 0x1be   :  { %1544 = vmatprep.subr.bf16.mxu1 %v6015_v46 }
 0x1c0   :  { %1504 = vmatpush1.bf16.msra.mxu0 %v6018_v4 }
 0x1c1   :  { %1505 = vmatprep.subr.bf16.mxu0 %v6020_v45  ;;  %1545 = vmatpush1.bf16.msra.mxu1 %v6024_v28 }
 0x1c2   :  { %1546 = vmatprep.subr.bf16.mxu1 %v6027_v26 }
 0x1c4   :  { %1506 = vmatpush1.bf16.msra.mxu0 %v6030_v31 }
 0x1c5   :  { %1507 = vmatprep.subr.bf16.mxu0 %v6032_v24  ;;  %1547 = vmatpush1.bf16.msra.mxu1 %v6038_v17 }
 0x1c6   :  { %1548 = vmatprep.subr.bf16.mxu1 %v6043_v16 }
 0x1c8   :  { %1508 = vmatpush1.bf16.msra.mxu0 %v6035_v21 }
 0x1c9   :  { %1509 = vmatprep.subr.bf16.mxu0 %v6041_v19  ;;  %1549 = vmatpush1.bf16.msra.mxu1 %v6046_v12 }
 0x1ca   :  { %1550 = vmatprep.subr.bf16.mxu1 %v6049_v10 }
 0x1cc   :  { %1510 = vmatpush1.bf16.msra.mxu0 %v6051_v14 }
 0x1cd   :  { %1511 = vmatprep.subr.bf16.mxu0 %v6055_v8  ;;  %1551 = vmatpush1.bf16.msra.mxu1 %v6058_v5  ;;  %v6087_v8 = vld [vmem:[#allocation4 + $0x1e0] sm:$0xff]  ;;  %v6092_v5 = vld [vmem:[%s7377_s2 + $0x4] ss:$16 sps:$4 sm:$0xff]  }
 0x1ce   :  { %1552 = vmatprep.subr.bf16.mxu1 %v6061_v9  ;;  %7550 = vst [vmem:[#allocation66_spill] sm:$0xff] %v6092_v5 }
 0x1d0   :  { %1512 = vmatpush1.bf16.msra.mxu0 %v6063_v48  ;;  %v6107_v48 = vld [vmem:[%s7377_s2] ss:$16 sps:$4 sm:$0xff]  }
 0x1d1   :  { %1513 = vmatprep.subr.bf16.mxu0 %v6067_v3  ;;  %1553 = vmatpush1.bf16.msra.mxu1 %v6070_v47  ;;  %v6097_v3 = vld [vmem:[#allocation4 + $0x1f0] sm:$0xff]  ;;  %7553 = vst [vmem:[#allocation69_spill] sm:$0xff] %v6107_v48 }
 0x1d2   :  { %1554 = vmatprep.subr.bf16.mxu1 %v6073_v44  ;;  %7551 = vst [vmem:[#allocation67_spill] sm:$0xff] %v6097_v3  ;;  %v6102_v47 = vld [vmem:[%s7377_s2 + $0xc] ss:$16 sps:$4 sm:$0xff]   ;;  %v4396_v44 = vcombine.low %v5968_v63, %v5968_v63 }
 0x1d3   :  { %7552 = vst [vmem:[#allocation68_spill] sm:$0xff] %v6102_v47  ;;  %v6130_v63 = vld [vmem:[%s7377_s2 + $0x2c] ss:$16 sps:$4 sm:$0xff]  }
 0x1d4   :  { %1514 = vmatpush1.bf16.msra.mxu0 %v6075_v32  ;;  %7555 = vst [vmem:[#allocation71_spill] sm:$0xff] %v6130_v63 }
 0x1d5   :  { %1515 = vmatprep.subr.bf16.mxu0 %v6079_v33  ;;  %1555 = vmatpush1.bf16.msra.mxu1 %v6082_v34  ;;  %v6115_v33 = vld [vmem:[%s7377_s2 + $0x24] ss:$16 sps:$4 sm:$0xff]   ;;  %v6124_v34 = vld [vmem:[%s7377_s2 + $0x8] ss:$16 sps:$4 sm:$0xff]  }
 0x1d6   :  { %7554 = vst [vmem:[#allocation70_spill] sm:$0xff] %v6115_v33  ;;  %1556 = vmatprep.subr.bf16.mxu1 %v6085_v30 }
 0x1d8   :  { %1516 = vmatpush1.bf16.msra.mxu0 %v6087_v8 }
 0x1d9   :  { %1789 = vmatprep.subr.bf16.mxu0 %v6092_v5  ;;  %1557 = vmatpush1.bf16.msra.mxu1 %v6097_v3  ;;  %v6136_v5 = vld [vmem:[%s7377_s2 + $0x20] ss:$16 sps:$4 sm:$0xff]   ;;  %v7557_v3 = vmov 0  }
 0x1da   :  { %1830 = vmatprep.subr.bf16.mxu1 %v6102_v47  ;;  %7556 = vst [vmem:[#allocation72_spill] sm:$0xff] %v6136_v5  ;;  %v6143_v47 = vld [vmem:[%s7377_s2 + $0x44] ss:$16 sps:$4 sm:$0xff]  }
 0x1db   :  { %1518 = vmatmul.mubr.bf16.vlgmr.msra.gmra.mrb[16].mxu0 %v4396_v44  ;;  %7558 = vst [vmem:[#allocation73_spill] sm:$0xff] %v6143_v47 }
 0x1dc   :  { %1790 = vmatpush1.bf16.msra.mxu0 %v6107_v48  ;;  %1821 = vmatprep.mubr.bf16.mxu0 %v7557_v3  ;;  %v6149_v48 = vld [vmem:[%s7377_s2 + $0x28] ss:$16 sps:$4 sm:$0xff]  }
 0x1dd   :  { %1791 = vmatprep.subr.bf16.mxu0 %v6115_v33  ;;  %1559 = vmatmul.mubr.bf16.vlgmr.msra.gmra.mrb[16].mxu1 %v4396_v44  ;;  %7559 = vst [vmem:[#allocation74_spill] sm:$0xff] %v6149_v48  ;;  %v6156_v33 = vld [vmem:[%s7377_s2 + $0x4c] ss:$16 sps:$4 sm:$0xff]   ;;  %v6162_v44 = vld [vmem:[%s7377_s2 + $0x40] ss:$16 sps:$4 sm:$0xff]  }
 0x1de   :  { %1831 = vmatpush1.bf16.msra.mxu1 %v6124_v34  ;;  %1862 = vmatprep.mubr.bf16.mxu1 %v7557_v3  ;;  %7560 = vst [vmem:[#allocation75_spill] sm:$0xff] %v6156_v33  ;;  %7561 = vst [vmem:[#allocation76_spill] sm:$0xff] %v6162_v44  ;;  %v6168_v3 = vld [vmem:[%s7377_s2 + $0x64] ss:$16 sps:$4 sm:$0xff]  }
 0x1df   :  { %1832 = vmatprep.subr.bf16.mxu1 %v6130_v63  ;;  %7562 = vst [vmem:[#allocation77_spill] sm:$0xff] %v6168_v3  ;;  %v6174_v63 = vld [vmem:[%s7377_s2 + $0x48] ss:$16 sps:$4 sm:$0xff]  }
 0x1e0   :  { %1792 = vmatpush1.bf16.msra.mxu0 %v6136_v5  ;;  %7563 = vst [vmem:[#allocation78_spill] sm:$0xff] %v6174_v63  ;;  %v6180_v5 = vld [vmem:[%s7377_s2 + $0x6c] ss:$16 sps:$4 sm:$0xff]  }
 0x1e1   :  { %1793 = vmatprep.subr.bf16.mxu0 %v6143_v47  ;;  %7564 = vst [vmem:[#allocation79_spill] sm:$0xff] %v6180_v5  ;;  %v6186_v47 = vld [vmem:[%s7377_s2 + $0x60] ss:$16 sps:$4 sm:$0xff]  }
 0x1e2   :  { %1833 = vmatpush1.bf16.msra.mxu1 %v6149_v48  ;;  %7565 = vst [vmem:[#allocation80_spill] sm:$0xff] %v6186_v47  ;;  %v6192_v48 = vld [vmem:[%s7377_s2 + $0x84] ss:$16 sps:$4 sm:$0xff]  }
 0x1e3   :  { %1834 = vmatprep.subr.bf16.mxu1 %v6156_v33  ;;  %7566 = vst [vmem:[#allocation81_spill] sm:$0xff] %v6192_v48  ;;  %v6198_v33 = vld [vmem:[%s7377_s2 + $0x68] ss:$16 sps:$4 sm:$0xff]  }
 0x1e4   :  { %1794 = vmatpush1.bf16.msra.mxu0 %v6162_v44  ;;  %7567 = vst [vmem:[#allocation82_spill] sm:$0xff] %v6198_v33  ;;  %v6204_v44 = vld [vmem:[%s7377_s2 + $0x8c] ss:$16 sps:$4 sm:$0xff]  }
 0x1e5   :  { %1795 = vmatprep.subr.bf16.mxu0 %v6168_v3  ;;  %7568 = vst [vmem:[#allocation83_spill] sm:$0xff] %v6204_v44  ;;  %v6210_v3 = vld [vmem:[%s7377_s2 + $0x80] ss:$16 sps:$4 sm:$0xff]  }
 0x1e6   :  { %1835 = vmatpush1.bf16.msra.mxu1 %v6174_v63  ;;  %7569 = vst [vmem:[#allocation84_spill] sm:$0xff] %v6210_v3  ;;  %v6216_v63 = vld [vmem:[%s7377_s2 + $0xa4] ss:$16 sps:$4 sm:$0xff]  }
 0x1e7   :  { %1836 = vmatprep.subr.bf16.mxu1 %v6180_v5  ;;  %7570 = vst [vmem:[#allocation85_spill] sm:$0xff] %v6216_v63  ;;  %v6222_v5 = vld [vmem:[%s7377_s2 + $0x88] ss:$16 sps:$4 sm:$0xff]  }
 0x1e8   :  { %1796 = vmatpush1.bf16.msra.mxu0 %v6186_v47  ;;  %7571 = vst [vmem:[#allocation86_spill] sm:$0xff] %v6222_v5  ;;  %v6228_v47 = vld [vmem:[%s7377_s2 + $0xac] ss:$16 sps:$4 sm:$0xff]  }
 0x1e9   :  { %1797 = vmatprep.subr.bf16.mxu0 %v6192_v48  ;;  %7572 = vst [vmem:[#allocation87_spill] sm:$0xff] %v6228_v47  ;;  %v6234_v48 = vld [vmem:[%s7377_s2 + $0xa0] ss:$16 sps:$4 sm:$0xff]  }
 0x1ea   :  { %1837 = vmatpush1.bf16.msra.mxu1 %v6198_v33  ;;  %7573 = vst [vmem:[#allocation88_spill] sm:$0xff] %v6234_v48  ;;  %v6240_v33 = vld [vmem:[%s7377_s2 + $0xc4] ss:$16 sps:$4 sm:$0xff]  }
 0x1eb   :  { %1838 = vmatprep.subr.bf16.mxu1 %v6204_v44  ;;  %7574 = vst [vmem:[#allocation89_spill] sm:$0xff] %v6240_v33  ;;  %v6246_v44 = vld [vmem:[%s7377_s2 + $0xa8] ss:$16 sps:$4 sm:$0xff]  }
 0x1ec   :  { %1798 = vmatpush1.bf16.msra.mxu0 %v6210_v3  ;;  %v6252_v3 = vld [vmem:[%s7377_s2 + $0xcc] ss:$16 sps:$4 sm:$0xff]  }
 0x1ed   :  { %1799 = vmatprep.subr.bf16.mxu0 %v6216_v63  ;;  %7575 = vst [vmem:[#allocation90_spill] sm:$0xff] %v6252_v3  ;;  %v6258_v63 = vld [vmem:[%s7377_s2 + $0xc0] ss:$16 sps:$4 sm:$0xff]  }
 0x1ee   :  { %1839 = vmatpush1.bf16.msra.mxu1 %v6222_v5  ;;  %v6264_v5 = vld [vmem:[%s7377_s2 + $0xe4] ss:$16 sps:$4 sm:$0xff]  }
 0x1ef   :  { %1840 = vmatprep.subr.bf16.mxu1 %v6228_v47  ;;  %v6270_v47 = vld [vmem:[%s7377_s2 + $0xc8] ss:$16 sps:$4 sm:$0xff]  }
 0x1f0   :  { %1800 = vmatpush1.bf16.msra.mxu0 %v6234_v48  ;;  %v6276_v48 = vld [vmem:[%s7377_s2 + $0xec] ss:$16 sps:$4 sm:$0xff]  }
 0x1f1   :  { %1801 = vmatprep.subr.bf16.mxu0 %v6240_v33  ;;  %v6282_v33 = vld [vmem:[%s7377_s2 + $0xe0] ss:$16 sps:$4 sm:$0xff]  }
 0x1f2   :  { %1841 = vmatpush1.bf16.msra.mxu1 %v6246_v44 }
 0x1f3   :  { %1842 = vmatprep.subr.bf16.mxu1 %v6252_v3  ;;  %v6289_v3 = vld [vmem:[%s7377_s2 + $0xe8] ss:$16 sps:$4 sm:$0xff]  }
 0x1f4   :  { %1802 = vmatpush1.bf16.msra.mxu0 %v6258_v63 }
 0x1f5   :  { %1803 = vmatprep.subr.bf16.mxu0 %v6264_v5 }
 0x1f6   :  { %1843 = vmatpush1.bf16.msra.mxu1 %v6270_v47 }
 0x1f7   :  { %1844 = vmatprep.subr.bf16.mxu1 %v6276_v48 }
 0x1f8   :  { %1804 = vmatpush1.bf16.msra.mxu0 %v6282_v33 }
 0x1f9   :  { %1995 = vmatprep.subr.bf16.mxu0 %v5902_v13  ;;  %v7590_v13 = vld [vmem:[#allocation34_spill] sm:$0xff] }
 0x1fa   :  { %1845 = vmatpush1.bf16.msra.mxu1 %v6289_v3 }
 0x1fb   :  { %1822 = vmatmul.mubr.bf16.vlgmr.msra.gmra.mrb[20].mxu0 %v5899_v11  ;;  %2036 = vmatprep.subr.bf16.mxu1 %v5910_v20 }
 0x1fc   :  { %1996 = vmatpush1.bf16.msra.mxu0 %v5904_v15 }
 0x1fd   :  { %1863 = vmatmul.mubr.bf16.vlgmr.msra.gmra.mrb[20].mxu1 %v5899_v11  ;;  %1997 = vmatprep.subr.bf16.mxu0 %v5906_v18 }
 0x1fe   :  { %2037 = vmatpush1.bf16.msra.mxu1 %v5916_v23 }
 0x1ff   :  { %2038 = vmatprep.subr.bf16.mxu1 %v5918_v25 }
 0x200   :  { %1998 = vmatpush1.bf16.msra.mxu0 %v5913_v22 }
 0x201   :  { %1999 = vmatprep.subr.bf16.mxu0 %v5920_v27 }
 0x202   :  { %2039 = vmatpush1.bf16.msra.mxu1 %v5924_v29 }
 0x203   :  { %2040 = vmatprep.subr.bf16.mxu1 %v5927_v42 }
 0x204   :  { %2000 = vmatpush1.bf16.msra.mxu0 %v5930_v35 }
 0x205   :  { %2001 = vmatprep.subr.bf16.mxu0 %v5932_v36 }
 0x206   :  { %2041 = vmatpush1.bf16.msra.mxu1 %v5936_v37 }
 0x207   :  { %2042 = vmatprep.subr.bf16.mxu1 %v5939_v38 }
 0x208   :  { %2002 = vmatpush1.bf16.msra.mxu0 %v5942_v39 }
 0x209   :  { %2003 = vmatprep.subr.bf16.mxu0 %v5944_v40 }
 0x20a   :  { %2043 = vmatpush1.bf16.msra.mxu1 %v5948_v41 }
 0x20b   :  { %2044 = vmatprep.subr.bf16.mxu1 %v5951_v43  ;;  %v7591_v43 = vld [vmem:[#allocation37_spill] sm:$0xff] }
 0x20c   :  { %2004 = vmatpush1.bf16.msra.mxu0 %v5954_v1 }
 0x20d   :  { %2005 = vmatprep.subr.bf16.mxu0 %v5956_v6 }
 0x20e   :  { %2045 = vmatpush1.bf16.msra.mxu1 %v5960_v0  ;;  %v7592_v0 = vld [vmem:[#allocation38_spill] sm:$0xff] }
 0x20f   :  { %2046 = vmatprep.subr.bf16.mxu1 %v5963_v7 }
 0x210   :  { %2006 = vmatpush1.bf16.msra.mxu0 %v5966_v56 }
 0x211   :  { %2007 = vmatprep.subr.bf16.mxu0 %v5970_v2 }
 0x212   :  { %2047 = vmatpush1.bf16.msra.mxu1 %v5976_v62  ;;  %v1456_v62 = vld [vmem:[%s7380_s5] sm:$0xf] }
 0x213   :  { %2048 = vmatprep.subr.bf16.mxu1 %v5979_v54  ;;  %v7581_v54 = vld [vmem:[#allocation63_spill] sm:$0xff]  ;;  %v1469_v15 = vrot.slane %v1456_v62, %v7590_v13 }
 0x214   :  { %2008 = vmatpush1.bf16.msra.mxu0 %v5982_v61  ;;  %v7586_v61 = vld [vmem:[#allocation68_spill] sm:$0xff] }
 0x215   :  { %2009 = vmatprep.subr.bf16.mxu0 %v5984_v53  ;;  %v7580_v53 = vld [vmem:[#allocation62_spill] sm:$0xff] }
 0x216   :  { %2049 = vmatpush1.bf16.msra.mxu1 %v5988_v60  ;;  %v7585_v60 = vld [vmem:[#allocation67_spill] sm:$0xff] }
 0x217   :  { %2050 = vmatprep.subr.bf16.mxu1 %v5991_v52  ;;  %v7579_v52 = vld [vmem:[#allocation61_spill] sm:$0xff] }
 0x218   :  { %2010 = vmatpush1.bf16.msra.mxu0 %v5994_v59  ;;  %v7584_v59 = vld [vmem:[#allocation66_spill] sm:$0xff] }
 0x219   :  { %2011 = vmatprep.subr.bf16.mxu0 %v5996_v51  ;;  %v7578_v51 = vld [vmem:[#allocation60_spill] sm:$0xff] }
 0x21a   :  { %2051 = vmatpush1.bf16.msra.mxu1 %v6000_v55 }
 0x21b   :  { %2052 = vmatprep.subr.bf16.mxu1 %v6003_v58  ;;  %v7583_v58 = vld [vmem:[#allocation65_spill] sm:$0xff] }
 0x21c   :  { %2012 = vmatpush1.bf16.msra.mxu0 %v6006_v50  ;;  %v7577_v50 = vld [vmem:[#allocation59_spill] sm:$0xff] }
 0x21d   :  { %2013 = vmatprep.subr.bf16.mxu0 %v6008_v57  ;;  %v7582_v57 = vld [vmem:[#allocation64_spill] sm:$0xff] }
 0x21e   :  { %2053 = vmatpush1.bf16.msra.mxu1 %v6012_v49  ;;  %v7576_v49 = vld [vmem:[#allocation58_spill] sm:$0xff] }
 0x21f   :  { %2054 = vmatprep.subr.bf16.mxu1 %v6015_v46 }
 0x220   :  { %2014 = vmatpush1.bf16.msra.mxu0 %v6018_v4 }
 0x221   :  { %2015 = vmatprep.subr.bf16.mxu0 %v6020_v45 }
 0x222   :  { %2055 = vmatpush1.bf16.msra.mxu1 %v6024_v28  ;;  %v7589_v28 = vld [vmem:[#allocation35_spill] sm:$0xff] }
 0x223   :  { %2056 = vmatprep.subr.bf16.mxu1 %v6027_v26 }
 0x224   :  { %2016 = vmatpush1.bf16.msra.mxu0 %v6030_v31  ;;  %v1473_v31 = vrot.slane %v1456_v62, %v7589_v28 }
 0x225   :  { %2017 = vmatprep.subr.bf16.mxu0 %v6032_v24 }
 0x226   :  { %2057 = vmatpush1.bf16.msra.mxu1 %v6038_v17 }
 0x227   :  { %2058 = vmatprep.subr.bf16.mxu1 %v6043_v16 }
 0x228   :  { %2018 = vmatpush1.bf16.msra.mxu0 %v6035_v21 }
 0x229   :  { %2019 = vmatprep.subr.bf16.mxu0 %v6041_v19 }
 0x22a   :  { %2059 = vmatpush1.bf16.msra.mxu1 %v6046_v12  ;;  %v7588_v12 = vld [vmem:[#allocation36_spill] sm:$0xff] }
 0x22b   :  { %2060 = vmatprep.subr.bf16.mxu1 %v6049_v10  ;;  %v7587_v10 = vld [vmem:[#allocation33_spill] sm:$0xff] }
 0x22c   :  { %2020 = vmatpush1.bf16.msra.mxu0 %v6051_v14  ;;  %v1465_v14 = vrot.slane %v1456_v62, %v7588_v12 }
 0x22d   :  { %2021 = vmatprep.subr.bf16.mxu0 %v7576_v49 }
 0x22e   :  { %2061 = vmatpush1.bf16.msra.mxu1 %v7577_v50 }
 0x22f   :  { %2062 = vmatprep.subr.bf16.mxu1 %v6061_v9 }
 0x230   :  { %2022 = vmatpush1.bf16.msra.mxu0 %v7578_v51 }
 0x231   :  { %2023 = vmatprep.subr.bf16.mxu0 %v7579_v52 }
 0x232   :  { %2063 = vmatpush1.bf16.msra.mxu1 %v7580_v53 }
 0x233   :  { %2064 = vmatprep.subr.bf16.mxu1 %v7581_v54  ;;  %v7593_v54 = vld [vmem:[#allocation40_spill] sm:$0xff] }
 0x234   :  { %2024 = vmatpush1.bf16.msra.mxu0 %v6075_v32  ;;  %v1461_v32 = vrot.slane %v1456_v62, %v7587_v10 }
 0x235   :  { %2025 = vmatprep.subr.bf16.mxu0 %v7582_v57 }
 0x236   :  { %2065 = vmatpush1.bf16.msra.mxu1 %v7583_v58 }
 0x237   :  { %2066 = vmatprep.subr.bf16.mxu1 %v6085_v30 }
 0x238   :  { %2026 = vmatpush1.bf16.msra.mxu0 %v6087_v8 }
 0x239   :  { %2299 = vmatprep.subr.bf16.mxu0 %v7584_v59 }
 0x23a   :  { %2067 = vmatpush1.bf16.msra.mxu1 %v7585_v60 }
 0x23b   :  { %2340 = vmatprep.subr.bf16.mxu1 %v7586_v61  ;;  %v7594_v61 = vld [vmem:[#allocation39_spill] sm:$0xff] }
 0x2ae   :  { %v1519_v16 = vpop.f32.mrb[16].mxu0 }
 0x2af   :  { %v1520_v17 = vadd.f32 %v1519_v16, %v1461_v32  ;;  %v1521_v19 = vpop.f32.mrb[17].mxu0 }
 0x2b0   :  { %v1522_v30 = vadd.f32 %v1521_v19, %v1465_v14  ;;  %v1523_v21 = vpop.f32.mrb[18].mxu0  ;;  %v1560_v8 = vpop.f32.mrb[16].mxu1 }
 0x2b1   :  { %v4398_v24 = vmul.f32 -1.442695, %v1520_v17  ;;  %v1524_v26 = vpop.f32.mrb[19].mxu0  ;;  %v1562_v45 = vpop.f32.mrb[17].mxu1  ;;  %v1561_v20 = vadd.f32 %v1560_v8, %v1469_v15 }
 0x2b2   :  { %v4399_v46 = vmul.f32 -1.442695, %v1522_v30  ;;  %v1564_v4 = vpop.f32.mrb[18].mxu1  ;;  %v1563_v11 = vadd.f32 %v1562_v45, %v1473_v31 }
 0x2b3   :  { %4936 = vpow2.f32 %v4398_v24  ;;  %v1565_v9 = vpop.f32.mrb[19].mxu1 }
 0x2b4   :  { %4938 = vpow2.f32 %v4399_v46  ;;  %v4400_v18 = vmul.f32 -1.442695, %v1563_v11  ;;  %v7595_v46 = vld [vmem:[#allocation57_spill] sm:$0xff] }
 0x2b6   :  { %4940 = vpow2.f32 %v4400_v18 }
 0x2b7   :  { %4942 = vtanh.f32 %v1561_v20 }
 0x2bd   :  { %v4937_v22 = vpop.eup %4936 }
 0x2be   :  { %v4939_v23 = vpop.eup %4938  ;;  %v1573_v25 = vadd.f32 1.0, %v4937_v22 }
 0x2bf   :  { %v1574_v27 = vadd.f32 1.0, %v4939_v23 }
 0x2c0   :  { %4944 = vrcp.f32 %v1573_v25  ;;  %v4941_v29 = vpop.eup %4940 }
 0x2c1   :  { %4946 = vrcp.f32 %v1574_v27  ;;  %v4943_v42 = vpop.eup %4942  ;;  %v1583_v36 = vadd.f32 1.0, %v4941_v29  ;;  %v7596_v27 = vld [vmem:[#allocation69_spill] sm:$0xff]  ;;  %v7597_v29 = vld [vmem:[#allocation70_spill] sm:$0xff] }
 0x2c3   :  { %4948 = vrcp.f32 %v1583_v36  ;;  %v7600_v36 = vld [vmem:[#allocation72_spill] sm:$0xff] }
 0x2ca   :  { %v4945_v35 = vpop.eup %4944 }
 0x2cb   :  { %v4947_v37 = vpop.eup %4946  ;;  %v1587_v38 = vmul.f32 %v4945_v35, %v4943_v42  ;;  %v7598_v42 = vld [vmem:[#allocation71_spill] sm:$0xff]  ;;  %v7599_v35 = vmov 0  }
 0x2cc   :  { %v1586_v39 = vmul.f32 0.0, %v4947_v37  ;;  %v7601_v37 = vld [vmem:[#allocation74_spill] sm:$0xff] }
 0x2cd   :  { %v4949_v58 = vpop.eup %4948 }
 0x2ce   :  { %v6369_v40 = vadd.f32 %v1587_v38, %v1586_v39  ;;  %v1823_v41 = vpop.f32.mrb[20].mxu0  ;;  %v7602_v38 = vld [vmem:[#allocation73_spill] sm:$0xff]  ;;  %v7603_v39 = vld [vmem:[#allocation75_spill] sm:$0xff] }
 0x2cf   :  { %v1871_v1 = vadd.f32 %v1823_v41, %v7591_v43  ;;  %v1825_v6 = vpop.f32.mrb[21].mxu0  ;;  %v7604_v41 = vld [vmem:[#allocation76_spill] sm:$0xff]  ;;  %v7605_v43 = vld [vmem:[#allocation78_spill] sm:$0xff] }
 0x2d0   :  { %4950 = vtanh.f32 %v6369_v40  ;;  %v1872_v7 = vadd.f32 %v1825_v6, %v7592_v0  ;;  %v1827_v56 = vpop.f32.mrb[22].mxu0  ;;  %v1864_v2 = vpop.f32.mrb[20].mxu1  ;;  %v7608_v6 = vld [vmem:[#allocation80_spill] sm:$0xff]  ;;  %v7609_v0 = vld [vmem:[#allocation82_spill] sm:$0xff] }
 0x2d1   :  { %v4433_v55 = vmul.f32 -1.442695, %v1871_v1  ;;  %v1828_v49 = vpop.f32.mrb[23].mxu0  ;;  %v1866_v50 = vpop.f32.mrb[21].mxu1  ;;  %v1873_v62 = vadd.f32 %v1864_v2, %v7594_v61  ;;  %v7607_v1 = vld [vmem:[#allocation79_spill] sm:$0xff]  ;;  %v7612_v2 = vld [vmem:[#allocation84_spill] sm:$0xff] }
 0x2d2   :  { %v4434_v51 = vmul.f32 -1.442695, %v1872_v7  ;;  %v1868_v52 = vpop.f32.mrb[22].mxu1  ;;  %v1874_v57 = vadd.f32 %v1866_v50, %v7593_v54  ;;  %v7610_v7 = vld [vmem:[#allocation81_spill] sm:$0xff]  ;;  %v7611_v56 = vld [vmem:[#allocation83_spill] sm:$0xff] }
 0x2d3   :  { %4952 = vpow2.f32 %v4433_v55  ;;  %v1869_v53 = vpop.f32.mrb[23].mxu1  ;;  %v7613_v55 = vld [vmem:[#allocation86_spill] sm:$0xff]  ;;  %v7614_v49 = vld [vmem:[#allocation85_spill] sm:$0xff]  ;;  %v7615_v50 = vld [vmem:[#allocation87_spill] sm:$0xff] }
 0x2d4   :  { %4954 = vpow2.f32 %v4434_v51  ;;  %v4435_v59 = vmul.f32 -1.442695, %v1874_v57  ;;  %v7616_v51 = vld [vmem:[#allocation88_spill] sm:$0xff]  ;;  %v7617_v52 = vld [vmem:[#allocation89_spill] sm:$0xff]  ;;  %v7618_v53 = vld [vmem:[#allocation90_spill] sm:$0xff] }
 0x2d5   :  { %v6412_v54 = vld [vmem:[#allocation4 + $0x8] sm:$0xff] }
 0x2d6   :  { %4956 = vpow2.f32 %v4435_v59  ;;  %v6436_v57 = vld [vmem:[#allocation4 + $0x48] sm:$0xff]  ;;  %v6442_v59 = vld [vmem:[#allocation4 + $0x40] sm:$0xff] }
 0x2d7   :  { %4958 = vtanh.f32 %v1873_v62  ;;  %v6448_v61 = vld [vmem:[#allocation4 + $0x68] sm:$0xff]  ;;  %v6450_v62 = vld [vmem:[#allocation4 + $0x78] sm:$0xff] }
 0x2da   :  { %v4951_v60 = vpop.eup %4950 }
 0x2db   :  { %v1590_v32 = vmul.f32 %v4951_v60, %v4949_v58  ;;  %v6438_v58 = vld [vmem:[#allocation4 + $0x58] sm:$0xff]  ;;  %v6444_v60 = vld [vmem:[#allocation4 + $0x50] sm:$0xff] }
 0x2dd   :  { %v4953_v14 = vpop.eup %4952  ;;  %v1591_v16 = vpack.c.bf16 %v1590_v32, %v1590_v32  ;;  %v6454_v32 = vld [vmem:[#allocation4 + $0x60] sm:$0xff] }
 0x2de   :  { %v4955_v17 = vpop.eup %4954  ;;  %v1881_v19 = vadd.f32 1.0, %v4953_v14  ;;  %v6456_v14 = vld [vmem:[#allocation4 + $0x70] sm:$0xff] }
 0x2df   :  { %1592 = vst [vmem:[#allocation3 + $0x4] sm:$0xf] %v1591_v16  ;;  %v1882_v30 = vadd.f32 1.0, %v4955_v17  ;;  %v6460_v16 = vld [vmem:[#allocation4 + $0x88] sm:$0xff]  ;;  %v6462_v17 = vld [vmem:[#allocation4 + $0x98] sm:$0xff] }
 0x2e0   :  { %4960 = vrcp.f32 %v1881_v19  ;;  %v4957_v21 = vpop.eup %4956  ;;  %v6466_v19 = vld [vmem:[#allocation4 + $0x80] sm:$0xff] }
 0x2e1   :  { %4962 = vrcp.f32 %v1882_v30  ;;  %v4959_v8 = vpop.eup %4958  ;;  %v1891_v26 = vadd.f32 1.0, %v4957_v21  ;;  %v6468_v30 = vld [vmem:[#allocation4 + $0x90] sm:$0xff]  ;;  %v6472_v21 = vld [vmem:[#allocation4 + $0xa8] sm:$0xff] }
 0x2e3   :  { %4964 = vrcp.f32 %v1891_v26  ;;  %v6480_v26 = vld [vmem:[#allocation4 + $0xb0] sm:$0xff] }
 0x2ea   :  { %v4961_v24 = vpop.eup %4960 }
 0x2eb   :  { %v4963_v31 = vpop.eup %4962  ;;  %v1895_v45 = vmul.f32 %v4961_v24, %v4959_v8  ;;  %v6474_v8 = vld [vmem:[#allocation4 + $0xb8] sm:$0xff]  ;;  %v6478_v24 = vld [vmem:[#allocation4 + $0xa0] sm:$0xff] }
 0x2ec   :  { %v1894_v4 = vmul.f32 %v4963_v31, %v7595_v46  ;;  %v6484_v31 = vld [vmem:[#allocation4 + $0xc8] sm:$0xff]  ;;  %v6490_v46 = vld [vmem:[#allocation4 + $0xc0] sm:$0xff] }
 0x2ed   :  { %v4965_v11 = vpop.eup %4964 }
 0x2ee   :  { %v6377_v9 = vadd.f32 %v1895_v45, %v1894_v4  ;;  %v6486_v45 = vld [vmem:[#allocation4 + $0xd8] sm:$0xff]  ;;  %v6492_v4 = vld [vmem:[#allocation4 + $0xd0] sm:$0xff] }
 0x2f0   :  { %4966 = vtanh.f32 %v6377_v9 }
 0x2fa   :  { %v4967_v15 = vpop.eup %4966 }
 0x2fb   :  { %v1898_v18 = vmul.f32 %v4967_v15, %v4965_v11  ;;  %v6496_v11 = vld [vmem:[#allocation4 + $0xe8] sm:$0xff]  ;;  %v6498_v15 = vld [vmem:[#allocation4 + $0xf8] sm:$0xff] }
 0x2fd   :  { %v1899_v20 = vpack.c.bf16 %v1898_v18, %v1898_v18  ;;  %v6502_v18 = vld [vmem:[#allocation4 + $0xe0] sm:$0xff] }
 0x2ff   :  { %1900 = vst [vmem:[#allocation3] sm:$0xf] %v1899_v20 }
 0x306   :  { %v1901_v22 = vld [vmem:[#allocation3] sm:$0xff] }
 0x307   :  { %v4437_v23 = vcombine.high %v1901_v22, %v1901_v22  ;;  %v4436_v25 = vcombine.low %v1901_v22, %v1901_v22  ;;  %v6508_v22 = vld [vmem:[#allocation4 + $0x108] sm:$0xff] }
 0x309   :  { %2027 = vmatprep.mubr.bf16.mxu0 %v4437_v23  ;;  %2068 = vmatprep.mubr.bf16.mxu1 %v4437_v23  ;;  %v6510_v23 = vld [vmem:[#allocation4 + $0x118] sm:$0xff] }
 0x30a   :  { %2028 = vmatmul.mubr.bf16.vlgmr.msra.gmra.mrb[24].mxu0 %v4436_v25  ;;  %2069 = vmatmul.mubr.bf16.vlgmr.msra.gmra.mrb[24].mxu1 %v4436_v25  ;;  %v6514_v25 = vld [vmem:[#allocation4 + $0x100] sm:$0xff] }
 0x30b   :  { %2300 = vmatpush1.bf16.msra.mxu0 %v7596_v27  ;;  %2341 = vmatpush1.bf16.msra.mxu1 %v6124_v34  ;;  %v7606_v34 = vld [vmem:[#allocation77_spill] sm:$0xff]  ;;  %v6516_v27 = vld [vmem:[#allocation4 + $0x110] sm:$0xff] }
 0x30c   :  { %2301 = vmatprep.subr.bf16.mxu0 %v7597_v29  ;;  %2342 = vmatprep.subr.bf16.mxu1 %v7598_v42  ;;  %v6520_v29 = vld [vmem:[#allocation4 + $0x128] sm:$0xff]  ;;  %v6522_v42 = vld [vmem:[#allocation4 + $0x138] sm:$0xff] }
 0x30d   :  { %2331 = vmatprep.mubr.bf16.mxu0 %v7599_v35  ;;  %2372 = vmatprep.mubr.bf16.mxu1 %v7599_v35 }
 0x30f   :  { %2302 = vmatpush1.bf16.msra.mxu0 %v7600_v36  ;;  %2343 = vmatpush1.bf16.msra.mxu1 %v7601_v37  ;;  %v6526_v36 = vld [vmem:[#allocation4 + $0x120] sm:$0xff]  ;;  %v6528_v37 = vld [vmem:[#allocation4 + $0x130] sm:$0xff] }
 0x310   :  { %2303 = vmatprep.subr.bf16.mxu0 %v7602_v38  ;;  %2344 = vmatprep.subr.bf16.mxu1 %v7603_v39  ;;  %7619 = vst [vmem:[#allocation58_spill] sm:$0xff] %v6526_v36  ;;  %7620 = vst [vmem:[#allocation59_spill] sm:$0xff] %v6528_v37  ;;  %v6532_v38 = vld [vmem:[#allocation4 + $0x148] sm:$0xff]  ;;  %v6534_v39 = vld [vmem:[#allocation4 + $0x158] sm:$0xff] }
 0x311   :  { %7621 = vst [vmem:[#allocation60_spill] sm:$0xff] %v6532_v38  ;;  %7622 = vst [vmem:[#allocation61_spill] sm:$0xff] %v6534_v39 }
 0x313   :  { %2304 = vmatpush1.bf16.msra.mxu0 %v7604_v41  ;;  %2345 = vmatpush1.bf16.msra.mxu1 %v7605_v43  ;;  %v6538_v41 = vld [vmem:[#allocation4 + $0x140] sm:$0xff]  ;;  %v6540_v43 = vld [vmem:[#allocation4 + $0x150] sm:$0xff] }
 0x314   :  { %2305 = vmatprep.subr.bf16.mxu0 %v7606_v34  ;;  %2346 = vmatprep.subr.bf16.mxu1 %v7607_v1  ;;  %7623 = vst [vmem:[#allocation62_spill] sm:$0xff] %v6538_v41  ;;  %7624 = vst [vmem:[#allocation63_spill] sm:$0xff] %v6540_v43  ;;  %v6544_v34 = vld [vmem:[#allocation4 + $0x168] sm:$0xff]  ;;  %v6546_v1 = vld [vmem:[#allocation4 + $0x178] sm:$0xff] }
 0x315   :  { %7625 = vst [vmem:[#allocation64_spill] sm:$0xff] %v6544_v34  ;;  %7626 = vst [vmem:[#allocation65_spill] sm:$0xff] %v6546_v1 }
 0x317   :  { %2306 = vmatpush1.bf16.msra.mxu0 %v7608_v6  ;;  %2347 = vmatpush1.bf16.msra.mxu1 %v7609_v0  ;;  %v6550_v6 = vld [vmem:[#allocation4 + $0x160] sm:$0xff]  ;;  %v6552_v0 = vld [vmem:[#allocation4 + $0x170] sm:$0xff] }
 0x318   :  { %2307 = vmatprep.subr.bf16.mxu0 %v7610_v7  ;;  %2348 = vmatprep.subr.bf16.mxu1 %v7611_v56  ;;  %7627 = vst [vmem:[#allocation66_spill] sm:$0xff] %v6550_v6  ;;  %7628 = vst [vmem:[#allocation67_spill] sm:$0xff] %v6552_v0  ;;  %v6556_v7 = vld [vmem:[#allocation4 + $0x188] sm:$0xff]  ;;  %v6558_v56 = vld [vmem:[#allocation4 + $0x198] sm:$0xff] }
 0x319   :  { %7629 = vst [vmem:[#allocation68_spill] sm:$0xff] %v6556_v7  ;;  %7630 = vst [vmem:[#allocation35_spill] sm:$0xff] %v6558_v56 }
 0x31b   :  { %2308 = vmatpush1.bf16.msra.mxu0 %v7612_v2  ;;  %2349 = vmatpush1.bf16.msra.mxu1 %v7613_v55  ;;  %v6562_v2 = vld [vmem:[#allocation4 + $0x180] sm:$0xff]  ;;  %v6564_v55 = vld [vmem:[#allocation4 + $0x190] sm:$0xff] }
 0x31c   :  { %2309 = vmatprep.subr.bf16.mxu0 %v7614_v49  ;;  %2350 = vmatprep.subr.bf16.mxu1 %v7615_v50  ;;  %7631 = vst [vmem:[#allocation37_spill] sm:$0xff] %v6562_v2  ;;  %7632 = vst [vmem:[#allocation38_spill] sm:$0xff] %v6564_v55  ;;  %v6568_v49 = vld [vmem:[#allocation4 + $0x1a8] sm:$0xff]  ;;  %v6570_v50 = vld [vmem:[#allocation4 + $0x1b8] sm:$0xff] }
 0x31d   :  { %7633 = vst [vmem:[#allocation40_spill] sm:$0xff] %v6568_v49  ;;  %7634 = vst [vmem:[#allocation39_spill] sm:$0xff] %v6570_v50 }
 0x31f   :  { %2310 = vmatpush1.bf16.msra.mxu0 %v7616_v51  ;;  %2351 = vmatpush1.bf16.msra.mxu1 %v6246_v44  ;;  %v6414_v44 = vld [vmem:[#allocation4 + $0x18] sm:$0xff]  ;;  %v6574_v51 = vld [vmem:[#allocation4 + $0x1a0] sm:$0xff] }
 0x320   :  { %2311 = vmatprep.subr.bf16.mxu0 %v7617_v52  ;;  %2352 = vmatprep.subr.bf16.mxu1 %v7618_v53  ;;  %7635 = vst [vmem:[#allocation57_spill] sm:$0xff] %v6574_v51  ;;  %v6576_v52 = vld [vmem:[#allocation4 + $0x1b0] sm:$0xff]  ;;  %v6580_v53 = vld [vmem:[#allocation4 + $0x1c8] sm:$0xff] }
 0x321   :  { %7636 = vst [vmem:[#allocation69_spill] sm:$0xff] %v6576_v52  ;;  %7637 = vst [vmem:[#allocation70_spill] sm:$0xff] %v6580_v53 }
 0x323   :  { %2312 = vmatpush1.bf16.msra.mxu0 %v6258_v63  ;;  %2353 = vmatpush1.bf16.msra.mxu1 %v6270_v47  ;;  %v6418_v63 = vld [vmem:[#allocation4] sm:$0xff]  ;;  %v6420_v47 = vld [vmem:[#allocation4 + $0x10] sm:$0xff] }
 0x324   :  { %2313 = vmatprep.subr.bf16.mxu0 %v6264_v5  ;;  %2354 = vmatprep.subr.bf16.mxu1 %v6276_v48  ;;  %v6426_v48 = vld [vmem:[#allocation4 + $0x38] sm:$0xff]  ;;  %v6432_v5 = vld [vmem:[#allocation4 + $0x30] sm:$0xff] }
 0x327   :  { %2314 = vmatpush1.bf16.msra.mxu0 %v6282_v33  ;;  %2355 = vmatpush1.bf16.msra.mxu1 %v6289_v3  ;;  %v6424_v33 = vld [vmem:[#allocation4 + $0x28] sm:$0xff]  ;;  %v6430_v3 = vld [vmem:[#allocation4 + $0x20] sm:$0xff] }
 0x328   :  { %2505 = vmatprep.subr.bf16.mxu0 %v6412_v54  ;;  %2546 = vmatprep.subr.bf16.mxu1 %v6414_v44 }
 0x32a   :  { %2332 = vmatmul.mubr.bf16.vlgmr.msra.gmra.mrb[28].mxu0 %v1899_v20  ;;  %2373 = vmatmul.mubr.bf16.vlgmr.msra.gmra.mrb[28].mxu1 %v1899_v20  ;;  %v6504_v20 = vld [vmem:[#allocation4 + $0xf0] sm:$0xff] }
 0x32b   :  { %2506 = vmatpush1.bf16.msra.mxu0 %v6418_v63  ;;  %2547 = vmatpush1.bf16.msra.mxu1 %v6420_v47 }
 0x32c   :  { %2507 = vmatprep.subr.bf16.mxu0 %v6424_v33  ;;  %2548 = vmatprep.subr.bf16.mxu1 %v6426_v48 }
 0x32f   :  { %2508 = vmatpush1.bf16.msra.mxu0 %v6430_v3  ;;  %2549 = vmatpush1.bf16.msra.mxu1 %v6432_v5 }
 0x330   :  { %2509 = vmatprep.subr.bf16.mxu0 %v6436_v57  ;;  %2550 = vmatprep.subr.bf16.mxu1 %v6438_v58 }
 0x333   :  { %2510 = vmatpush1.bf16.msra.mxu0 %v6442_v59  ;;  %2551 = vmatpush1.bf16.msra.mxu1 %v6444_v60 }
 0x334   :  { %2511 = vmatprep.subr.bf16.mxu0 %v6448_v61  ;;  %2552 = vmatprep.subr.bf16.mxu1 %v6450_v62 }
 0x337   :  { %2512 = vmatpush1.bf16.msra.mxu0 %v6454_v32  ;;  %2553 = vmatpush1.bf16.msra.mxu1 %v6456_v14 }
 0x338   :  { %2513 = vmatprep.subr.bf16.mxu0 %v6460_v16  ;;  %2554 = vmatprep.subr.bf16.mxu1 %v6462_v17 }
 0x33b   :  { %2514 = vmatpush1.bf16.msra.mxu0 %v6466_v19  ;;  %2555 = vmatpush1.bf16.msra.mxu1 %v6468_v30 }
 0x33c   :  { %2515 = vmatprep.subr.bf16.mxu0 %v6472_v21  ;;  %2556 = vmatprep.subr.bf16.mxu1 %v6474_v8 }
 0x33f   :  { %2516 = vmatpush1.bf16.msra.mxu0 %v6478_v24  ;;  %2557 = vmatpush1.bf16.msra.mxu1 %v6480_v26 }
 0x340   :  { %2517 = vmatprep.subr.bf16.mxu0 %v6484_v31  ;;  %2558 = vmatprep.subr.bf16.mxu1 %v6486_v45 }
 0x343   :  { %2518 = vmatpush1.bf16.msra.mxu0 %v6490_v46  ;;  %2559 = vmatpush1.bf16.msra.mxu1 %v6492_v4 }
 0x344   :  { %2519 = vmatprep.subr.bf16.mxu0 %v6496_v11  ;;  %2560 = vmatprep.subr.bf16.mxu1 %v6498_v15 }
 0x347   :  { %2520 = vmatpush1.bf16.msra.mxu0 %v6502_v18  ;;  %2561 = vmatpush1.bf16.msra.mxu1 %v6504_v20 }
 0x348   :  { %2521 = vmatprep.subr.bf16.mxu0 %v6508_v22  ;;  %2562 = vmatprep.subr.bf16.mxu1 %v6510_v23 }
 0x34b   :  { %2522 = vmatpush1.bf16.msra.mxu0 %v6514_v25  ;;  %2563 = vmatpush1.bf16.msra.mxu1 %v6516_v27 }
 0x34c   :  { %2523 = vmatprep.subr.bf16.mxu0 %v6520_v29  ;;  %2564 = vmatprep.subr.bf16.mxu1 %v6522_v42 }
 0x34f   :  { %2524 = vmatpush1.bf16.msra.mxu0 %v6526_v36  ;;  %2565 = vmatpush1.bf16.msra.mxu1 %v6528_v37 }
 0x350   :  { %2525 = vmatprep.subr.bf16.mxu0 %v6532_v38  ;;  %2566 = vmatprep.subr.bf16.mxu1 %v6534_v39 }
 0x353   :  { %2526 = vmatpush1.bf16.msra.mxu0 %v6538_v41  ;;  %2567 = vmatpush1.bf16.msra.mxu1 %v6540_v43 }
 0x354   :  { %2527 = vmatprep.subr.bf16.mxu0 %v6544_v34  ;;  %2568 = vmatprep.subr.bf16.mxu1 %v6546_v1 }
 0x357   :  { %2528 = vmatpush1.bf16.msra.mxu0 %v6550_v6  ;;  %2569 = vmatpush1.bf16.msra.mxu1 %v6552_v0 }
 0x358   :  { %2529 = vmatprep.subr.bf16.mxu0 %v6556_v7  ;;  %2570 = vmatprep.subr.bf16.mxu1 %v6558_v56  ;;  %v6592_v56 = vld [vmem:[#allocation4 + $0x1f8] sm:$0xff] }
 0x359   :  { %7642 = vst [vmem:[#allocation75_spill] sm:$0xff] %v6592_v56 }
 0x35b   :  { %2530 = vmatpush1.bf16.msra.mxu0 %v6562_v2  ;;  %2571 = vmatpush1.bf16.msra.mxu1 %v6564_v55  ;;  %v6582_v2 = vld [vmem:[#allocation4 + $0x1d8] sm:$0xff]  ;;  %v6586_v55 = vld [vmem:[#allocation4 + $0x1c0] sm:$0xff] }
 0x35c   :  { %2531 = vmatprep.subr.bf16.mxu0 %v6568_v49  ;;  %2572 = vmatprep.subr.bf16.mxu1 %v6570_v50  ;;  %7638 = vst [vmem:[#allocation71_spill] sm:$0xff] %v6582_v2  ;;  %7639 = vst [vmem:[#allocation72_spill] sm:$0xff] %v6586_v55  ;;  %v6588_v49 = vld [vmem:[#allocation4 + $0x1d0] sm:$0xff]  ;;  %v6590_v50 = vld [vmem:[#allocation4 + $0x1e8] sm:$0xff] }
 0x35d   :  { %7640 = vst [vmem:[#allocation74_spill] sm:$0xff] %v6588_v49  ;;  %7641 = vst [vmem:[#allocation73_spill] sm:$0xff] %v6590_v50 }
 0x35f   :  { %2532 = vmatpush1.bf16.msra.mxu0 %v6574_v51  ;;  %2573 = vmatpush1.bf16.msra.mxu1 %v6576_v52  ;;  %v6598_v52 = vld [vmem:[#allocation4 + $0x1e0] sm:$0xff] }
 0x360   :  { %2533 = vmatprep.subr.bf16.mxu0 %v6580_v53  ;;  %2574 = vmatprep.subr.bf16.mxu1 %v6582_v2  ;;  %7643 = vst [vmem:[#allocation76_spill] sm:$0xff] %v6598_v52  ;;  %v6600_v53 = vld [vmem:[#allocation4 + $0x1f0] sm:$0xff]  ;;  %v6607_v2 = vld [vmem:[%s7377_s2 + $0x4] ss:$16 sps:$4 sm:$0xff]  }
 0x361   :  { %7644 = vst [vmem:[#allocation78_spill] sm:$0xff] %v6600_v53  ;;  %7645 = vst [vmem:[#allocation77_spill] sm:$0xff] %v6607_v2 }
 0x363   :  { %2534 = vmatpush1.bf16.msra.mxu0 %v6586_v55  ;;  %2575 = vmatpush1.bf16.msra.mxu1 %v6588_v49  ;;  %v6612_v49 = vld [vmem:[%s7377_s2 + $0xc] ss:$16 sps:$4 sm:$0xff]  }
 0x364   :  { %2535 = vmatprep.subr.bf16.mxu0 %v6590_v50  ;;  %2576 = vmatprep.subr.bf16.mxu1 %v6592_v56  ;;  %7646 = vst [vmem:[#allocation79_spill] sm:$0xff] %v6612_v49 }
 0x367   :  { %2536 = vmatpush1.bf16.msra.mxu0 %v6598_v52  ;;  %2577 = vmatpush1.bf16.msra.mxu1 %v6600_v53  ;;  %v1966_v52 = vld [vmem:[%s7380_s5] sm:$0xf] }
 0x368   :  { %2809 = vmatprep.subr.bf16.mxu0 %v6607_v2  ;;  %2850 = vmatprep.subr.bf16.mxu1 %v6612_v49  ;;  %v1971_v53 = vrot.slane %v1966_v52, %v7587_v10  ;;  %v1975_v56 = vrot.slane %v1966_v52, %v7588_v12  ;;  %v1983_v39 = vrot.slane %v1966_v52, %v7589_v28 }
 0x369   :  { %v1979_v10 = vrot.slane %v1966_v52, %v7590_v13 }
 0x3dd   :  { %v2029_v50 = vpop.f32.mrb[24].mxu0  ;;  %v2070_v55 = vpop.f32.mrb[24].mxu1 }
 0x3de   :  { %v2030_v51 = vadd.f32 %v2029_v50, %v1971_v53  ;;  %v2031_v7 = vpop.f32.mrb[25].mxu0  ;;  %v2072_v0 = vpop.f32.mrb[25].mxu1  ;;  %v2071_v37 = vadd.f32 %v2070_v55, %v1979_v10  ;;  %v7649_v55 = vld [vmem:[#allocation42_spill] sm:$0xff] }
 0x3df   :  { %v2032_v6 = vadd.f32 %v2031_v7, %v1975_v56  ;;  %v2033_v1 = vpop.f32.mrb[26].mxu0  ;;  %v2074_v34 = vpop.f32.mrb[26].mxu1  ;;  %v2073_v38 = vadd.f32 %v2072_v0, %v1983_v39 }
 0x3e0   :  { %v4438_v43 = vmul.f32 -1.442695, %v2030_v51  ;;  %v2034_v2 = vpop.f32.mrb[27].mxu0  ;;  %v2075_v41 = vpop.f32.mrb[27].mxu1 }
 0x3e1   :  { %v4439_v49 = vmul.f32 -1.442695, %v2032_v6  ;;  %v4440_v12 = vmul.f32 -1.442695, %v2073_v38  ;;  %v7648_v2 = vld [vmem:[#allocation41_spill] sm:$0xff] }
 0x3e2   :  { %4968 = vpow2.f32 %v4438_v43 }
 0x3e3   :  { %4970 = vpow2.f32 %v4439_v49 }
 0x3e4   :  { %4972 = vpow2.f32 %v4440_v12 }
 0x3e5   :  { %4974 = vtanh.f32 %v2071_v37 }
 0x3ec   :  { %v4969_v36 = vpop.eup %4968 }
 0x3ed   :  { %v4971_v50 = vpop.eup %4970  ;;  %v2083_v53 = vadd.f32 1.0, %v4969_v36 }
 0x3ee   :  { %v2084_v1 = vadd.f32 1.0, %v4971_v50  ;;  %v4973_v34 = vpop.eup %4972 }
 0x3ef   :  { %4976 = vrcp.f32 %v2083_v53  ;;  %v4975_v41 = vpop.eup %4974  ;;  %v2093_v43 = vadd.f32 1.0, %v4973_v34 }
 0x3f0   :  { %4978 = vrcp.f32 %v2084_v1 }
 0x3f1   :  { %4980 = vrcp.f32 %v2093_v43 }
 0x3f9   :  { %v4977_v6 = vpop.eup %4976 }
 0x3fa   :  { %v4979_v7 = vpop.eup %4978  ;;  %v2097_v56 = vmul.f32 %v4977_v6, %v4975_v41 }
 0x3fb   :  { %v2096_v39 = vmul.f32 %v4979_v7, %v6369_v40  ;;  %v7650_v40 = vld [vmem:[#allocation45_spill] sm:$0xff]  ;;  %v4981_v6 = vpop.eup %4980 }
 0x3fd   :  { %v6624_v0 = vadd.f32 %v2097_v56, %v2096_v39  ;;  %v2333_v38 = vpop.f32.mrb[28].mxu0  ;;  %v2374_v10 = vpop.f32.mrb[28].mxu1  ;;  %v7651_v39 = vld [vmem:[#allocation43_spill] sm:$0xff] }
 0x3fe   :  { %v2381_v36 = vadd.f32 %v2333_v38, %v7648_v2  ;;  %v2335_v12 = vpop.f32.mrb[29].mxu0  ;;  %v2376_v37 = vpop.f32.mrb[29].mxu1  ;;  %v2383_v38 = vadd.f32 %v2374_v10, %v7651_v39  ;;  %v6663_v39 = vld [vmem:[%s7377_s2 + $0x20] ss:$16 sps:$4 sm:$0xff]  }
 0x3ff   :  { %7647 = vst [vmem:[#allocation80_spill] sm:$0xff] %v6624_v0  ;;  %4982 = vtanh.f32 %v6624_v0  ;;  %v2382_v49 = vadd.f32 %v2335_v12, %v7649_v55  ;;  %v2337_v51 = vpop.f32.mrb[30].mxu0  ;;  %v2378_v52 = vpop.f32.mrb[30].mxu1  ;;  %v2384_v41 = vadd.f32 %v2376_v37, %v7650_v40 }
 0x400   :  { %v4473_v50 = vmul.f32 -1.442695, %v2381_v36  ;;  %v2338_v53 = vpop.f32.mrb[31].mxu0  ;;  %v2379_v1 = vpop.f32.mrb[31].mxu1 }
 0x401   :  { %v4474_v34 = vmul.f32 -1.442695, %v2382_v49  ;;  %v4475_v56 = vmul.f32 -1.442695, %v2384_v41 }
 0x402   :  { %4984 = vpow2.f32 %v4473_v50 }
 0x403   :  { %4986 = vpow2.f32 %v4474_v34 }
 0x404   :  { %4988 = vpow2.f32 %v4475_v56  ;;  %v6651_v56 = vld [vmem:[%s7377_s2 + $0x24] ss:$16 sps:$4 sm:$0xff]  }
 0x405   :  { %4990 = vtanh.f32 %v2383_v38  ;;  %v6668_v38 = vld [vmem:[%s7377_s2 + $0x28] ss:$16 sps:$4 sm:$0xff]  }
 0x409   :  { %v4983_v7 = vpop.eup %4982 }
 0x40a   :  { %v2100_v43 = vmul.f32 %v4983_v7, %v4981_v6  ;;  %v6641_v6 = vld [vmem:[%s7377_s2] ss:$16 sps:$4 sm:$0xff]  }
 0x40c   :  { %v4985_v2 = vpop.eup %4984  ;;  %v2101_v0 = vpack.c.bf16 %v2100_v43, %v2100_v43  ;;  %v6656_v43 = vld [vmem:[%s7377_s2 + $0x2c] ss:$16 sps:$4 sm:$0xff]  }
 0x40d   :  { %v4987_v13 = vpop.eup %4986  ;;  %v2391_v12 = vadd.f32 1.0, %v4985_v2  ;;  %v6675_v2 = vld [vmem:[%s7377_s2 + $0x44] ss:$16 sps:$4 sm:$0xff]  }
 0x40e   :  { %2102 = vst [vmem:[#allocation3 + $0x4] sm:$0xf] %v2101_v0  ;;  %v2392_v36 = vadd.f32 1.0, %v4987_v13  ;;  %v4989_v55 = vpop.eup %4988 }
 0x40f   :  { %4992 = vrcp.f32 %v2391_v12  ;;  %v4991_v49 = vpop.eup %4990  ;;  %v2401_v50 = vadd.f32 1.0, %v4989_v55  ;;  %v6680_v12 = vld [vmem:[%s7377_s2 + $0x4c] ss:$16 sps:$4 sm:$0xff]   ;;  %v6694_v55 = vld [vmem:[%s7377_s2 + $0x48] ss:$16 sps:$4 sm:$0xff]  }
 0x410   :  { %4994 = vrcp.f32 %v2392_v36  ;;  %v6689_v36 = vld [vmem:[%s7377_s2 + $0x40] ss:$16 sps:$4 sm:$0xff]  }
 0x411   :  { %4996 = vrcp.f32 %v2401_v50  ;;  %v6725_v50 = vld [vmem:[%s7377_s2 + $0x84] ss:$16 sps:$4 sm:$0xff]  }
 0x419   :  { %v4993_v51 = vpop.eup %4992 }
 0x41a   :  { %v4995_v37 = vpop.eup %4994  ;;  %v2405_v52 = vmul.f32 %v4993_v51, %v4991_v49  ;;  %v6701_v49 = vld [vmem:[%s7377_s2 + $0x64] ss:$16 sps:$4 sm:$0xff]   ;;  %v6706_v51 = vld [vmem:[%s7377_s2 + $0x6c] ss:$16 sps:$4 sm:$0xff]  }
 0x41b   :  { %v2404_v53 = vmul.f32 %v4995_v37, %v6377_v9  ;;  %v4997_v10 = vpop.eup %4996  ;;  %v6646_v9 = vld [vmem:[%s7377_s2 + $0x8] ss:$16 sps:$4 sm:$0xff]   ;;  %v6713_v37 = vld [vmem:[%s7377_s2 + $0x60] ss:$16 sps:$4 sm:$0xff]  }
 0x41d   :  { %v6632_v1 = vadd.f32 %v2405_v52, %v2404_v53  ;;  %v6718_v52 = vld [vmem:[%s7377_s2 + $0x68] ss:$16 sps:$4 sm:$0xff]   ;;  %v6730_v53 = vld [vmem:[%s7377_s2 + $0x8c] ss:$16 sps:$4 sm:$0xff]  }
 0x41f   :  { %4998 = vtanh.f32 %v6632_v1 }
 0x429   :  { %v4999_v34 = vpop.eup %4998 }
 0x42a   :  { %v2408_v0 = vmul.f32 %v4999_v34, %v4997_v10  ;;  %v6737_v10 = vld [vmem:[%s7377_s2 + $0x80] ss:$16 sps:$4 sm:$0xff]   ;;  %v6742_v34 = vld [vmem:[%s7377_s2 + $0x88] ss:$16 sps:$4 sm:$0xff]  }
 0x42b   :  { %7652 = vst [vmem:[#allocation82_spill] sm:$0xff] %v6737_v10  ;;  %7653 = vst [vmem:[#allocation81_spill] sm:$0xff] %v6742_v34 }
 0x42c   :  { %v6635_v40 = vpack.c.bf16 %v2408_v0, %v2408_v0  ;;  %v6749_v0 = vld [vmem:[%s7377_s2 + $0xa4] ss:$16 sps:$4 sm:$0xff]  }
 0x42d   :  { %7654 = vst [vmem:[#allocation83_spill] sm:$0xff] %v6749_v0 }
 0x42e   :  { %2410 = vst [vmem:[#allocation3] sm:$0xf] %v6635_v40 }
 0x435   :  { %v2411_v13 = vld [vmem:[#allocation3] sm:$0xff] }
 0x436   :  { %v4477_v41 = vcombine.high %v2411_v13, %v2411_v13  ;;  %v4476_v7 = vcombine.low %v2411_v13, %v2411_v13  ;;  %v6754_v13 = vld [vmem:[%s7377_s2 + $0xac] ss:$16 sps:$4 sm:$0xff]  }
 0x437   :  { %7655 = vst [vmem:[#allocation84_spill] sm:$0xff] %v6754_v13 }
 0x438   :  { %2537 = vmatprep.mubr.bf16.mxu0 %v4477_v41  ;;  %2578 = vmatprep.mubr.bf16.mxu1 %v4477_v41  ;;  %v6761_v41 = vld [vmem:[%s7377_s2 + $0xa0] ss:$16 sps:$4 sm:$0xff]  }
 0x439   :  { %2538 = vmatmul.mubr.bf16.vlgmr.msra.gmra.mrb[32].mxu0 %v4476_v7  ;;  %2579 = vmatmul.mubr.bf16.vlgmr.msra.gmra.mrb[32].mxu1 %v4476_v7  ;;  %7656 = vst [vmem:[#allocation86_spill] sm:$0xff] %v6761_v41  ;;  %v6766_v7 = vld [vmem:[%s7377_s2 + $0xa8] ss:$16 sps:$4 sm:$0xff]  }
 0x43a   :  { %2810 = vmatpush1.bf16.msra.mxu0 %v6641_v6  ;;  %2851 = vmatpush1.bf16.msra.mxu1 %v6646_v9  ;;  %7657 = vst [vmem:[#allocation85_spill] sm:$0xff] %v6766_v7 }
 0x43b   :  { %2811 = vmatprep.subr.bf16.mxu0 %v6651_v56  ;;  %2852 = vmatprep.subr.bf16.mxu1 %v6656_v43 }
 0x43c   :  { %2841 = vmatprep.mubr.bf16.mxu0 %v7599_v35  ;;  %2882 = vmatprep.mubr.bf16.mxu1 %v7599_v35 }
 0x43e   :  { %2812 = vmatpush1.bf16.msra.mxu0 %v6663_v39  ;;  %2853 = vmatpush1.bf16.msra.mxu1 %v6668_v38 }
 0x43f   :  { %2813 = vmatprep.subr.bf16.mxu0 %v6675_v2  ;;  %2854 = vmatprep.subr.bf16.mxu1 %v6680_v12 }
 0x442   :  { %2814 = vmatpush1.bf16.msra.mxu0 %v6689_v36  ;;  %2855 = vmatpush1.bf16.msra.mxu1 %v6694_v55 }
 0x443   :  { %2815 = vmatprep.subr.bf16.mxu0 %v6701_v49  ;;  %2856 = vmatprep.subr.bf16.mxu1 %v6706_v51 }
 0x446   :  { %2816 = vmatpush1.bf16.msra.mxu0 %v6713_v37  ;;  %2857 = vmatpush1.bf16.msra.mxu1 %v6718_v52 }
 0x447   :  { %2817 = vmatprep.subr.bf16.mxu0 %v6725_v50  ;;  %2858 = vmatprep.subr.bf16.mxu1 %v6730_v53 }
 0x44a   :  { %2818 = vmatpush1.bf16.msra.mxu0 %v6737_v10  ;;  %2859 = vmatpush1.bf16.msra.mxu1 %v6742_v34  ;;  %v6773_v10 = vld [vmem:[%s7377_s2 + $0xc4] ss:$16 sps:$4 sm:$0xff]   ;;  %v6778_v34 = vld [vmem:[%s7377_s2 + $0xcc] ss:$16 sps:$4 sm:$0xff]  }
 0x44b   :  { %2819 = vmatprep.subr.bf16.mxu0 %v6749_v0  ;;  %2860 = vmatprep.subr.bf16.mxu1 %v6754_v13  ;;  %7658 = vst [vmem:[#allocation87_spill] sm:$0xff] %v6773_v10  ;;  %7659 = vst [vmem:[#allocation88_spill] sm:$0xff] %v6778_v34  ;;  %v6785_v0 = vld [vmem:[%s7377_s2 + $0xc0] ss:$16 sps:$4 sm:$0xff]   ;;  %v6790_v13 = vld [vmem:[%s7377_s2 + $0xc8] ss:$16 sps:$4 sm:$0xff]  }
 0x44e   :  { %2820 = vmatpush1.bf16.msra.mxu0 %v6761_v41  ;;  %2861 = vmatpush1.bf16.msra.mxu1 %v6766_v7  ;;  %v6797_v41 = vld [vmem:[%s7377_s2 + $0xe4] ss:$16 sps:$4 sm:$0xff]   ;;  %v6802_v7 = vld [vmem:[%s7377_s2 + $0xec] ss:$16 sps:$4 sm:$0xff]  }
 0x44f   :  { %2821 = vmatprep.subr.bf16.mxu0 %v6773_v10  ;;  %2862 = vmatprep.subr.bf16.mxu1 %v6778_v34  ;;  %v6809_v10 = vld [vmem:[%s7377_s2 + $0xe0] ss:$16 sps:$4 sm:$0xff]   ;;  %v6814_v34 = vld [vmem:[%s7377_s2 + $0xe8] ss:$16 sps:$4 sm:$0xff]  }
 0x452   :  { %2822 = vmatpush1.bf16.msra.mxu0 %v6785_v0  ;;  %2863 = vmatpush1.bf16.msra.mxu1 %v6790_v13 }
 0x453   :  { %2823 = vmatprep.subr.bf16.mxu0 %v6797_v41  ;;  %2864 = vmatprep.subr.bf16.mxu1 %v6802_v7 }
 0x456   :  { %2824 = vmatpush1.bf16.msra.mxu0 %v6809_v10  ;;  %2865 = vmatpush1.bf16.msra.mxu1 %v6814_v34 }
 0x457   :  { %3015 = vmatprep.subr.bf16.mxu0 %v6412_v54  ;;  %3056 = vmatprep.subr.bf16.mxu1 %v6414_v44  ;;  %v7660_v54 = vld [vmem:[#allocation58_spill] sm:$0xff]  ;;  %v7661_v44 = vld [vmem:[#allocation59_spill] sm:$0xff] }
 0x459   :  { %2842 = vmatmul.mubr.bf16.vlgmr.msra.gmra.mrb[36].mxu0 %v6635_v40  ;;  %2883 = vmatmul.mubr.bf16.vlgmr.msra.gmra.mrb[36].mxu1 %v6635_v40 }
 0x45a   :  { %3016 = vmatpush1.bf16.msra.mxu0 %v6418_v63  ;;  %3057 = vmatpush1.bf16.msra.mxu1 %v6420_v47  ;;  %v7662_v63 = vld [vmem:[#allocation60_spill] sm:$0xff]  ;;  %v7663_v47 = vld [vmem:[#allocation61_spill] sm:$0xff] }
 0x45b   :  { %3017 = vmatprep.subr.bf16.mxu0 %v6424_v33  ;;  %3058 = vmatprep.subr.bf16.mxu1 %v6426_v48  ;;  %v7664_v33 = vld [vmem:[#allocation62_spill] sm:$0xff]  ;;  %v7665_v48 = vld [vmem:[#allocation63_spill] sm:$0xff] }
 0x45e   :  { %3018 = vmatpush1.bf16.msra.mxu0 %v6430_v3  ;;  %3059 = vmatpush1.bf16.msra.mxu1 %v6432_v5  ;;  %v7666_v3 = vld [vmem:[#allocation64_spill] sm:$0xff]  ;;  %v7667_v5 = vld [vmem:[#allocation65_spill] sm:$0xff] }
 0x45f   :  { %3019 = vmatprep.subr.bf16.mxu0 %v6436_v57  ;;  %3060 = vmatprep.subr.bf16.mxu1 %v6438_v58  ;;  %v7668_v57 = vld [vmem:[#allocation66_spill] sm:$0xff]  ;;  %v7669_v58 = vld [vmem:[#allocation67_spill] sm:$0xff] }
 0x462   :  { %3020 = vmatpush1.bf16.msra.mxu0 %v6442_v59  ;;  %3061 = vmatpush1.bf16.msra.mxu1 %v6444_v60  ;;  %v7670_v59 = vld [vmem:[#allocation68_spill] sm:$0xff]  ;;  %v7671_v60 = vld [vmem:[#allocation35_spill] sm:$0xff] }
 0x463   :  { %3021 = vmatprep.subr.bf16.mxu0 %v6448_v61  ;;  %3062 = vmatprep.subr.bf16.mxu1 %v6450_v62  ;;  %v7672_v61 = vld [vmem:[#allocation37_spill] sm:$0xff]  ;;  %v7673_v62 = vld [vmem:[#allocation38_spill] sm:$0xff] }
 0x466   :  { %3022 = vmatpush1.bf16.msra.mxu0 %v6454_v32  ;;  %3063 = vmatpush1.bf16.msra.mxu1 %v6456_v14  ;;  %v7674_v32 = vld [vmem:[#allocation40_spill] sm:$0xff]  ;;  %v7675_v14 = vld [vmem:[#allocation39_spill] sm:$0xff] }
 0x467   :  { %3023 = vmatprep.subr.bf16.mxu0 %v6460_v16  ;;  %3064 = vmatprep.subr.bf16.mxu1 %v6462_v17  ;;  %v7676_v16 = vld [vmem:[#allocation57_spill] sm:$0xff] }
 0x468   :  { %v7677_v17 = vld [vmem:[#allocation69_spill] sm:$0xff] }
 0x46a   :  { %3024 = vmatpush1.bf16.msra.mxu0 %v6466_v19  ;;  %3065 = vmatpush1.bf16.msra.mxu1 %v6468_v30  ;;  %v7678_v19 = vld [vmem:[#allocation70_spill] sm:$0xff]  ;;  %v7679_v30 = vld [vmem:[#allocation71_spill] sm:$0xff] }
 0x46b   :  { %3025 = vmatprep.subr.bf16.mxu0 %v6472_v21  ;;  %3066 = vmatprep.subr.bf16.mxu1 %v6474_v8  ;;  %v7680_v21 = vld [vmem:[#allocation72_spill] sm:$0xff]  ;;  %v7681_v8 = vld [vmem:[#allocation74_spill] sm:$0xff] }
 0x46e   :  { %3026 = vmatpush1.bf16.msra.mxu0 %v6478_v24  ;;  %3067 = vmatpush1.bf16.msra.mxu1 %v6480_v26  ;;  %v7682_v24 = vld [vmem:[#allocation73_spill] sm:$0xff]  ;;  %v7683_v26 = vld [vmem:[#allocation75_spill] sm:$0xff] }
 0x46f   :  { %3027 = vmatprep.subr.bf16.mxu0 %v6484_v31  ;;  %3068 = vmatprep.subr.bf16.mxu1 %v6486_v45  ;;  %v7684_v31 = vld [vmem:[#allocation76_spill] sm:$0xff]  ;;  %v7685_v45 = vld [vmem:[#allocation78_spill] sm:$0xff] }
 0x472   :  { %3028 = vmatpush1.bf16.msra.mxu0 %v6490_v46  ;;  %3069 = vmatpush1.bf16.msra.mxu1 %v6492_v4  ;;  %v7686_v46 = vld [vmem:[#allocation77_spill] sm:$0xff]  ;;  %v7687_v4 = vld [vmem:[#allocation79_spill] sm:$0xff] }
 0x473   :  { %3029 = vmatprep.subr.bf16.mxu0 %v6496_v11  ;;  %3070 = vmatprep.subr.bf16.mxu1 %v6498_v15  ;;  %v2476_v11 = vld [vmem:[%s7380_s5] sm:$0xf]  ;;  %v7688_v15 = vld [vmem:[#allocation33_spill] sm:$0xff] }
 0x476   :  { %3030 = vmatpush1.bf16.msra.mxu0 %v6502_v18  ;;  %3071 = vmatpush1.bf16.msra.mxu1 %v6504_v20  ;;  %v2481_v18 = vrot.slane %v2476_v11, %v7688_v15  ;;  %v7689_v20 = vld [vmem:[#allocation36_spill] sm:$0xff] }
 0x477   :  { %3031 = vmatprep.subr.bf16.mxu0 %v6508_v22  ;;  %3072 = vmatprep.subr.bf16.mxu1 %v6510_v23  ;;  %v2485_v22 = vrot.slane %v2476_v11, %v7689_v20 }
 0x47a   :  { %3032 = vmatpush1.bf16.msra.mxu0 %v6514_v25  ;;  %3073 = vmatpush1.bf16.msra.mxu1 %v6516_v27 }
 0x47b   :  { %3033 = vmatprep.subr.bf16.mxu0 %v6520_v29  ;;  %3074 = vmatprep.subr.bf16.mxu1 %v6522_v42 }
 0x47e   :  { %3034 = vmatpush1.bf16.msra.mxu0 %v7660_v54  ;;  %3075 = vmatpush1.bf16.msra.mxu1 %v7661_v44 }
 0x47f   :  { %3035 = vmatprep.subr.bf16.mxu0 %v7662_v63  ;;  %3076 = vmatprep.subr.bf16.mxu1 %v7663_v47 }
 0x482   :  { %3036 = vmatpush1.bf16.msra.mxu0 %v7664_v33  ;;  %3077 = vmatpush1.bf16.msra.mxu1 %v7665_v48 }
 0x483   :  { %3037 = vmatprep.subr.bf16.mxu0 %v7666_v3  ;;  %3078 = vmatprep.subr.bf16.mxu1 %v7667_v5  ;;  %v2493_v3 = vrot.slane %v2476_v11, %v7589_v28 }
 0x486   :  { %3038 = vmatpush1.bf16.msra.mxu0 %v7668_v57  ;;  %3079 = vmatpush1.bf16.msra.mxu1 %v7669_v58  ;;  %v7690_v57 = vld [vmem:[#allocation34_spill] sm:$0xff] }
 0x487   :  { %3039 = vmatprep.subr.bf16.mxu0 %v7670_v59  ;;  %3080 = vmatprep.subr.bf16.mxu1 %v7671_v60  ;;  %v2489_v58 = vrot.slane %v2476_v11, %v7690_v57 }
 0x48a   :  { %3040 = vmatpush1.bf16.msra.mxu0 %v7672_v61  ;;  %3081 = vmatpush1.bf16.msra.mxu1 %v7673_v62 }
 0x48b   :  { %3041 = vmatprep.subr.bf16.mxu0 %v7674_v32  ;;  %3082 = vmatprep.subr.bf16.mxu1 %v7675_v14 }
 0x48e   :  { %3042 = vmatpush1.bf16.msra.mxu0 %v7676_v16  ;;  %3083 = vmatpush1.bf16.msra.mxu1 %v7677_v17 }
 0x48f   :  { %3043 = vmatprep.subr.bf16.mxu0 %v7678_v19  ;;  %3084 = vmatprep.subr.bf16.mxu1 %v7679_v30 }
 0x492   :  { %3044 = vmatpush1.bf16.msra.mxu0 %v7680_v21  ;;  %3085 = vmatpush1.bf16.msra.mxu1 %v7681_v8 }
 0x493   :  { %3045 = vmatprep.subr.bf16.mxu0 %v7682_v24  ;;  %3086 = vmatprep.subr.bf16.mxu1 %v7683_v26  ;;  %v7691_v24 = vld [vmem:[#allocation80_spill] sm:$0xff] }
 0x496   :  { %3046 = vmatpush1.bf16.msra.mxu0 %v7684_v31  ;;  %3087 = vmatpush1.bf16.msra.mxu1 %v7685_v45 }
 0x497   :  { %3319 = vmatprep.subr.bf16.mxu0 %v7686_v46  ;;  %3360 = vmatprep.subr.bf16.mxu1 %v7687_v4  ;;  %v7692_v4 = vld [vmem:[#allocation44_spill] sm:$0xff] }
 0x50c   :  { %v2539_v23 = vpop.f32.mrb[32].mxu0  ;;  %v2580_v25 = vpop.f32.mrb[32].mxu1 }
 0x50d   :  { %v2540_v27 = vadd.f32 %v2539_v23, %v2481_v18  ;;  %v2541_v29 = vpop.f32.mrb[33].mxu0  ;;  %v2582_v42 = vpop.f32.mrb[33].mxu1  ;;  %v2581_v60 = vadd.f32 %v2580_v25, %v2489_v58  ;;  %v7693_v23 = vld [vmem:[#allocation46_spill] sm:$0xff]  ;;  %v7695_v58 = vld [vmem:[#allocation47_spill] sm:$0xff] }
 0x50e   :  { %v2542_v40 = vadd.f32 %v2541_v29, %v2485_v22  ;;  %v2543_v54 = vpop.f32.mrb[34].mxu0  ;;  %v2584_v44 = vpop.f32.mrb[34].mxu1  ;;  %v2583_v5 = vadd.f32 %v2582_v42, %v2493_v3 }
 0x50f   :  { %v4478_v63 = vmul.f32 -1.442695, %v2540_v27  ;;  %v2544_v47 = vpop.f32.mrb[35].mxu0  ;;  %v2585_v33 = vpop.f32.mrb[35].mxu1 }
 0x510   :  { %v4479_v48 = vmul.f32 -1.442695, %v2542_v40  ;;  %v4480_v59 = vmul.f32 -1.442695, %v2583_v5 }
 0x511   :  { %5000 = vpow2.f32 %v4478_v63  ;;  %v7694_v63 = vld [vmem:[#allocation48_spill] sm:$0xff] }
 0x512   :  { %5002 = vpow2.f32 %v4479_v48 }
 0x513   :  { %5004 = vpow2.f32 %v4480_v59 }
 0x514   :  { %5006 = vtanh.f32 %v2581_v60 }
 0x51b   :  { %v5001_v61 = vpop.eup %5000 }
 0x51c   :  { %v5003_v62 = vpop.eup %5002  ;;  %v2593_v32 = vadd.f32 1.0, %v5001_v61 }
 0x51d   :  { %v2594_v14 = vadd.f32 1.0, %v5003_v62  ;;  %v5005_v16 = vpop.eup %5004 }
 0x51e   :  { %5008 = vrcp.f32 %v2593_v32  ;;  %v5007_v17 = vpop.eup %5006  ;;  %v2603_v8 = vadd.f32 1.0, %v5005_v16 }
 0x51f   :  { %5010 = vrcp.f32 %v2594_v14 }
 0x520   :  { %5012 = vrcp.f32 %v2603_v8 }
 0x528   :  { %v5009_v19 = vpop.eup %5008 }
 0x529   :  { %v5011_v30 = vpop.eup %5010  ;;  %v2607_v21 = vmul.f32 %v5009_v19, %v5007_v17 }
 0x52a   :  { %v2606_v26 = vmul.f32 %v5011_v30, %v7691_v24  ;;  %v5013_v33 = vpop.eup %5012 }
 0x52c   :  { %v6896_v31 = vadd.f32 %v2607_v21, %v2606_v26  ;;  %v2843_v45 = vpop.f32.mrb[36].mxu0  ;;  %v2884_v46 = vpop.f32.mrb[36].mxu1 }
 0x52d   :  { %v2891_v11 = vadd.f32 %v2843_v45, %v7692_v4  ;;  %v2845_v18 = vpop.f32.mrb[37].mxu0  ;;  %v2886_v22 = vpop.f32.mrb[37].mxu1  ;;  %v2893_v59 = vadd.f32 %v2884_v46, %v7695_v58  ;;  %v7023_v58 = vld [vmem:[#allocation4 + $0xe8] sm:$0xff] }
 0x52e   :  { %5014 = vtanh.f32 %v6896_v31  ;;  %v2892_v25 = vadd.f32 %v2845_v18, %v7693_v23  ;;  %v2847_v27 = vpop.f32.mrb[38].mxu0  ;;  %v2888_v29 = vpop.f32.mrb[38].mxu1  ;;  %v2894_v47 = vadd.f32 %v2886_v22, %v7694_v63  ;;  %v7005_v63 = vld [vmem:[#allocation4 + $0xa0] sm:$0xff] }
 0x52f   :  { %v4513_v42 = vmul.f32 -1.442695, %v2891_v11  ;;  %v2848_v40 = vpop.f32.mrb[39].mxu0  ;;  %v2889_v54 = vpop.f32.mrb[39].mxu1  ;;  %v6987_v27 = vld [vmem:[#allocation4 + $0x88] sm:$0xff]  ;;  %v6989_v29 = vld [vmem:[#allocation4 + $0x98] sm:$0xff] }
 0x530   :  { %v4514_v44 = vmul.f32 -1.442695, %v2892_v25  ;;  %v4515_v3 = vmul.f32 -1.442695, %v2894_v47  ;;  %v6983_v25 = vld [vmem:[#allocation4 + $0x70] sm:$0xff]  ;;  %v6999_v54 = vld [vmem:[#allocation4 + $0xa8] sm:$0xff] }
 0x531   :  { %5016 = vpow2.f32 %v4513_v42  ;;  %v6993_v42 = vld [vmem:[#allocation4 + $0x80] sm:$0xff]  ;;  %v6995_v40 = vld [vmem:[#allocation4 + $0x90] sm:$0xff] }
 0x532   :  { %5018 = vpow2.f32 %v4514_v44  ;;  %v7001_v44 = vld [vmem:[#allocation4 + $0xb8] sm:$0xff]  ;;  %v7007_v47 = vld [vmem:[#allocation4 + $0xb0] sm:$0xff] }
 0x533   :  { %5020 = vpow2.f32 %v4515_v3  ;;  %v7017_v3 = vld [vmem:[#allocation4 + $0xc0] sm:$0xff] }
 0x534   :  { %5022 = vtanh.f32 %v2893_v59  ;;  %v7025_v59 = vld [vmem:[#allocation4 + $0xf8] sm:$0xff] }
 0x538   :  { %v5015_v48 = vpop.eup %5014 }
 0x539   :  { %v2610_v5 = vmul.f32 %v5015_v48, %v5013_v33  ;;  %v7011_v33 = vld [vmem:[#allocation4 + $0xc8] sm:$0xff]  ;;  %v7013_v48 = vld [vmem:[#allocation4 + $0xd8] sm:$0xff] }
 0x53b   :  { %v5017_v60 = vpop.eup %5016  ;;  %v2611_v61 = vpack.c.bf16 %v2610_v5, %v2610_v5  ;;  %v7019_v5 = vld [vmem:[#allocation4 + $0xd0] sm:$0xff] }
 0x53c   :  { %v5019_v62 = vpop.eup %5018  ;;  %v2901_v32 = vadd.f32 1.0, %v5017_v60  ;;  %v7029_v60 = vld [vmem:[#allocation4 + $0xe0] sm:$0xff] }
 0x53d   :  { %2612 = vst [vmem:[#allocation3 + $0x4] sm:$0xf] %v2611_v61  ;;  %v2902_v14 = vadd.f32 1.0, %v5019_v62  ;;  %v5021_v16 = vpop.eup %5020  ;;  %v7031_v61 = vld [vmem:[#allocation4 + $0xf0] sm:$0xff]  ;;  %v7035_v62 = vld [vmem:[#allocation4 + $0x108] sm:$0xff] }
 0x53e   :  { %5024 = vrcp.f32 %v2901_v32  ;;  %v5023_v17 = vpop.eup %5022  ;;  %v2911_v8 = vadd.f32 1.0, %v5021_v16  ;;  %v7037_v32 = vld [vmem:[#allocation4 + $0x118] sm:$0xff]  ;;  %v7043_v16 = vld [vmem:[#allocation4 + $0x110] sm:$0xff] }
 0x53f   :  { %5026 = vrcp.f32 %v2902_v14  ;;  %v7041_v14 = vld [vmem:[#allocation4 + $0x100] sm:$0xff] }
 0x540   :  { %5028 = vrcp.f32 %v2911_v8  ;;  %v7059_v8 = vld [vmem:[#allocation4 + $0x148] sm:$0xff] }
 0x541   :  { %7706 = vst [vmem:[#allocation41_spill] sm:$0xff] %v7059_v8 }
 0x548   :  { %v5025_v19 = vpop.eup %5024 }
 0x549   :  { %v5027_v30 = vpop.eup %5026  ;;  %v2915_v21 = vmul.f32 %v5025_v19, %v5023_v17  ;;  %v7047_v17 = vld [vmem:[#allocation4 + $0x128] sm:$0xff]  ;;  %v7049_v19 = vld [vmem:[#allocation4 + $0x138] sm:$0xff] }
 0x54a   :  { %v2914_v24 = vmul.f32 %v5027_v30, %v6632_v1  ;;  %v5029_v45 = vpop.eup %5028  ;;  %v7696_v1 = vld [vmem:[#allocation82_spill] sm:$0xff]  ;;  %v7053_v30 = vld [vmem:[#allocation4 + $0x120] sm:$0xff] }
 0x54b   :  { %7704 = vst [vmem:[#allocation89_spill] sm:$0xff] %v7053_v30 }
 0x54c   :  { %v6904_v26 = vadd.f32 %v2915_v21, %v2914_v24  ;;  %v7055_v21 = vld [vmem:[#allocation4 + $0x130] sm:$0xff]  ;;  %v7061_v24 = vld [vmem:[#allocation4 + $0x158] sm:$0xff] }
 0x54d   :  { %7705 = vst [vmem:[#allocation90_spill] sm:$0xff] %v7055_v21  ;;  %7707 = vst [vmem:[#allocation42_spill] sm:$0xff] %v7061_v24 }
 0x54e   :  { %5030 = vtanh.f32 %v6904_v26 }
 0x558   :  { %v5031_v46 = vpop.eup %5030 }
 0x559   :  { %v2918_v4 = vmul.f32 %v5031_v46, %v5029_v45  ;;  %v7065_v45 = vld [vmem:[#allocation4 + $0x140] sm:$0xff]  ;;  %v7067_v46 = vld [vmem:[#allocation4 + $0x150] sm:$0xff] }
 0x55a   :  { %7708 = vst [vmem:[#allocation45_spill] sm:$0xff] %v7065_v45  ;;  %7709 = vst [vmem:[#allocation43_spill] sm:$0xff] %v7067_v46 }
 0x55b   :  { %v2919_v11 = vpack.c.bf16 %v2918_v4, %v2918_v4  ;;  %v7071_v4 = vld [vmem:[#allocation4 + $0x168] sm:$0xff] }
 0x55c   :  { %7710 = vst [vmem:[#allocation58_spill] sm:$0xff] %v7071_v4 }
 0x55d   :  { %2920 = vst [vmem:[#allocation3] sm:$0xf] %v2919_v11 }
 0x564   :  { %v2921_v18 = vld [vmem:[#allocation3] sm:$0xff] }
 0x565   :  { %v4517_v22 = vcombine.high %v2921_v18, %v2921_v18  ;;  %v4516_v23 = vcombine.low %v2921_v18, %v2921_v18  ;;  %v7077_v18 = vld [vmem:[#allocation4 + $0x160] sm:$0xff] }
 0x566   :  { %7712 = vst [vmem:[#allocation60_spill] sm:$0xff] %v7077_v18 }
 0x567   :  { %3047 = vmatprep.mubr.bf16.mxu0 %v4517_v22  ;;  %3088 = vmatprep.mubr.bf16.mxu1 %v4517_v22  ;;  %v7079_v22 = vld [vmem:[#allocation4 + $0x170] sm:$0xff] }
 0x568   :  { %3048 = vmatmul.mubr.bf16.vlgmr.msra.gmra.mrb[40].mxu0 %v4516_v23  ;;  %3089 = vmatmul.mubr.bf16.vlgmr.msra.gmra.mrb[40].mxu1 %v4516_v23  ;;  %7713 = vst [vmem:[#allocation61_spill] sm:$0xff] %v7079_v22  ;;  %v7083_v23 = vld [vmem:[#allocation4 + $0x188] sm:$0xff] }
 0x569   :  { %3320 = vmatpush1.bf16.msra.mxu0 %v6641_v6  ;;  %3361 = vmatpush1.bf16.msra.mxu1 %v6646_v9  ;;  %v7697_v6 = vld [vmem:[#allocation81_spill] sm:$0xff]  ;;  %v7698_v9 = vld [vmem:[#allocation83_spill] sm:$0xff]  ;;  %7714 = vst [vmem:[#allocation62_spill] sm:$0xff] %v7083_v23 }
 0x56a   :  { %3321 = vmatprep.subr.bf16.mxu0 %v6651_v56  ;;  %3362 = vmatprep.subr.bf16.mxu1 %v6656_v43  ;;  %v7699_v56 = vld [vmem:[#allocation84_spill] sm:$0xff]  ;;  %v7700_v43 = vld [vmem:[#allocation86_spill] sm:$0xff] }
 0x56b   :  { %3351 = vmatprep.mubr.bf16.mxu0 %v7599_v35  ;;  %3392 = vmatprep.mubr.bf16.mxu1 %v7599_v35 }
 0x56d   :  { %3322 = vmatpush1.bf16.msra.mxu0 %v6663_v39  ;;  %3363 = vmatpush1.bf16.msra.mxu1 %v6668_v38  ;;  %v7701_v39 = vld [vmem:[#allocation85_spill] sm:$0xff]  ;;  %v7702_v38 = vld [vmem:[#allocation87_spill] sm:$0xff] }
 0x56e   :  { %3323 = vmatprep.subr.bf16.mxu0 %v6675_v2  ;;  %3364 = vmatprep.subr.bf16.mxu1 %v6680_v12  ;;  %v7703_v2 = vld [vmem:[#allocation88_spill] sm:$0xff]  ;;  %v6939_v12 = vld [vmem:[#allocation4 + $0x8] sm:$0xff] }
 0x571   :  { %3324 = vmatpush1.bf16.msra.mxu0 %v6689_v36  ;;  %3365 = vmatpush1.bf16.msra.mxu1 %v6694_v55  ;;  %v6941_v36 = vld [vmem:[#allocation4 + $0x18] sm:$0xff]  ;;  %v6945_v55 = vld [vmem:[#allocation4] sm:$0xff] }
 0x572   :  { %3325 = vmatprep.subr.bf16.mxu0 %v6701_v49  ;;  %3366 = vmatprep.subr.bf16.mxu1 %v6706_v51  ;;  %v6947_v49 = vld [vmem:[#allocation4 + $0x10] sm:$0xff]  ;;  %v6951_v51 = vld [vmem:[#allocation4 + $0x28] sm:$0xff] }
 0x575   :  { %3326 = vmatpush1.bf16.msra.mxu0 %v6713_v37  ;;  %3367 = vmatpush1.bf16.msra.mxu1 %v6718_v52  ;;  %v6953_v37 = vld [vmem:[#allocation4 + $0x38] sm:$0xff]  ;;  %v6957_v52 = vld [vmem:[#allocation4 + $0x20] sm:$0xff] }
 0x576   :  { %3327 = vmatprep.subr.bf16.mxu0 %v6725_v50  ;;  %3368 = vmatprep.subr.bf16.mxu1 %v6730_v53  ;;  %v6959_v50 = vld [vmem:[#allocation4 + $0x30] sm:$0xff]  ;;  %v6963_v53 = vld [vmem:[#allocation4 + $0x48] sm:$0xff] }
 0x579   :  { %3328 = vmatpush1.bf16.msra.mxu0 %v7696_v1  ;;  %3369 = vmatpush1.bf16.msra.mxu1 %v7697_v6  ;;  %v7085_v1 = vld [vmem:[#allocation4 + $0x198] sm:$0xff]  ;;  %v7089_v6 = vld [vmem:[#allocation4 + $0x180] sm:$0xff] }
 0x57a   :  { %3329 = vmatprep.subr.bf16.mxu0 %v7698_v9  ;;  %3370 = vmatprep.subr.bf16.mxu1 %v7699_v56  ;;  %7715 = vst [vmem:[#allocation63_spill] sm:$0xff] %v7085_v1  ;;  %7716 = vst [vmem:[#allocation64_spill] sm:$0xff] %v7089_v6  ;;  %v7091_v9 = vld [vmem:[#allocation4 + $0x190] sm:$0xff]  ;;  %v7095_v56 = vld [vmem:[#allocation4 + $0x1a8] sm:$0xff] }
 0x57b   :  { %7717 = vst [vmem:[#allocation65_spill] sm:$0xff] %v7091_v9  ;;  %7718 = vst [vmem:[#allocation66_spill] sm:$0xff] %v7095_v56 }
 0x57d   :  { %3330 = vmatpush1.bf16.msra.mxu0 %v7700_v43  ;;  %3371 = vmatpush1.bf16.msra.mxu1 %v7701_v39  ;;  %v7097_v43 = vld [vmem:[#allocation4 + $0x1b8] sm:$0xff]  ;;  %v7101_v39 = vld [vmem:[#allocation4 + $0x1a0] sm:$0xff] }
 0x57e   :  { %3331 = vmatprep.subr.bf16.mxu0 %v7702_v38  ;;  %3372 = vmatprep.subr.bf16.mxu1 %v7703_v2  ;;  %7719 = vst [vmem:[#allocation67_spill] sm:$0xff] %v7097_v43  ;;  %7720 = vst [vmem:[#allocation68_spill] sm:$0xff] %v7101_v39  ;;  %v7103_v38 = vld [vmem:[#allocation4 + $0x1b0] sm:$0xff]  ;;  %v7107_v2 = vld [vmem:[#allocation4 + $0x1c8] sm:$0xff] }
 0x57f   :  { %7721 = vst [vmem:[#allocation35_spill] sm:$0xff] %v7103_v38  ;;  %7722 = vst [vmem:[#allocation37_spill] sm:$0xff] %v7107_v2 }
 0x581   :  { %3332 = vmatpush1.bf16.msra.mxu0 %v6785_v0  ;;  %3373 = vmatpush1.bf16.msra.mxu1 %v6790_v13  ;;  %v6971_v0 = vld [vmem:[#allocation4 + $0x50] sm:$0xff]  ;;  %v6975_v13 = vld [vmem:[#allocation4 + $0x68] sm:$0xff] }
 0x582   :  { %3333 = vmatprep.subr.bf16.mxu0 %v6797_v41  ;;  %3374 = vmatprep.subr.bf16.mxu1 %v6802_v7  ;;  %v6977_v41 = vld [vmem:[#allocation4 + $0x78] sm:$0xff]  ;;  %v6981_v7 = vld [vmem:[#allocation4 + $0x60] sm:$0xff] }
 0x585   :  { %3334 = vmatpush1.bf16.msra.mxu0 %v6809_v10  ;;  %3375 = vmatpush1.bf16.msra.mxu1 %v6814_v34  ;;  %v6965_v10 = vld [vmem:[#allocation4 + $0x58] sm:$0xff]  ;;  %v6969_v34 = vld [vmem:[#allocation4 + $0x40] sm:$0xff] }
 0x586   :  { %3525 = vmatprep.subr.bf16.mxu0 %v6939_v12  ;;  %3566 = vmatprep.subr.bf16.mxu1 %v6941_v36 }
 0x588   :  { %3352 = vmatmul.mubr.bf16.vlgmr.msra.gmra.mrb[44].mxu0 %v2919_v11  ;;  %3393 = vmatmul.mubr.bf16.vlgmr.msra.gmra.mrb[44].mxu1 %v2919_v11  ;;  %v7073_v11 = vld [vmem:[#allocation4 + $0x178] sm:$0xff] }
 0x589   :  { %3526 = vmatpush1.bf16.msra.mxu0 %v6945_v55  ;;  %3567 = vmatpush1.bf16.msra.mxu1 %v6947_v49  ;;  %7711 = vst [vmem:[#allocation59_spill] sm:$0xff] %v7073_v11 }
 0x58a   :  { %3527 = vmatprep.subr.bf16.mxu0 %v6951_v51  ;;  %3568 = vmatprep.subr.bf16.mxu1 %v6953_v37 }
 0x58d   :  { %3528 = vmatpush1.bf16.msra.mxu0 %v6957_v52  ;;  %3569 = vmatpush1.bf16.msra.mxu1 %v6959_v50 }
 0x58e   :  { %3529 = vmatprep.subr.bf16.mxu0 %v6963_v53  ;;  %3570 = vmatprep.subr.bf16.mxu1 %v6965_v10 }
 0x591   :  { %3530 = vmatpush1.bf16.msra.mxu0 %v6969_v34  ;;  %3571 = vmatpush1.bf16.msra.mxu1 %v6971_v0 }
 0x592   :  { %3531 = vmatprep.subr.bf16.mxu0 %v6975_v13  ;;  %3572 = vmatprep.subr.bf16.mxu1 %v6977_v41 }
 0x595   :  { %3532 = vmatpush1.bf16.msra.mxu0 %v6981_v7  ;;  %3573 = vmatpush1.bf16.msra.mxu1 %v6983_v25 }
 0x596   :  { %3533 = vmatprep.subr.bf16.mxu0 %v6987_v27  ;;  %3574 = vmatprep.subr.bf16.mxu1 %v6989_v29 }
 0x599   :  { %3534 = vmatpush1.bf16.msra.mxu0 %v6993_v42  ;;  %3575 = vmatpush1.bf16.msra.mxu1 %v6995_v40 }
 0x59a   :  { %3535 = vmatprep.subr.bf16.mxu0 %v6999_v54  ;;  %3576 = vmatprep.subr.bf16.mxu1 %v7001_v44 }
 0x59d   :  { %3536 = vmatpush1.bf16.msra.mxu0 %v7005_v63  ;;  %3577 = vmatpush1.bf16.msra.mxu1 %v7007_v47 }
 0x59e   :  { %3537 = vmatprep.subr.bf16.mxu0 %v7011_v33  ;;  %3578 = vmatprep.subr.bf16.mxu1 %v7013_v48 }
 0x5a1   :  { %3538 = vmatpush1.bf16.msra.mxu0 %v7017_v3  ;;  %3579 = vmatpush1.bf16.msra.mxu1 %v7019_v5 }
 0x5a2   :  { %3539 = vmatprep.subr.bf16.mxu0 %v7023_v58  ;;  %3580 = vmatprep.subr.bf16.mxu1 %v7025_v59 }
 0x5a5   :  { %3540 = vmatpush1.bf16.msra.mxu0 %v7029_v60  ;;  %3581 = vmatpush1.bf16.msra.mxu1 %v7031_v61 }
 0x5a6   :  { %3541 = vmatprep.subr.bf16.mxu0 %v7035_v62  ;;  %3582 = vmatprep.subr.bf16.mxu1 %v7037_v32 }
 0x5a9   :  { %3542 = vmatpush1.bf16.msra.mxu0 %v7041_v14  ;;  %3583 = vmatpush1.bf16.msra.mxu1 %v7043_v16 }
 0x5aa   :  { %3543 = vmatprep.subr.bf16.mxu0 %v7047_v17  ;;  %3584 = vmatprep.subr.bf16.mxu1 %v7049_v19 }
 0x5ad   :  { %3544 = vmatpush1.bf16.msra.mxu0 %v7053_v30  ;;  %3585 = vmatpush1.bf16.msra.mxu1 %v7055_v21 }
 0x5ae   :  { %3545 = vmatprep.subr.bf16.mxu0 %v7059_v8  ;;  %3586 = vmatprep.subr.bf16.mxu1 %v7061_v24 }
 0x5b1   :  { %3546 = vmatpush1.bf16.msra.mxu0 %v7065_v45  ;;  %3587 = vmatpush1.bf16.msra.mxu1 %v7067_v46 }
 0x5b2   :  { %3547 = vmatprep.subr.bf16.mxu0 %v7071_v4  ;;  %3588 = vmatprep.subr.bf16.mxu1 %v7073_v11 }
 0x5b5   :  { %3548 = vmatpush1.bf16.msra.mxu0 %v7077_v18  ;;  %3589 = vmatpush1.bf16.msra.mxu1 %v7079_v22 }
 0x5b6   :  { %3549 = vmatprep.subr.bf16.mxu0 %v7083_v23  ;;  %3590 = vmatprep.subr.bf16.mxu1 %v7085_v1  ;;  %v7119_v1 = vld [vmem:[#allocation4 + $0x1f8] sm:$0xff] }
 0x5b7   :  { %7727 = vst [vmem:[#allocation69_spill] sm:$0xff] %v7119_v1 }
 0x5b9   :  { %3550 = vmatpush1.bf16.msra.mxu0 %v7089_v6  ;;  %3591 = vmatpush1.bf16.msra.mxu1 %v7091_v9  ;;  %v7109_v6 = vld [vmem:[#allocation4 + $0x1d8] sm:$0xff]  ;;  %v7113_v9 = vld [vmem:[#allocation4 + $0x1c0] sm:$0xff] }
 0x5ba   :  { %3551 = vmatprep.subr.bf16.mxu0 %v7095_v56  ;;  %3592 = vmatprep.subr.bf16.mxu1 %v7097_v43  ;;  %7723 = vst [vmem:[#allocation38_spill] sm:$0xff] %v7109_v6  ;;  %7724 = vst [vmem:[#allocation40_spill] sm:$0xff] %v7113_v9  ;;  %v7115_v56 = vld [vmem:[#allocation4 + $0x1d0] sm:$0xff]  ;;  %v7117_v43 = vld [vmem:[#allocation4 + $0x1e8] sm:$0xff] }
 0x5bb   :  { %7725 = vst [vmem:[#allocation39_spill] sm:$0xff] %v7115_v56  ;;  %7726 = vst [vmem:[#allocation57_spill] sm:$0xff] %v7117_v43 }
 0x5bd   :  { %3552 = vmatpush1.bf16.msra.mxu0 %v7101_v39  ;;  %3593 = vmatpush1.bf16.msra.mxu1 %v7103_v38  ;;  %v7125_v38 = vld [vmem:[#allocation4 + $0x1e0] sm:$0xff] }
 0x5be   :  { %3553 = vmatprep.subr.bf16.mxu0 %v7107_v2  ;;  %3594 = vmatprep.subr.bf16.mxu1 %v7109_v6  ;;  %7728 = vst [vmem:[#allocation70_spill] sm:$0xff] %v7125_v38  ;;  %v7127_v2 = vld [vmem:[#allocation4 + $0x1f0] sm:$0xff]  ;;  %v4887_v6 = vld [vmem:[%s7377_s2 + $0x4] ss:$16 sps:$4 sm:$0xff]  }
 0x5bf   :  { %7729 = vst [vmem:[#allocation71_spill] sm:$0xff] %v7127_v2 }
 0x5c1   :  { %3554 = vmatpush1.bf16.msra.mxu0 %v7113_v9  ;;  %3595 = vmatpush1.bf16.msra.mxu1 %v7115_v56  ;;  %v4890_v56 = vld [vmem:[%s7377_s2 + $0xc] ss:$16 sps:$4 sm:$0xff]  }
 0x5c2   :  { %3555 = vmatprep.subr.bf16.mxu0 %v7117_v43  ;;  %3596 = vmatprep.subr.bf16.mxu1 %v7119_v1  ;;  %v2986_v1 = vld [vmem:[%s7380_s5] sm:$0xf] }
 0x5c3   :  { %v2991_v43 = vrot.slane %v2986_v1, %v7688_v15  ;;  %v3003_v24 = vrot.slane %v2986_v1, %v7589_v28  ;;  %v2999_v15 = vrot.slane %v2986_v1, %v7690_v57 }
 0x5c5   :  { %3556 = vmatpush1.bf16.msra.mxu0 %v7125_v38  ;;  %3597 = vmatpush1.bf16.msra.mxu1 %v7127_v2  ;;  %v2995_v38 = vrot.slane %v2986_v1, %v7689_v20  ;;  %v7731_v1 = vld [vmem:[#allocation49_spill] sm:$0xff] }
 0x5c6   :  { %3829 = vmatprep.subr.bf16.mxu0 %v4887_v6  ;;  %3870 = vmatprep.subr.bf16.mxu1 %v4890_v56 }
 0x63b   :  { %v3049_v9 = vpop.f32.mrb[40].mxu0  ;;  %v3090_v2 = vpop.f32.mrb[40].mxu1 }
 0x63c   :  { %v3050_v39 = vadd.f32 %v3049_v9, %v2991_v43  ;;  %v3051_v23 = vpop.f32.mrb[41].mxu0  ;;  %v3092_v22 = vpop.f32.mrb[41].mxu1  ;;  %v3091_v21 = vadd.f32 %v3090_v2, %v2999_v15 }
 0x63d   :  { %v3052_v18 = vadd.f32 %v3051_v23, %v2995_v38  ;;  %v3053_v11 = vpop.f32.mrb[42].mxu0  ;;  %v3094_v4 = vpop.f32.mrb[42].mxu1  ;;  %v3093_v8 = vadd.f32 %v3092_v22, %v3003_v24  ;;  %v7732_v38 = vld [vmem:[#allocation50_spill] sm:$0xff] }
 0x63e   :  { %v4518_v46 = vmul.f32 -1.442695, %v3050_v39  ;;  %v3054_v45 = vpop.f32.mrb[43].mxu0  ;;  %v3095_v6 = vpop.f32.mrb[43].mxu1 }
 0x63f   :  { %v4519_v56 = vmul.f32 -1.442695, %v3052_v18  ;;  %v4520_v20 = vmul.f32 -1.442695, %v3093_v8 }
 0x640   :  { %5032 = vpow2.f32 %v4518_v46 }
 0x641   :  { %5034 = vpow2.f32 %v4519_v56 }
 0x642   :  { %5036 = vpow2.f32 %v4520_v20 }
 0x643   :  { %5038 = vtanh.f32 %v3091_v21 }
 0x64a   :  { %v5033_v30 = vpop.eup %5032 }
 0x64b   :  { %v5035_v9 = vpop.eup %5034  ;;  %v3103_v43 = vadd.f32 1.0, %v5033_v30 }
 0x64c   :  { %v3104_v11 = vadd.f32 1.0, %v5035_v9  ;;  %v5037_v45 = vpop.eup %5036 }
 0x64d   :  { %5040 = vrcp.f32 %v3103_v43  ;;  %v5039_v4 = vpop.eup %5038  ;;  %v3113_v46 = vadd.f32 1.0, %v5037_v45 }
 0x64e   :  { %5042 = vrcp.f32 %v3104_v11 }
 0x64f   :  { %5044 = vrcp.f32 %v3113_v46 }
 0x657   :  { %v5041_v18 = vpop.eup %5040 }
 0x658   :  { %v5043_v23 = vpop.eup %5042  ;;  %v3117_v39 = vmul.f32 %v5041_v18, %v5039_v4 }
 0x659   :  { %v3116_v24 = vmul.f32 %v5043_v23, %v6896_v31  ;;  %v7733_v31 = vld [vmem:[#allocation53_spill] sm:$0xff]  ;;  %v5045_v18 = vpop.eup %5044 }
 0x65b   :  { %v7145_v22 = vadd.f32 %v3117_v39, %v3116_v24  ;;  %v3353_v8 = vpop.f32.mrb[44].mxu0  ;;  %v3394_v15 = vpop.f32.mrb[44].mxu1  ;;  %v7734_v24 = vld [vmem:[#allocation51_spill] sm:$0xff] }
 0x65c   :  { %v3401_v30 = vadd.f32 %v3353_v8, %v7731_v1  ;;  %v3355_v20 = vpop.f32.mrb[45].mxu0  ;;  %v3396_v21 = vpop.f32.mrb[45].mxu1  ;;  %v3403_v8 = vadd.f32 %v3394_v15, %v7734_v24  ;;  %v4892_v24 = vld [vmem:[%s7377_s2 + $0x20] ss:$16 sps:$4 sm:$0xff]  }
 0x65d   :  { %7730 = vst [vmem:[#allocation72_spill] sm:$0xff] %v7145_v22  ;;  %5046 = vtanh.f32 %v7145_v22  ;;  %v3402_v2 = vadd.f32 %v3355_v20, %v7732_v38  ;;  %v3357_v6 = vpop.f32.mrb[46].mxu0  ;;  %v3398_v56 = vpop.f32.mrb[46].mxu1  ;;  %v3404_v4 = vadd.f32 %v3396_v21, %v7733_v31 }
 0x65e   :  { %v4553_v9 = vmul.f32 -1.442695, %v3401_v30  ;;  %v3358_v43 = vpop.f32.mrb[47].mxu0  ;;  %v3399_v11 = vpop.f32.mrb[47].mxu1 }
 0x65f   :  { %v4554_v45 = vmul.f32 -1.442695, %v3402_v2  ;;  %v4555_v39 = vmul.f32 -1.442695, %v3404_v4 }
 0x660   :  { %5048 = vpow2.f32 %v4553_v9 }
 0x661   :  { %5050 = vpow2.f32 %v4554_v45 }
 0x662   :  { %5052 = vpow2.f32 %v4555_v39  ;;  %v4894_v39 = vld [vmem:[%s7377_s2 + $0x24] ss:$16 sps:$4 sm:$0xff]  }
 0x663   :  { %5054 = vtanh.f32 %v3403_v8  ;;  %v4895_v8 = vld [vmem:[%s7377_s2 + $0x28] ss:$16 sps:$4 sm:$0xff]  }
 0x667   :  { %v5047_v23 = vpop.eup %5046 }
 0x668   :  { %v3120_v46 = vmul.f32 %v5047_v23, %v5045_v18  ;;  %v4885_v18 = vld [vmem:[%s7377_s2] ss:$16 sps:$4 sm:$0xff]  }
 0x66a   :  { %v5049_v1 = vpop.eup %5048  ;;  %v3121_v22 = vpack.c.bf16 %v3120_v46, %v3120_v46  ;;  %v4897_v46 = vld [vmem:[%s7377_s2 + $0x2c] ss:$16 sps:$4 sm:$0xff]  }
 0x66b   :  { %v5051_v57 = vpop.eup %5050  ;;  %v3411_v20 = vadd.f32 1.0, %v5049_v1  ;;  %v4900_v1 = vld [vmem:[%s7377_s2 + $0x44] ss:$16 sps:$4 sm:$0xff]  }
 0x66c   :  { %3122 = vst [vmem:[#allocation3 + $0x4] sm:$0xf] %v3121_v22  ;;  %v3412_v30 = vadd.f32 1.0, %v5051_v57  ;;  %v5053_v38 = vpop.eup %5052 }
 0x66d   :  { %5056 = vrcp.f32 %v3411_v20  ;;  %v5055_v2 = vpop.eup %5054  ;;  %v3421_v9 = vadd.f32 1.0, %v5053_v38  ;;  %v4903_v20 = vld [vmem:[%s7377_s2 + $0x4c] ss:$16 sps:$4 sm:$0xff]   ;;  %v4901_v38 = vld [vmem:[%s7377_s2 + $0x48] ss:$16 sps:$4 sm:$0xff]  }
 0x66e   :  { %5058 = vrcp.f32 %v3412_v30  ;;  %v4898_v30 = vld [vmem:[%s7377_s2 + $0x40] ss:$16 sps:$4 sm:$0xff]  }
 0x66f   :  { %5060 = vrcp.f32 %v3421_v9  ;;  %v4915_v9 = vld [vmem:[%s7377_s2 + $0x8c] ss:$16 sps:$4 sm:$0xff]  }
 0x677   :  { %v5057_v6 = vpop.eup %5056 }
 0x678   :  { %v5059_v21 = vpop.eup %5058  ;;  %v3425_v56 = vmul.f32 %v5057_v6, %v5055_v2  ;;  %v4906_v2 = vld [vmem:[%s7377_s2 + $0x64] ss:$16 sps:$4 sm:$0xff]   ;;  %v4904_v6 = vld [vmem:[%s7377_s2 + $0x60] ss:$16 sps:$4 sm:$0xff]  }
 0x679   :  { %v3424_v43 = vmul.f32 %v5059_v21, %v6904_v26  ;;  %v5061_v15 = vpop.eup %5060  ;;  %v4888_v26 = vld [vmem:[%s7377_s2 + $0x8] ss:$16 sps:$4 sm:$0xff]  }
 0x67a   :  { %v4907_v21 = vld [vmem:[%s7377_s2 + $0x68] ss:$16 sps:$4 sm:$0xff]  }
 0x67b   :  { %v7153_v11 = vadd.f32 %v3425_v56, %v3424_v43  ;;  %v4912_v56 = vld [vmem:[%s7377_s2 + $0x84] ss:$16 sps:$4 sm:$0xff]   ;;  %v4910_v43 = vld [vmem:[%s7377_s2 + $0x80] ss:$16 sps:$4 sm:$0xff]  }
 0x67d   :  { %5062 = vtanh.f32 %v7153_v11 }
 0x687   :  { %v5063_v45 = vpop.eup %5062 }
 0x688   :  { %v3428_v22 = vmul.f32 %v5063_v45, %v5061_v15  ;;  %v4913_v15 = vld [vmem:[%s7377_s2 + $0x88] ss:$16 sps:$4 sm:$0xff]   ;;  %v4918_v45 = vld [vmem:[%s7377_s2 + $0xa4] ss:$16 sps:$4 sm:$0xff]  }
 0x68a   :  { %v7156_v31 = vpack.c.bf16 %v3428_v22, %v3428_v22  ;;  %v4921_v22 = vld [vmem:[%s7377_s2 + $0xac] ss:$16 sps:$4 sm:$0xff]  }
 0x68c   :  { %3430 = vst [vmem:[#allocation3] sm:$0xf] %v7156_v31 }
 0x693   :  { %v3431_v57 = vld [vmem:[#allocation3] sm:$0xff] }
 0x694   :  { %v4557_v4 = vcombine.high %v3431_v57, %v3431_v57  ;;  %v4556_v23 = vcombine.low %v3431_v57, %v3431_v57  ;;  %v4916_v57 = vld [vmem:[%s7377_s2 + $0xa0] ss:$16 sps:$4 sm:$0xff]  }
 0x696   :  { %3557 = vmatprep.mubr.bf16.mxu0 %v4557_v4  ;;  %3598 = vmatprep.mubr.bf16.mxu1 %v4557_v4  ;;  %v4919_v4 = vld [vmem:[%s7377_s2 + $0xa8] ss:$16 sps:$4 sm:$0xff]  }
 0x697   :  { %3558 = vmatmul.mubr.bf16.vlgmr.msra.gmra.mrb[48].mxu0 %v4556_v23  ;;  %3599 = vmatmul.mubr.bf16.vlgmr.msra.gmra.mrb[48].mxu1 %v4556_v23  ;;  %v4922_v23 = vld [vmem:[%s7377_s2 + $0xc0] ss:$16 sps:$4 sm:$0xff]  }
 0x698   :  { %3830 = vmatpush1.bf16.msra.mxu0 %v4885_v18  ;;  %3871 = vmatpush1.bf16.msra.mxu1 %v4888_v26  ;;  %v4924_v18 = vld [vmem:[%s7377_s2 + $0xc4] ss:$16 sps:$4 sm:$0xff]   ;;  %v4927_v26 = vld [vmem:[%s7377_s2 + $0xcc] ss:$16 sps:$4 sm:$0xff]  }
 0x699   :  { %3831 = vmatprep.subr.bf16.mxu0 %v4894_v39  ;;  %3872 = vmatprep.subr.bf16.mxu1 %v4897_v46  ;;  %v4925_v39 = vld [vmem:[%s7377_s2 + $0xc8] ss:$16 sps:$4 sm:$0xff]   ;;  %v4930_v46 = vld [vmem:[%s7377_s2 + $0xe4] ss:$16 sps:$4 sm:$0xff]  }
 0x69a   :  { %3861 = vmatprep.mubr.bf16.mxu0 %v7599_v35  ;;  %3902 = vmatprep.mubr.bf16.mxu1 %v7599_v35  ;;  %v4909_v35 = vld [vmem:[%s7377_s2 + $0x6c] ss:$16 sps:$4 sm:$0xff]  }
 0x69c   :  { %3832 = vmatpush1.bf16.msra.mxu0 %v4892_v24  ;;  %3873 = vmatpush1.bf16.msra.mxu1 %v4895_v8  ;;  %v4933_v24 = vld [vmem:[%s7377_s2 + $0xec] ss:$16 sps:$4 sm:$0xff]   ;;  %v4928_v8 = vld [vmem:[%s7377_s2 + $0xe0] ss:$16 sps:$4 sm:$0xff]  }
 0x69d   :  { %3833 = vmatprep.subr.bf16.mxu0 %v4900_v1  ;;  %3874 = vmatprep.subr.bf16.mxu1 %v4903_v20  ;;  %v4931_v1 = vld [vmem:[%s7377_s2 + $0xe8] ss:$16 sps:$4 sm:$0xff]  }
 0x6a0   :  { %3834 = vmatpush1.bf16.msra.mxu0 %v4898_v30  ;;  %3875 = vmatpush1.bf16.msra.mxu1 %v4901_v38 }
 0x6a1   :  { %3835 = vmatprep.subr.bf16.mxu0 %v4906_v2  ;;  %3876 = vmatprep.subr.bf16.mxu1 %v4909_v35 }
 0x6a4   :  { %3836 = vmatpush1.bf16.msra.mxu0 %v4904_v6  ;;  %3877 = vmatpush1.bf16.msra.mxu1 %v4907_v21  ;;  %v7763_v21 = vld [vmem:[#allocation34_spill] sm:$0xff] }
 0x6a5   :  { %3837 = vmatprep.subr.bf16.mxu0 %v4912_v56  ;;  %3878 = vmatprep.subr.bf16.mxu1 %v4915_v9 }
 0x6a8   :  { %3838 = vmatpush1.bf16.msra.mxu0 %v4910_v43  ;;  %3879 = vmatpush1.bf16.msra.mxu1 %v4913_v15 }
 0x6a9   :  { %3839 = vmatprep.subr.bf16.mxu0 %v4918_v45  ;;  %3880 = vmatprep.subr.bf16.mxu1 %v4921_v22 }
 0x6ac   :  { %3840 = vmatpush1.bf16.msra.mxu0 %v4916_v57  ;;  %3881 = vmatpush1.bf16.msra.mxu1 %v4919_v4 }
 0x6ad   :  { %3841 = vmatprep.subr.bf16.mxu0 %v4924_v18  ;;  %3882 = vmatprep.subr.bf16.mxu1 %v4927_v26 }
 0x6b0   :  { %3842 = vmatpush1.bf16.msra.mxu0 %v4922_v23  ;;  %3883 = vmatpush1.bf16.msra.mxu1 %v4925_v39 }
 0x6b1   :  { %3843 = vmatprep.subr.bf16.mxu0 %v4930_v46  ;;  %3884 = vmatprep.subr.bf16.mxu1 %v4933_v24  ;;  %v7764_v24 = vld [vmem:[#allocation72_spill] sm:$0xff] }
 0x6b4   :  { %3844 = vmatpush1.bf16.msra.mxu0 %v4928_v8  ;;  %3885 = vmatpush1.bf16.msra.mxu1 %v4931_v1 }
 0x6b5   :  { %4035 = vmatprep.subr.bf16.mxu0 %v6939_v12  ;;  %4076 = vmatprep.subr.bf16.mxu1 %v6941_v36  ;;  %v7735_v12 = vld [vmem:[#allocation89_spill] sm:$0xff]  ;;  %v7736_v36 = vld [vmem:[#allocation90_spill] sm:$0xff] }
 0x6b7   :  { %3862 = vmatmul.mubr.bf16.vlgmr.msra.gmra.mrb[52].mxu0 %v7156_v31  ;;  %3903 = vmatmul.mubr.bf16.vlgmr.msra.gmra.mrb[52].mxu1 %v7156_v31 }
 0x6b8   :  { %4036 = vmatpush1.bf16.msra.mxu0 %v6945_v55  ;;  %4077 = vmatpush1.bf16.msra.mxu1 %v6947_v49  ;;  %v7737_v55 = vld [vmem:[#allocation41_spill] sm:$0xff]  ;;  %v7738_v49 = vld [vmem:[#allocation42_spill] sm:$0xff] }
 0x6b9   :  { %4037 = vmatprep.subr.bf16.mxu0 %v6951_v51  ;;  %4078 = vmatprep.subr.bf16.mxu1 %v6953_v37  ;;  %v7739_v51 = vld [vmem:[#allocation45_spill] sm:$0xff]  ;;  %v7740_v37 = vld [vmem:[#allocation43_spill] sm:$0xff] }
 0x6bc   :  { %4038 = vmatpush1.bf16.msra.mxu0 %v6957_v52  ;;  %4079 = vmatpush1.bf16.msra.mxu1 %v6959_v50  ;;  %v7741_v52 = vld [vmem:[#allocation58_spill] sm:$0xff]  ;;  %v7742_v50 = vld [vmem:[#allocation59_spill] sm:$0xff] }
 0x6bd   :  { %4039 = vmatprep.subr.bf16.mxu0 %v6963_v53  ;;  %4080 = vmatprep.subr.bf16.mxu1 %v6965_v10  ;;  %v7743_v53 = vld [vmem:[#allocation60_spill] sm:$0xff]  ;;  %v7744_v10 = vld [vmem:[#allocation61_spill] sm:$0xff] }
 0x6c0   :  { %4040 = vmatpush1.bf16.msra.mxu0 %v6969_v34  ;;  %4081 = vmatpush1.bf16.msra.mxu1 %v6971_v0  ;;  %v7745_v34 = vld [vmem:[#allocation62_spill] sm:$0xff]  ;;  %v7746_v0 = vld [vmem:[#allocation63_spill] sm:$0xff] }
 0x6c1   :  { %4041 = vmatprep.subr.bf16.mxu0 %v6975_v13  ;;  %4082 = vmatprep.subr.bf16.mxu1 %v6977_v41  ;;  %v7747_v13 = vld [vmem:[#allocation64_spill] sm:$0xff]  ;;  %v7748_v41 = vld [vmem:[#allocation65_spill] sm:$0xff] }
 0x6c4   :  { %4042 = vmatpush1.bf16.msra.mxu0 %v6981_v7  ;;  %4083 = vmatpush1.bf16.msra.mxu1 %v6983_v25  ;;  %v7749_v7 = vld [vmem:[#allocation66_spill] sm:$0xff]  ;;  %v7750_v25 = vld [vmem:[#allocation67_spill] sm:$0xff] }
 0x6c5   :  { %4043 = vmatprep.subr.bf16.mxu0 %v6987_v27  ;;  %4084 = vmatprep.subr.bf16.mxu1 %v6989_v29  ;;  %v7751_v27 = vld [vmem:[#allocation68_spill] sm:$0xff]  ;;  %v7752_v29 = vld [vmem:[#allocation35_spill] sm:$0xff] }
 0x6c8   :  { %4044 = vmatpush1.bf16.msra.mxu0 %v6993_v42  ;;  %4085 = vmatpush1.bf16.msra.mxu1 %v6995_v40  ;;  %v7753_v42 = vld [vmem:[#allocation37_spill] sm:$0xff]  ;;  %v7754_v40 = vld [vmem:[#allocation38_spill] sm:$0xff] }
 0x6c9   :  { %4045 = vmatprep.subr.bf16.mxu0 %v6999_v54  ;;  %4086 = vmatprep.subr.bf16.mxu1 %v7001_v44  ;;  %v7755_v54 = vld [vmem:[#allocation40_spill] sm:$0xff]  ;;  %v7756_v44 = vld [vmem:[#allocation39_spill] sm:$0xff] }
 0x6cc   :  { %4046 = vmatpush1.bf16.msra.mxu0 %v7005_v63  ;;  %4087 = vmatpush1.bf16.msra.mxu1 %v7007_v47  ;;  %v7757_v63 = vld [vmem:[#allocation57_spill] sm:$0xff] }
 0x6cd   :  { %4047 = vmatprep.subr.bf16.mxu0 %v7011_v33  ;;  %4088 = vmatprep.subr.bf16.mxu1 %v7013_v48  ;;  %v7758_v47 = vld [vmem:[#allocation69_spill] sm:$0xff]  ;;  %v7759_v33 = vld [vmem:[#allocation70_spill] sm:$0xff]  ;;  %v7760_v48 = vld [vmem:[#allocation71_spill] sm:$0xff] }
 0x6d0   :  { %4048 = vmatpush1.bf16.msra.mxu0 %v7017_v3  ;;  %4089 = vmatpush1.bf16.msra.mxu1 %v7019_v5  ;;  %v3496_v3 = vld [vmem:[%s7380_s5] sm:$0xf]  ;;  %v7761_v5 = vld [vmem:[#allocation33_spill] sm:$0xff] }
 0x6d1   :  { %4049 = vmatprep.subr.bf16.mxu0 %v7023_v58  ;;  %4090 = vmatprep.subr.bf16.mxu1 %v7025_v59  ;;  %v3501_v58 = vrot.slane %v3496_v3, %v7761_v5  ;;  %v7762_v59 = vld [vmem:[#allocation36_spill] sm:$0xff]  ;;  %v3513_v35 = vrot.slane %v3496_v3, %v7589_v28  ;;  %v3509_v56 = vrot.slane %v3496_v3, %v7763_v21 }
 0x6d4   :  { %4050 = vmatpush1.bf16.msra.mxu0 %v7029_v60  ;;  %4091 = vmatpush1.bf16.msra.mxu1 %v7031_v61  ;;  %v3505_v60 = vrot.slane %v3496_v3, %v7762_v59 }
 0x6d5   :  { %4051 = vmatprep.subr.bf16.mxu0 %v7035_v62  ;;  %4092 = vmatprep.subr.bf16.mxu1 %v7037_v32 }
 0x6d8   :  { %4052 = vmatpush1.bf16.msra.mxu0 %v7041_v14  ;;  %4093 = vmatpush1.bf16.msra.mxu1 %v7043_v16 }
 0x6d9   :  { %4053 = vmatprep.subr.bf16.mxu0 %v7047_v17  ;;  %4094 = vmatprep.subr.bf16.mxu1 %v7049_v19 }
 0x6dc   :  { %4054 = vmatpush1.bf16.msra.mxu0 %v7735_v12  ;;  %4095 = vmatpush1.bf16.msra.mxu1 %v7736_v36 }
 0x6dd   :  { %4055 = vmatprep.subr.bf16.mxu0 %v7737_v55  ;;  %4096 = vmatprep.subr.bf16.mxu1 %v7738_v49  ;;  %v7765_v55 = vld [vmem:[#allocation52_spill] sm:$0xff] }
 0x6e0   :  { %4056 = vmatpush1.bf16.msra.mxu0 %v7739_v51  ;;  %4097 = vmatpush1.bf16.msra.mxu1 %v7740_v37 }
 0x6e1   :  { %4057 = vmatprep.subr.bf16.mxu0 %v7741_v52  ;;  %4098 = vmatprep.subr.bf16.mxu1 %v7742_v50  ;;  %v7766_v52 = vld [vmem:[#allocation54_spill] sm:$0xff] }
 0x6e4   :  { %4058 = vmatpush1.bf16.msra.mxu0 %v7743_v53  ;;  %4099 = vmatpush1.bf16.msra.mxu1 %v7744_v10 }
 0x6e5   :  { %4059 = vmatprep.subr.bf16.mxu0 %v7745_v34  ;;  %4100 = vmatprep.subr.bf16.mxu1 %v7746_v0 }
 0x6e8   :  { %4060 = vmatpush1.bf16.msra.mxu0 %v7747_v13  ;;  %4101 = vmatpush1.bf16.msra.mxu1 %v7748_v41 }
 0x6e9   :  { %4061 = vmatprep.subr.bf16.mxu0 %v7749_v7  ;;  %4102 = vmatprep.subr.bf16.mxu1 %v7750_v25  ;;  %v7767_v7 = vld [vmem:[#allocation56_spill] sm:$0xff] }
 0x6ec   :  { %4062 = vmatpush1.bf16.msra.mxu0 %v7751_v27  ;;  %4103 = vmatpush1.bf16.msra.mxu1 %v7752_v29 }
 0x6ed   :  { %4063 = vmatprep.subr.bf16.mxu0 %v7753_v42  ;;  %4104 = vmatprep.subr.bf16.mxu1 %v7754_v40 }
 0x6f0   :  { %4064 = vmatpush1.bf16.msra.mxu0 %v7755_v54  ;;  %4105 = vmatpush1.bf16.msra.mxu1 %v7756_v44  ;;  %v7768_v54 = vld [vmem:[#allocation55_spill] sm:$0xff] }
 0x6f1   :  { %4065 = vmatprep.subr.bf16.mxu0 %v7757_v63  ;;  %4106 = vmatprep.subr.bf16.mxu1 %v7758_v47 }
 0x6f4   :  { %4066 = vmatpush1.bf16.msra.mxu0 %v7759_v33  ;;  %4107 = vmatpush1.bf16.msra.mxu1 %v7760_v48 }
 0x76a   :  { %v3559_v61 = vpop.f32.mrb[48].mxu0  ;;  %v3600_v62 = vpop.f32.mrb[48].mxu1 }
 0x76b   :  { %v3560_v32 = vadd.f32 %v3559_v61, %v3501_v58  ;;  %v3561_v14 = vpop.f32.mrb[49].mxu0  ;;  %v3602_v16 = vpop.f32.mrb[49].mxu1  ;;  %v3601_v43 = vadd.f32 %v3600_v62, %v3509_v56 }
 0x76c   :  { %v3562_v17 = vadd.f32 %v3561_v14, %v3505_v60  ;;  %v3563_v19 = vpop.f32.mrb[50].mxu0  ;;  %v3604_v31 = vpop.f32.mrb[50].mxu1  ;;  %v3603_v6 = vadd.f32 %v3602_v16, %v3513_v35 }
 0x76d   :  { %v4558_v20 = vmul.f32 -1.442695, %v3560_v32  ;;  %v3564_v30 = vpop.f32.mrb[51].mxu0  ;;  %v3605_v38 = vpop.f32.mrb[51].mxu1 }
 0x76e   :  { %v4559_v2 = vmul.f32 -1.442695, %v3562_v17  ;;  %v4560_v9 = vmul.f32 -1.442695, %v3603_v6  ;;  %v4006_v6 = vld [vmem:[%s7380_s5] sm:$0xf] }
 0x76f   :  { %5064 = vpow2.f32 %v4558_v20  ;;  %v4015_v56 = vrot.slane %v4006_v6, %v7762_v59 }
 0x770   :  { %5066 = vpow2.f32 %v4559_v2 }
 0x771   :  { %5068 = vpow2.f32 %v4560_v9 }
 0x772   :  { %5070 = vtanh.f32 %v3601_v43 }
 0x779   :  { %v5065_v15 = vpop.eup %5064 }
 0x77a   :  { %v5067_v45 = vpop.eup %5066  ;;  %v3613_v22 = vadd.f32 1.0, %v5065_v15 }
 0x77b   :  { %v3614_v57 = vadd.f32 1.0, %v5067_v45  ;;  %v5069_v4 = vpop.eup %5068 }
 0x77c   :  { %5072 = vrcp.f32 %v3613_v22  ;;  %v5071_v18 = vpop.eup %5070  ;;  %v3623_v46 = vadd.f32 1.0, %v5069_v4 }
 0x77d   :  { %5074 = vrcp.f32 %v3614_v57 }
 0x77e   :  { %5076 = vrcp.f32 %v3623_v46 }
 0x786   :  { %v5073_v26 = vpop.eup %5072 }
 0x787   :  { %v5075_v23 = vpop.eup %5074  ;;  %v3627_v39 = vmul.f32 %v5073_v26, %v5071_v18 }
 0x788   :  { %v3626_v8 = vmul.f32 %v5075_v23, %v7764_v24  ;;  %v5077_v27 = vpop.eup %5076  ;;  %v4023_v24 = vrot.slane %v4006_v6, %v7589_v28 }
 0x78a   :  { %v7325_v1 = vadd.f32 %v3627_v39, %v3626_v8  ;;  %v3863_v12 = vpop.f32.mrb[52].mxu0  ;;  %v3904_v36 = vpop.f32.mrb[52].mxu1 }
 0x78b   :  { %v3911_v49 = vadd.f32 %v3863_v12, %v7765_v55  ;;  %v3865_v51 = vpop.f32.mrb[53].mxu0  ;;  %v3906_v37 = vpop.f32.mrb[53].mxu1  ;;  %v3913_v44 = vadd.f32 %v3904_v36, %v7768_v54 }
 0x78c   :  { %5078 = vtanh.f32 %v7325_v1  ;;  %v3912_v50 = vadd.f32 %v3865_v51, %v7766_v52  ;;  %v3867_v53 = vpop.f32.mrb[54].mxu0  ;;  %v3908_v10 = vpop.f32.mrb[54].mxu1  ;;  %v3914_v25 = vadd.f32 %v3906_v37, %v7767_v7 }
 0x78d   :  { %v4593_v34 = vmul.f32 -1.442695, %v3911_v49  ;;  %v3868_v0 = vpop.f32.mrb[55].mxu0  ;;  %v3909_v13 = vpop.f32.mrb[55].mxu1 }
 0x78e   :  { %v4594_v41 = vmul.f32 -1.442695, %v3912_v50  ;;  %v4595_v42 = vmul.f32 -1.442695, %v3914_v25 }
 0x78f   :  { %5080 = vpow2.f32 %v4593_v34 }
 0x790   :  { %5082 = vpow2.f32 %v4594_v41 }
 0x791   :  { %5084 = vpow2.f32 %v4595_v42 }
 0x792   :  { %5086 = vtanh.f32 %v3913_v44 }
 0x796   :  { %v5079_v29 = vpop.eup %5078 }
 0x797   :  { %v3630_v40 = vmul.f32 %v5079_v29, %v5077_v27 }
 0x799   :  { %v5081_v63 = vpop.eup %5080  ;;  %v3631_v47 = vpack.c.bf16 %v3630_v40, %v3630_v40 }
 0x79a   :  { %v5083_v33 = vpop.eup %5082  ;;  %v3921_v48 = vadd.f32 1.0, %v5081_v63 }
 0x79b   :  { %3632 = vst [vmem:[#allocation3 + $0x4] sm:$0xf] %v3631_v47  ;;  %v3922_v3 = vadd.f32 1.0, %v5083_v33  ;;  %v5085_v58 = vpop.eup %5084 }
 0x79c   :  { %5088 = vrcp.f32 %v3921_v48  ;;  %v5087_v60 = vpop.eup %5086  ;;  %v3931_v14 = vadd.f32 1.0, %v5085_v58 }
 0x79d   :  { %5090 = vrcp.f32 %v3922_v3 }
 0x79e   :  { %5092 = vrcp.f32 %v3931_v14 }
 0x7a6   :  { %v5089_v61 = vpop.eup %5088 }
 0x7a7   :  { %v5091_v62 = vpop.eup %5090  ;;  %v3935_v32 = vmul.f32 %v5089_v61, %v5087_v60 }
 0x7a8   :  { %v3934_v16 = vmul.f32 %v5091_v62, %v7153_v11  ;;  %v5093_v19 = vpop.eup %5092  ;;  %v4011_v11 = vrot.slane %v4006_v6, %v7761_v5  ;;  %v4019_v5 = vrot.slane %v4006_v6, %v7763_v21 }
 0x7aa   :  { %v3936_v17 = vadd.f32 %v3935_v32, %v3934_v16 }
 0x7ac   :  { %5094 = vtanh.f32 %v3936_v17 }
 0x7b6   :  { %v5095_v31 = vpop.eup %5094 }
 0x7b7   :  { %v3938_v20 = vmul.f32 %v5095_v31, %v5093_v19 }
 0x7b9   :  { %v3939_v30 = vpack.c.bf16 %v3938_v20, %v3938_v20 }
 0x7bb   :  { %3940 = vst [vmem:[#allocation3] sm:$0xf] %v3939_v30 }
 0x7c2   :  { %v3941_v38 = vld [vmem:[#allocation3] sm:$0xff] }
 0x7c3   :  { %v4597_v2 = vcombine.high %v3941_v38, %v3941_v38  ;;  %v4596_v35 = vcombine.low %v3941_v38, %v3941_v38 }
 0x7c5   :  { %4067 = vmatprep.mubr.bf16.mxu0 %v4597_v2  ;;  %4108 = vmatprep.mubr.bf16.mxu1 %v4597_v2 }
 0x7c6   :  { %4068 = vmatmul.mubr.bf16.vlgmr.msra.gmra.mrb[56].mxu0 %v4596_v35  ;;  %4109 = vmatmul.mubr.bf16.vlgmr.msra.gmra.mrb[56].mxu1 %v4596_v35 }
 0x899   :  { %v4069_v9 = vpop.f32.mrb[56].mxu0  ;;  %v4110_v43 = vpop.f32.mrb[56].mxu1 }
 0x89a   :  { %v4070_v15 = vadd.f32 %v4069_v9, %v4011_v11  ;;  %v4071_v45 = vpop.f32.mrb[57].mxu0  ;;  %v4112_v22 = vpop.f32.mrb[57].mxu1  ;;  %v4111_v12 = vadd.f32 %v4110_v43, %v4019_v5 }
 0x89b   :  { %v4072_v57 = vadd.f32 %v4071_v45, %v4015_v56  ;;  %v4073_v4 = vpop.f32.mrb[58].mxu0  ;;  %v4114_v18 = vpop.f32.mrb[58].mxu1  ;;  %v4113_v8 = vadd.f32 %v4112_v22, %v4023_v24 }
 0x89c   :  { %v4598_v26 = vmul.f32 -1.442695, %v4070_v15  ;;  %v4074_v23 = vpop.f32.mrb[59].mxu0  ;;  %v4115_v39 = vpop.f32.mrb[59].mxu1 }
 0x89d   :  { %v4599_v46 = vmul.f32 -1.442695, %v4072_v57  ;;  %v4600_v59 = vmul.f32 -1.442695, %v4113_v8 }
 0x89e   :  { %5096 = vpow2.f32 %v4598_v26 }
 0x89f   :  { %5098 = vpow2.f32 %v4599_v46 }
 0x8a0   :  { %5100 = vpow2.f32 %v4600_v59 }
 0x8a1   :  { %5102 = vtanh.f32 %v4111_v12 }
 0x8a8   :  { %v5097_v36 = vpop.eup %5096 }
 0x8a9   :  { %v5099_v55 = vpop.eup %5098  ;;  %v4123_v49 = vadd.f32 1.0, %v5097_v36 }
 0x8aa   :  { %v4124_v51 = vadd.f32 1.0, %v5099_v55  ;;  %v5101_v37 = vpop.eup %5100 }
 0x8ab   :  { %5104 = vrcp.f32 %v4123_v49  ;;  %v5103_v52 = vpop.eup %5102  ;;  %v4133_v10 = vadd.f32 1.0, %v5101_v37 }
 0x8ac   :  { %5106 = vrcp.f32 %v4124_v51 }
 0x8ad   :  { %5108 = vrcp.f32 %v4133_v10 }
 0x8b5   :  { %v5105_v50 = vpop.eup %5104 }
 0x8b6   :  { %v5107_v53 = vpop.eup %5106  ;;  %v4137_v28 = vmul.f32 %v5105_v50, %v5103_v52 }
 0x8b7   :  { %v4136_v34 = vmul.f32 %v5107_v53, %v7325_v1  ;;  %v5109_v21 = vpop.eup %5108 }
 0x8b9   :  { %v4138_v0 = vadd.f32 %v4137_v28, %v4136_v34 }
 0x8bb   :  { %5110 = vtanh.f32 %v4138_v0 }
 0x8c5   :  { %v5111_v13 = vpop.eup %5110 }
 0x8c6   :  { %v4140_v41 = vmul.f32 %v5111_v13, %v5109_v21 }
 0x8c8   :  { %v4141_v7 = vpack.c.bf16 %v4140_v41, %v4140_v41 }
 0x8ca   :  { %4142 = vst [vmem:[#allocation3 + $0x4] sm:$0xf] %v4141_v7 }
 0x8cb   :  { %5136 = dma.done.wait [#allocation7 + $0x1], 1024 }
 0x8cc   :  { %5137 = vsyncadd [#allocation7 + $0x1], 4294966272 }
 0x8cd   :  { %5138 = dma.done.wait [#allocation7 + $0x2], 1024 }
 0x8ce   :  { %5139 = vsyncadd [#allocation7 + $0x2], 4294966272  ;;  %v5143_v25 = vmov 0.0   ;;  %vm5144_vm0 = vmmov 0   ;;  %v7769_v27 = vld [vmem:[#allocation17_spill] sm:$0xff]  ;;  %v7771_v29 = vld [vmem:[#allocation18_spill] sm:$0xff] }
 0x8cf   :  { %4624 = vmatprep.subr.bf16.mxu0 %v5143_v25  ;;  %4640 = vmatprep.mubr.msk.bf16.mxu0 %vm5144_vm0, %v5143_v25  ;;  %v7770_v1 = vld [vmem:[#allocation25_spill] sm:$0xff]  ;;  %v7772_v42 = vld [vmem:[#allocation26_spill] sm:$0xff]  ;;  %v7773_v40 = vld [vmem:[#allocation19_spill] sm:$0xff]  ;;  %s5145_s25 = smov [#allocation8]   ;;  %vm4263_vm1 = vcmask 523264  }
 0x8d0   :  { %4625 = vmatpush3.bf16.msra.mxu0 %v7769_v27  ;;  %4644 = vmatprep.subr.bf16.mxu1 %v5143_v25  ;;  %v7774_v54 = vld [vmem:[#allocation27_spill] sm:$0xff]  ;;  %v7775_v44 = vld [vmem:[#allocation20_spill] sm:$0xff]  ;;  %v7777_v47 = vld [vmem:[#allocation21_spill] sm:$0xff]  ;;  %s4271_s26 = sshll.u32 %s5145_s25, 4  ;;  %s4272_s26 = int_to_ptr.vmem [resolvable:$true] %s4271_s26 }
 0x8d1   :  { %4626 = vmatprep.subr.bf16.mxu0 %v5143_v25  ;;  %4645 = vmatpush3.bf16.msra.mxu1 %v7770_v1  ;;  %v7776_v63 = vld [vmem:[#allocation28_spill] sm:$0xff]  ;;  %v7778_v33 = vld [vmem:[#allocation29_spill] sm:$0xff]  ;;  %v7779_v48 = vld [vmem:[#allocation22_spill] sm:$0xff]  ;;  %p5117_p1 = scmp.lt.s32.totalorder %s4272_s26, %s4272_s26 }
 0x8d2   :  { %4646 = vmatprep.subr.bf16.mxu1 %v5143_v25  ;;  %4660 = vmatprep.mubr.msk.bf16.mxu1 %vm5144_vm0, %v5143_v25  ;;  %v7780_v3 = vld [vmem:[#allocation30_spill] sm:$0xff]  ;;  %v7781_v58 = vld [vmem:[#allocation23_spill] sm:$0xff]  ;;  %v7783_v61 = vld [vmem:[#allocation24_spill] sm:$0xff] }
 0x8d3   :  { %v7782_v60 = vld [vmem:[#allocation31_spill] sm:$0xff]  ;;  %v7784_v32 = vld [vmem:[#allocation32_spill] sm:$0xff] }
 0x8d4   :  { %4627 = vmatpush3.bf16.msra.mxu0 %v7771_v29  ;;  %v4149_v62 = vld [vmem:[#allocation3 + $0x4] sm:$0xf]  ;;  %v4601_v14 = vld [vmem:[%s7382_s7] ss:$0 sm:$0xff]  ;;  %s5112_s7 = scalar_lea.vmem %s4272_s26, 128 }
 0x8d5   :  { %4628 = vmatprep.subr.bf16.mxu0 %v5143_v25  ;;  %4647 = vmatpush3.bf16.msra.mxu1 %v7772_v42  ;;  %v4602_v2 = vld [vmem:[%s7384_s9] ss:$0 sm:$0xff]  ;;  %p5113_p0 = scmp.ne.s32.totalorder %s4272_s26, %s5112_s7  ;;  %p5118_p2 = scmp.lt.s32.totalorder %s5112_s7, %s5112_s7 }
 0x8d6   :  { %4648 = vmatprep.subr.bf16.mxu1 %v5143_v25 }
 0x8d7   :  { %p5119_p3 = por %p5118_p2, %p5117_p1 }
 0x8d8   :  { %4629 = vmatpush3.bf16.msra.mxu0 %v7773_v40 }
 0x8d9   :  { %4630 = vmatprep.subr.bf16.mxu0 %v5143_v25  ;;  %4649 = vmatpush3.bf16.msra.mxu1 %v7774_v54  ;;  %p5120_p4 = pnand %p5119_p3, %p5113_p0 }
 0x8da   :  { %4650 = vmatprep.subr.bf16.mxu1 %v5143_v25 }
 0x8dc   :  { %4631 = vmatpush3.bf16.msra.mxu0 %v7775_v44 }
 0x8dd   :  { %4632 = vmatprep.subr.bf16.mxu0 %v5143_v25  ;;  %4651 = vmatpush3.bf16.msra.mxu1 %v7776_v63 }
 0x8de   :  { %4652 = vmatprep.subr.bf16.mxu1 %v5143_v25 }
 0x8e0   :  { %4633 = vmatpush3.bf16.msra.mxu0 %v7777_v47 }
 0x8e1   :  { %4634 = vmatprep.subr.bf16.mxu0 %v5143_v25  ;;  %4653 = vmatpush3.bf16.msra.mxu1 %v7778_v33 }
 0x8e2   :  { %4654 = vmatprep.subr.bf16.mxu1 %v5143_v25 }
 0x8e4   :  { %4635 = vmatpush3.bf16.msra.mxu0 %v7779_v48 }
 0x8e5   :  { %4636 = vmatprep.subr.bf16.mxu0 %v5143_v25  ;;  %4655 = vmatpush3.bf16.msra.mxu1 %v7780_v3 }
 0x8e6   :  { %4656 = vmatprep.subr.bf16.mxu1 %v5143_v25 }
 0x8e8   :  { %4637 = vmatpush3.bf16.msra.mxu0 %v7781_v58 }
 0x8e9   :  { %4638 = vmatprep.subr.bf16.mxu0 %v5143_v25  ;;  %4657 = vmatpush3.bf16.msra.mxu1 %v7782_v60 }
 0x8ea   :  { %4658 = vmatprep.subr.bf16.mxu1 %v5143_v25 }
 0x8ec   :  { %4639 = vmatpush3.bf16.msra.mxu0 %v7783_v61 }
 0x8ed   :  { %4659 = vmatpush3.bf16.msra.mxu1 %v7784_v32 }
 0x8ef   :  { %4641 = vmatmul.mubr.bf16.vlgmr.msra.gmra.mrb[60].mxu0 %v4149_v62 }
 0x9c2   :  { %v4199_v16 = vpop.f32.mrb[60].mxu0 }
 0x9c3   :  { %v4200_v17 = vadd.f32 %v4601_v14, %v4199_v16  ;;  %v4642_v19 = vpop.f32.mrb[61].mxu0 }
 0x9c4   :  { %v4202_v31 = vpop.f32.mrb[62].mxu0 }
 0x9c5   :  { %v4205_v20 = vmax.f32 %v4200_v17, 0.0  ;;  %v4643_v30 = vpop.f32.mrb[63].mxu0 }
 0x9c7   :  { %v4206_v38 = vpack.c.bf16 %v4205_v20, %v4205_v20 }
 0x9c9   :  { %4661 = vmatmul.mubr.bf16.vlgmr.msra.gmra.mrb[60].mxu1 %v4206_v38 }
 0xa9c   :  { %v4256_v35 = vpop.f32.mrb[60].mxu1 }
 0xa9d   :  { %v4257_v6 = vadd.f32 %v4602_v2, %v4256_v35  ;;  %v4662_v11 = vpop.f32.mrb[61].mxu1 }
 0xa9e   :  { %v4259_v56 = vpop.f32.mrb[62].mxu1 }
 0xa9f   :  { %v4262_v9 = vmax.f32 %v4257_v6, 0.0  ;;  %v4663_v43 = vpop.f32.mrb[63].mxu1 }
 0xaa1   :  { %4264 = vst.msk [vmem:[#allocation8] sm:$0xff] %vm4263_vm1, %v4262_v9 }
 0xaa2   :  { %5123 = shalt.err (!%p5120_p4)
}
 0xaa3   :  { %s5124_s27 = scalar_lea.hbm %s7385_s10, 128 }
 0xaa4   :  { %p5125_p5 = scmp.ne.s32.totalorder %s7385_s10, %s5124_s27  ;;  %p5128_p6 = scmp.lt.u32.totalorder %s5124_s27, %s7385_s10 }
 0xaa6   :  { %p5130_p7 = pnand %p5128_p6, %p5125_p5 }
 0xaa8   :  { %5133 = shalt.err (!%p5130_p7)
}
 0xaa9   :  { %4274 = dma.vmem_to_hbm [thread:$0]  %s4272_s26, 128, %s7385_s10, [#allocation9]  }
 0xaaa   :  { %5140 = dma.done.wait [#allocation9], 128  }
 0xaab   :  { %5141 = vsyncadd [#allocation9], 4294967168 }
 0xaac   :  { %4278 = vsyncpa [#allocation9], 1 }
 0xaad   :  { %4279 = vsyncmov [#allocation7] }
 0xab0   :  { %s4280_s13 = vpop.sfrf %4279 }
 0xab1   :  { %p4603_p8 = scmp.ne.s32.totalorder %s4280_s13, 0 }
 0xab3   :  { %4284 = shalt.err (%p4603_p8)  }
 0xab4   :  { %4286 = vsyncmov [#allocation7 + $0x1] }
 0xab7   :  { %s4287_s8 = vpop.sfrf %4286 }
 0xab8   :  { %p4604_p9 = scmp.ne.s32.totalorder %s4287_s8, 0 }
 0xaba   :  { %4291 = shalt.err (%p4604_p9)  }
 0xabb   :  { %4293 = vsyncmov [#allocation7 + $0x2] }
 0xabe   :  { %s4294_s14 = vpop.sfrf %4293 }
 0xabf   :  { %p4605_p10 = scmp.ne.s32.totalorder %s4294_s14, 0 }
 0xac1   :  { %4298 = shalt.err (%p4605_p10)  }

</bundles_post_ra>
